<compile_context>
chip_gen: v7x
topology: tpu7x:2x2x1
jax: 0.10.0
libtpu: 0.0.40
codegen_flags: <defaults>
</compile_context>

<pallas_src>
import functools

import jax
import jax.numpy as jnp
from jax import lax
from jax.experimental import pallas as pl
from jax.experimental.pallas import tpu as pltpu


# ------------------------------------------------------------------
# Single fused kernel: adjacency build + GCN x2 + wavefronted LSTM stack
# + pool/attention/linear head.  18 inputs, 1 output, no scratch.
# ------------------------------------------------------------------
def fused_gcn_lstm_kernel(
    edge_index_ref, edge_w_ref, x_ref,
    w1_ref, b1_ref, g1_ref, be1_ref,
    w2_ref, b2_ref, g2_ref, be2_ref,
    wih_ref, whh_ref, bias_ref,
    wa_ref, ba_ref, wo_ref, bo_ref,
    out_ref,
):
    n = x_ref.shape[0]
    hdim = w1_ref.shape[1]
    num_layers = wih_ref.shape[0]
    e = edge_index_ref.shape[1]

    # ---- dense weighted adjacency built in-kernel (one-hot matmul) ----
    # A[d, s] = sum_e w[e] * [dst[e] == d] * [src[e] == s]
    edge_src = edge_index_ref[0:1, :]                          # (1, E) int32
    edge_dst = edge_index_ref[1:2, :]                          # (1, E) int32
    node_ids = lax.broadcasted_iota(jnp.int32, (n, e), 0)      # (N, E)
    dst_oh = (edge_dst == node_ids).astype(jnp.float32)        # (N, E)
    src_w_oh = ((edge_src == node_ids).astype(jnp.float32)
                * edge_w_ref[...])                             # (N, E)
    adj = lax.dot_general(dst_oh, src_w_oh, (((1,), (1,)), ((), ())),
                          preferred_element_type=jnp.float32)  # (N, N)

    def bn_relu(h, gamma, beta):
        # BatchNorm1d over the node ("batch") axis with biased variance,
        # then ReLU (Dropout(p=0) is identity).
        mean = jnp.mean(h, axis=0, keepdims=True)
        var = jnp.mean((h - mean) ** 2, axis=0, keepdims=True)
        hn = (h - mean) * lax.rsqrt(var + 1e-5)
        return jnp.maximum(hn * gamma + beta, 0.0)

    # ---- GCN layer 1: (A @ X) @ W1 + b1  (C_in << N, H ordering) ----
    ax = jnp.dot(adj, x_ref[...], preferred_element_type=jnp.float32)
    h = jnp.dot(ax, w1_ref[...], preferred_element_type=jnp.float32) + b1_ref[...]
    h = bn_relu(h, g1_ref[...], be1_ref[...])

    # ---- GCN layer 2: A @ (H @ W2) + b2 ----
    hw = jnp.dot(h, w2_ref[...], preferred_element_type=jnp.float32)
    h = jnp.dot(adj, hw, preferred_element_type=jnp.float32) + b2_ref[...]
    h = bn_relu(h, g2_ref[...], be2_ref[...])
    # h: (N, H) — stays value/register resident; no VMEM sequence buffer.

    # ---- LSTM stack (batch=1, seq=N), gate order i | f | g | o ----
    # Single EUP pass per step: sigmoid(x) = 0.5*tanh(x/2) + 0.5, so pre-scale
    # non-"g" lanes by 0.5, one tanh over the full (1, 4H) vreg, affine fix-up.
    lane = lax.broadcasted_iota(jnp.int32, (1, 4 * hdim), 1)
    is_g = (lane >= 2 * hdim) & (lane < 3 * hdim)
    pre_scale = jnp.where(is_g, 1.0, 0.5)     # also the post-scale
    post_off = jnp.where(is_g, 0.0, 0.5)

    def cell_update(gates, c_prev):
        y = jnp.tanh(gates * pre_scale)
        act = y * pre_scale + post_off
        i_g = act[:, 0 * hdim:1 * hdim]
        f_g = act[:, 1 * hdim:2 * hdim]
        g_g = act[:, 2 * hdim:3 * hdim]
        o_g = act[:, 3 * hdim:4 * hdim]
        c_new = f_g * c_prev + i_g * g_g
        h_new = o_g * jnp.tanh(c_new)
        return h_new, c_new

    # Per-layer weights hoisted out of the (unrolled) time loop.
    wih = [wih_ref[l] for l in range(num_layers)]      # (H, 4H) each
    whh = [whh_ref[l] for l in range(num_layers)]      # (H, 4H) each
    bias = [bias_ref[l] for l in range(num_layers)]    # (1, 4H) each

    # Hoisted layer-0 input projection: one (N, H) @ (H, 4H) matmul.
    xw0 = jnp.dot(h, wih[0], preferred_element_type=jnp.float32) + bias[0]

    zero_h = jnp.zeros((1, hdim), jnp.float32)
    h_st = [zero_h] * num_layers
    c_st = [zero_h] * num_layers
    prev_out = [None] * num_layers       # layer outputs from the previous step
    running_max = jnp.full((1, hdim), -jnp.inf, jnp.float32)

    # Wavefront schedule: at step s, layer l processes t = s - l, so the
    # per-layer recurrent (1, H) @ (H, 4H) matmuls within a step are mutually
    # independent and their MXU latencies overlap.  Fully unrolled (static).
    for s in range(n + num_layers - 1):
        new_prev = list(prev_out)
        for layer in range(num_layers):
            t = s - layer
            if t < 0 or t >= n:
                continue
            if layer == 0:
                gates = xw0[t:t + 1, :]
            else:
                gates = (jnp.dot(prev_out[layer - 1], wih[layer],
                                 preferred_element_type=jnp.float32)
                         + bias[layer])
            gates = gates + jnp.dot(h_st[layer], whh[layer],
                                    preferred_element_type=jnp.float32)
            h_new, c_new = cell_update(gates, c_st[layer])
            h_st[layer] = h_new
            c_st[layer] = c_new
            new_prev[layer] = h_new
            if layer == num_layers - 1:
                # AdaptiveMaxPool1d(1) over the node/sequence axis, folded in
                # as a running maximum over the top layer's outputs.
                running_max = jnp.maximum(running_max, h_new)
        prev_out = new_prev

    # ---- head: attention gate + output Linear ----
    v = running_max                                            # (1, H)
    s_att = jnp.tanh(jnp.dot(v, wa_ref[...],
                             preferred_element_type=jnp.float32) + ba_ref[...])
    attn = jax.nn.softmax(s_att, axis=-1)
    a = v * attn
    out_ref[...] = (jnp.dot(a, wo_ref[...], preferred_element_type=jnp.float32)
                    + bo_ref[...])


# ------------------------------------------------------------------
# Full forward pass: one jitted wrapper, one Pallas dispatch.
# ------------------------------------------------------------------
@functools.partial(jax.jit, static_argnames=("num_features", "horizon"))
def gcn_lstm_forward(x, edge_index, edge_weight, params, num_features, horizon):
    (w1, b1, g1, be1), (w2, b2, g2, be2) = params["gcn"]
    out_dim = params["out_w"].shape[1]

    edge_index = edge_index.astype(jnp.int32)                   # (2, E)
    edge_w = edge_weight.astype(jnp.float32).reshape(1, -1)     # (1, E)

    out = pl.pallas_call(
        fused_gcn_lstm_kernel,
        out_shape=jax.ShapeDtypeStruct((1, out_dim), jnp.float32),
        compiler_params=pltpu.CompilerParams(
            vmem_limit_bytes=32 * 1024 * 1024),
    )(edge_index, edge_w, x.astype(jnp.float32),
      w1, b1, g1, be1,
      w2, b2, g2, be2,
      params["lstm_w_ih"], params["lstm_w_hh"], params["lstm_b"],
      params["attn_w"], params["attn_b"],
      params["out_w"], params["out_b"])

    return out.reshape(num_features, horizon)


if __name__ == "__main__":
    # Small shapes consistent with the module.
    N = 16            # number of graph nodes (= LSTM sequence length)
    C_IN = 4          # in_channels
    H = 32            # hidden_channels
    NUM_GCN_LAYERS = 3      # -> 2 actual GCN conv layers (matches the PyTorch loop)
    NUM_RNN_LAYERS = 3
    NUM_FEATURES = 9
    HORIZON = 1

    key = jax.random.PRNGKey(0)
    ks = jax.random.split(key, 20)

    # Node features.
    x = jax.random.normal(ks[0], (N, C_IN), jnp.float32)

    # Graph: ring edges (both directions) + self loops.
    src = jnp.concatenate([jnp.arange(N), (jnp.arange(N) + 1) % N, jnp.arange(N)])
    dst = jnp.concatenate([(jnp.arange(N) + 1) % N, jnp.arange(N), jnp.arange(N)])
    edge_index = jnp.stack([src, dst]).astype(jnp.int32)          # (2, E)
    edge_weight = jax.random.uniform(ks[1], (edge_index.shape[1],), jnp.float32,
                                     minval=0.1, maxval=1.0)

    # Parameters (deterministic synthetic init).
    gcn_params = []
    cin = C_IN
    kidx = 2
    for _ in range(1 + (NUM_GCN_LAYERS - 2)):      # matches ModuleList construction
        w = 0.1 * jax.random.normal(ks[kidx], (cin, H), jnp.float32)
        b = 0.01 * jax.random.normal(ks[kidx + 1], (1, H), jnp.float32)
        gamma = jnp.ones((1, H), jnp.float32)
        beta = jnp.zeros((1, H), jnp.float32)
        gcn_params.append((w, b, gamma, beta))
        cin = H
        kidx += 2

    # LSTM weights pre-transposed to (H, 4H); bias = b_ih + b_hh; gate order i|f|g|o.
    lstm_w_ih = 0.1 * jax.random.normal(ks[kidx], (NUM_RNN_LAYERS, H, 4 * H),
                                        jnp.float32)
    lstm_w_hh = 0.1 * jax.random.normal(ks[kidx + 1], (NUM_RNN_LAYERS, H, 4 * H),
                                        jnp.float32)
    lstm_b = 0.01 * jax.random.normal(ks[kidx + 2], (NUM_RNN_LAYERS, 1, 4 * H),
                                      jnp.float32)

    attn_w = 0.1 * jax.random.normal(ks[kidx + 3], (H, H), jnp.float32)
    attn_b = 0.01 * jax.random.normal(ks[kidx + 4], (1, H), jnp.float32)
    out_w = 0.1 * jax.random.normal(ks[kidx + 5], (H, NUM_FEATURES * HORIZON),
                                    jnp.float32)
    out_b = 0.01 * jax.random.normal(ks[kidx + 6], (1, NUM_FEATURES * HORIZON),
                                     jnp.float32)

    params = {
        "gcn": gcn_params,
        "lstm_w_ih": lstm_w_ih,
        "lstm_w_hh": lstm_w_hh,
        "lstm_b": lstm_b,
        "attn_w": attn_w,
        "attn_b": attn_b,
        "out_w": out_w,
        "out_b": out_b,
    }

    out = gcn_lstm_forward(x, edge_index, edge_weight, params,
                           NUM_FEATURES, HORIZON)
    out = jax.block_until_ready(out)
    assert out.shape == (NUM_FEATURES, HORIZON)
    assert jnp.all(jnp.isfinite(out))
    print("KERNEL_OK")
</pallas_src>

<mosaic_0001>
module attributes {stable_mosaic.version = 11 : i64} {
  func.func @fused_gcn_lstm_kernel(%arg0: memref<2x48xi32, #tpu.memory_space<vmem>>, %arg1: memref<1x48xf32, #tpu.memory_space<vmem>>, %arg2: memref<16x4xf32, #tpu.memory_space<vmem>>, %arg3: memref<4x32xf32, #tpu.memory_space<vmem>>, %arg4: memref<1x32xf32, #tpu.memory_space<vmem>>, %arg5: memref<1x32xf32, #tpu.memory_space<vmem>>, %arg6: memref<1x32xf32, #tpu.memory_space<vmem>>, %arg7: memref<32x32xf32, #tpu.memory_space<vmem>>, %arg8: memref<1x32xf32, #tpu.memory_space<vmem>>, %arg9: memref<1x32xf32, #tpu.memory_space<vmem>>, %arg10: memref<1x32xf32, #tpu.memory_space<vmem>>, %arg11: memref<3x32x128xf32, #tpu.memory_space<vmem>>, %arg12: memref<3x32x128xf32, #tpu.memory_space<vmem>>, %arg13: memref<3x1x128xf32, #tpu.memory_space<vmem>>, %arg14: memref<32x32xf32, #tpu.memory_space<vmem>>, %arg15: memref<1x32xf32, #tpu.memory_space<vmem>>, %arg16: memref<32x9xf32, #tpu.memory_space<vmem>>, %arg17: memref<1x9xf32, #tpu.memory_space<vmem>>, %arg18: memref<1x9xf32, #tpu.memory_space<vmem>>) attributes {dimension_semantics = [], scalar_prefetch = 0 : i64, scratch_operands = 0 : i64, tpu.core_type = #tpu.core_type<tc>} {
    %c0 = arith.constant 0 : index
    %c0_0 = arith.constant 0 : index
    %0 = vector.load %arg0[%c0, %c0_0] : memref<2x48xi32, #tpu.memory_space<vmem>>, vector<1x48xi32>
    %c1 = arith.constant 1 : index
    %c0_1 = arith.constant 0 : index
    %1 = vector.load %arg0[%c1, %c0_1] : memref<2x48xi32, #tpu.memory_space<vmem>>, vector<1x48xi32>
    %2 = tpu.iota {dimensions = array<i32: 0>} : vector<16x48xi32>
    %3 = vector.broadcast %1 : vector<1x48xi32> to vector<16x48xi32>
    %4 = arith.cmpi eq, %3, %2 : vector<16x48xi32>
    %5 = arith.extui %4 : vector<16x48xi1> to vector<16x48xi32>
    %6 = arith.sitofp %5 : vector<16x48xi32> to vector<16x48xf32>
    %7 = vector.broadcast %0 : vector<1x48xi32> to vector<16x48xi32>
    %8 = arith.cmpi eq, %7, %2 : vector<16x48xi32>
    %9 = arith.extui %8 : vector<16x48xi1> to vector<16x48xi32>
    %10 = arith.sitofp %9 : vector<16x48xi32> to vector<16x48xf32>
    %c0_2 = arith.constant 0 : index
    %c0_3 = arith.constant 0 : index
    %11 = vector.load %arg1[%c0_2, %c0_3] : memref<1x48xf32, #tpu.memory_space<vmem>>, vector<1x48xf32>
    %12 = vector.broadcast %11 : vector<1x48xf32> to vector<16x48xf32>
    %13 = arith.mulf %10, %12 : vector<16x48xf32>
    %cst = arith.constant dense<0.000000e+00> : vector<16x16xf32>
    %14 = tpu.matmul %6, %13, %cst {dimension_numbers = #tpu.dot_dimension_numbers<[1], [1], [0], [0], [0, 0, 1, 0], [], []>} : vector<16x48xf32>, vector<16x48xf32>, vector<16x16xf32> -> vector<16x16xf32>
    %c0_4 = arith.constant 0 : index
    %c0_5 = arith.constant 0 : index
    %15 = vector.load %arg2[%c0_4, %c0_5] : memref<16x4xf32, #tpu.memory_space<vmem>>, vector<16x4xf32>
    %cst_6 = arith.constant dense<0.000000e+00> : vector<16x4xf32>
    %16 = tpu.matmul %14, %15, %cst_6 {dimension_numbers = #tpu.dot_dimension_numbers<[1], [0], [0], [1], [0, 0, 1, 1], [], []>} : vector<16x16xf32>, vector<16x4xf32>, vector<16x4xf32> -> vector<16x4xf32>
    %c0_7 = arith.constant 0 : index
    %c0_8 = arith.constant 0 : index
    %17 = vector.load %arg3[%c0_7, %c0_8] : memref<4x32xf32, #tpu.memory_space<vmem>>, vector<4x32xf32>
    %cst_9 = arith.constant dense<0.000000e+00> : vector<16x32xf32>
    %18 = tpu.matmul %16, %17, %cst_9 {dimension_numbers = #tpu.dot_dimension_numbers<[1], [0], [0], [1], [0, 0, 1, 1], [], []>} : vector<16x4xf32>, vector<4x32xf32>, vector<16x32xf32> -> vector<16x32xf32>
    %c0_10 = arith.constant 0 : index
    %c0_11 = arith.constant 0 : index
    %19 = vector.load %arg4[%c0_10, %c0_11] : memref<1x32xf32, #tpu.memory_space<vmem>>, vector<1x32xf32>
    %20 = vector.broadcast %19 : vector<1x32xf32> to vector<16x32xf32>
    %21 = arith.addf %18, %20 : vector<16x32xf32>
    %c0_12 = arith.constant 0 : index
    %c0_13 = arith.constant 0 : index
    %22 = vector.load %arg5[%c0_12, %c0_13] : memref<1x32xf32, #tpu.memory_space<vmem>>, vector<1x32xf32>
    %c0_14 = arith.constant 0 : index
    %c0_15 = arith.constant 0 : index
    %23 = vector.load %arg6[%c0_14, %c0_15] : memref<1x32xf32, #tpu.memory_space<vmem>>, vector<1x32xf32>
    %cst_16 = arith.constant dense<0.000000e+00> : vector<32xf32>
    %24 = vector.multi_reduction <add>, %21, %cst_16 [0] : vector<16x32xf32> to vector<32xf32>
    %25 = vector.shape_cast %24 : vector<32xf32> to vector<1x32xf32>
    %cst_17 = arith.constant 1.600000e+01 : f32
    %26 = vector.broadcast %cst_17 : f32 to vector<1x32xf32>
    %27 = arith.divf %25, %26 : vector<1x32xf32>
    %28 = vector.broadcast %27 : vector<1x32xf32> to vector<16x32xf32>
    %29 = arith.subf %21, %28 : vector<16x32xf32>
    %30 = arith.mulf %29, %29 : vector<16x32xf32>
    %cst_18 = arith.constant dense<0.000000e+00> : vector<32xf32>
    %31 = vector.multi_reduction <add>, %30, %cst_18 [0] : vector<16x32xf32> to vector<32xf32>
    %32 = vector.shape_cast %31 : vector<32xf32> to vector<1x32xf32>
    %cst_19 = arith.constant 1.600000e+01 : f32
    %33 = vector.broadcast %cst_19 : f32 to vector<1x32xf32>
    %34 = arith.divf %32, %33 : vector<1x32xf32>
    %35 = vector.broadcast %27 : vector<1x32xf32> to vector<16x32xf32>
    %36 = arith.subf %21, %35 : vector<16x32xf32>
    %cst_20 = arith.constant 9.99999974E-6 : f32
    %37 = vector.broadcast %cst_20 : f32 to vector<1x32xf32>
    %38 = arith.addf %34, %37 : vector<1x32xf32>
    %39 = math.rsqrt %38 : vector<1x32xf32>
    %40 = vector.broadcast %39 : vector<1x32xf32> to vector<16x32xf32>
    %41 = arith.mulf %36, %40 : vector<16x32xf32>
    %42 = vector.broadcast %22 : vector<1x32xf32> to vector<16x32xf32>
    %43 = arith.mulf %41, %42 : vector<16x32xf32>
    %44 = vector.broadcast %23 : vector<1x32xf32> to vector<16x32xf32>
    %45 = arith.addf %43, %44 : vector<16x32xf32>
    %cst_21 = arith.constant 0.000000e+00 : f32
    %46 = vector.broadcast %cst_21 : f32 to vector<16x32xf32>
    %47 = arith.maximumf %45, %46 : vector<16x32xf32>
    %c0_22 = arith.constant 0 : index
    %c0_23 = arith.constant 0 : index
    %48 = vector.load %arg7[%c0_22, %c0_23] : memref<32x32xf32, #tpu.memory_space<vmem>>, vector<32x32xf32>
    %cst_24 = arith.constant dense<0.000000e+00> : vector<16x32xf32>
    %49 = tpu.matmul %47, %48, %cst_24 {dimension_numbers = #tpu.dot_dimension_numbers<[1], [0], [0], [1], [0, 0, 1, 1], [], []>} : vector<16x32xf32>, vector<32x32xf32>, vector<16x32xf32> -> vector<16x32xf32>
    %cst_25 = arith.constant dense<0.000000e+00> : vector<16x32xf32>
    %50 = tpu.matmul %14, %49, %cst_25 {dimension_numbers = #tpu.dot_dimension_numbers<[1], [0], [0], [1], [0, 0, 1, 1], [], []>} : vector<16x16xf32>, vector<16x32xf32>, vector<16x32xf32> -> vector<16x32xf32>
    %c0_26 = arith.constant 0 : index
    %c0_27 = arith.constant 0 : index
    %51 = vector.load %arg8[%c0_26, %c0_27] : memref<1x32xf32, #tpu.memory_space<vmem>>, vector<1x32xf32>
    %52 = vector.broadcast %51 : vector<1x32xf32> to vector<16x32xf32>
    %53 = arith.addf %50, %52 : vector<16x32xf32>
    %c0_28 = arith.constant 0 : index
    %c0_29 = arith.constant 0 : index
    %54 = vector.load %arg9[%c0_28, %c0_29] : memref<1x32xf32, #tpu.memory_space<vmem>>, vector<1x32xf32>
    %c0_30 = arith.constant 0 : index
    %c0_31 = arith.constant 0 : index
    %55 = vector.load %arg10[%c0_30, %c0_31] : memref<1x32xf32, #tpu.memory_space<vmem>>, vector<1x32xf32>
    %cst_32 = arith.constant dense<0.000000e+00> : vector<32xf32>
    %56 = vector.multi_reduction <add>, %53, %cst_32 [0] : vector<16x32xf32> to vector<32xf32>
    %57 = vector.shape_cast %56 : vector<32xf32> to vector<1x32xf32>
    %cst_33 = arith.constant 1.600000e+01 : f32
    %58 = vector.broadcast %cst_33 : f32 to vector<1x32xf32>
    %59 = arith.divf %57, %58 : vector<1x32xf32>
    %60 = vector.broadcast %59 : vector<1x32xf32> to vector<16x32xf32>
    %61 = arith.subf %53, %60 : vector<16x32xf32>
    %62 = arith.mulf %61, %61 : vector<16x32xf32>
    %cst_34 = arith.constant dense<0.000000e+00> : vector<32xf32>
    %63 = vector.multi_reduction <add>, %62, %cst_34 [0] : vector<16x32xf32> to vector<32xf32>
    %64 = vector.shape_cast %63 : vector<32xf32> to vector<1x32xf32>
    %cst_35 = arith.constant 1.600000e+01 : f32
    %65 = vector.broadcast %cst_35 : f32 to vector<1x32xf32>
    %66 = arith.divf %64, %65 : vector<1x32xf32>
    %67 = vector.broadcast %59 : vector<1x32xf32> to vector<16x32xf32>
    %68 = arith.subf %53, %67 : vector<16x32xf32>
    %cst_36 = arith.constant 9.99999974E-6 : f32
    %69 = vector.broadcast %cst_36 : f32 to vector<1x32xf32>
    %70 = arith.addf %66, %69 : vector<1x32xf32>
    %71 = math.rsqrt %70 : vector<1x32xf32>
    %72 = vector.broadcast %71 : vector<1x32xf32> to vector<16x32xf32>
    %73 = arith.mulf %68, %72 : vector<16x32xf32>
    %74 = vector.broadcast %54 : vector<1x32xf32> to vector<16x32xf32>
    %75 = arith.mulf %73, %74 : vector<16x32xf32>
    %76 = vector.broadcast %55 : vector<1x32xf32> to vector<16x32xf32>
    %77 = arith.addf %75, %76 : vector<16x32xf32>
    %cst_37 = arith.constant 0.000000e+00 : f32
    %78 = vector.broadcast %cst_37 : f32 to vector<16x32xf32>
    %79 = arith.maximumf %77, %78 : vector<16x32xf32>
    %80 = tpu.iota {dimensions = array<i32: 1>} : vector<1x128xi32>
    %c64_i32 = arith.constant 64 : i32
    %81 = vector.broadcast %c64_i32 : i32 to vector<1x128xi32>
    %82 = arith.cmpi sge, %80, %81 : vector<1x128xi32>
    %c96_i32 = arith.constant 96 : i32
    %83 = vector.broadcast %c96_i32 : i32 to vector<1x128xi32>
    %84 = arith.cmpi slt, %80, %83 : vector<1x128xi32>
    %85 = arith.andi %82, %84 : vector<1x128xi1>
    %cst_38 = arith.constant 1.000000e+00 : f32
    %cst_39 = arith.constant 5.000000e-01 : f32
    %86 = vector.broadcast %cst_38 : f32 to vector<1x128xf32>
    %87 = vector.broadcast %cst_39 : f32 to vector<1x128xf32>
    %88 = arith.select %85, %86, %87 : vector<1x128xi1>, vector<1x128xf32>
    %cst_40 = arith.constant 0.000000e+00 : f32
    %cst_41 = arith.constant 5.000000e-01 : f32
    %89 = vector.broadcast %cst_40 : f32 to vector<1x128xf32>
    %90 = vector.broadcast %cst_41 : f32 to vector<1x128xf32>
    %91 = arith.select %85, %89, %90 : vector<1x128xi1>, vector<1x128xf32>
    %c0_42 = arith.constant 0 : index
    %c0_43 = arith.constant 0 : index
    %c0_44 = arith.constant 0 : index
    %92 = vector.load %arg11[%c0_42, %c0_43, %c0_44] : memref<3x32x128xf32, #tpu.memory_space<vmem>>, vector<1x32x128xf32>
    %93 = vector.shape_cast %92 : vector<1x32x128xf32> to vector<32x128xf32>
    %c1_45 = arith.constant 1 : index
    %c0_46 = arith.constant 0 : index
    %c0_47 = arith.constant 0 : index
    %94 = vector.load %arg11[%c1_45, %c0_46, %c0_47] : memref<3x32x128xf32, #tpu.memory_space<vmem>>, vector<1x32x128xf32>
    %95 = vector.shape_cast %94 : vector<1x32x128xf32> to vector<32x128xf32>
    %c2 = arith.constant 2 : index
    %c0_48 = arith.constant 0 : index
    %c0_49 = arith.constant 0 : index
    %96 = vector.load %arg11[%c2, %c0_48, %c0_49] : memref<3x32x128xf32, #tpu.memory_space<vmem>>, vector<1x32x128xf32>
    %97 = vector.shape_cast %96 : vector<1x32x128xf32> to vector<32x128xf32>
    %c0_50 = arith.constant 0 : index
    %c0_51 = arith.constant 0 : index
    %c0_52 = arith.constant 0 : index
    %98 = vector.load %arg12[%c0_50, %c0_51, %c0_52] : memref<3x32x128xf32, #tpu.memory_space<vmem>>, vector<1x32x128xf32>
    %99 = vector.shape_cast %98 : vector<1x32x128xf32> to vector<32x128xf32>
    %c1_53 = arith.constant 1 : index
    %c0_54 = arith.constant 0 : index
    %c0_55 = arith.constant 0 : index
    %100 = vector.load %arg12[%c1_53, %c0_54, %c0_55] : memref<3x32x128xf32, #tpu.memory_space<vmem>>, vector<1x32x128xf32>
    %101 = vector.shape_cast %100 : vector<1x32x128xf32> to vector<32x128xf32>
    %c2_56 = arith.constant 2 : index
    %c0_57 = arith.constant 0 : index
    %c0_58 = arith.constant 0 : index
    %102 = vector.load %arg12[%c2_56, %c0_57, %c0_58] : memref<3x32x128xf32, #tpu.memory_space<vmem>>, vector<1x32x128xf32>
    %103 = vector.shape_cast %102 : vector<1x32x128xf32> to vector<32x128xf32>
    %c0_59 = arith.constant 0 : index
    %c0_60 = arith.constant 0 : index
    %c0_61 = arith.constant 0 : index
    %104 = vector.load %arg13[%c0_59, %c0_60, %c0_61] : memref<3x1x128xf32, #tpu.memory_space<vmem>>, vector<1x1x128xf32>
    %105 = vector.shape_cast %104 : vector<1x1x128xf32> to vector<1x128xf32>
    %c1_62 = arith.constant 1 : index
    %c0_63 = arith.constant 0 : index
    %c0_64 = arith.constant 0 : index
    %106 = vector.load %arg13[%c1_62, %c0_63, %c0_64] : memref<3x1x128xf32, #tpu.memory_space<vmem>>, vector<1x1x128xf32>
    %107 = vector.shape_cast %106 : vector<1x1x128xf32> to vector<1x128xf32>
    %c2_65 = arith.constant 2 : index
    %c0_66 = arith.constant 0 : index
    %c0_67 = arith.constant 0 : index
    %108 = vector.load %arg13[%c2_65, %c0_66, %c0_67] : memref<3x1x128xf32, #tpu.memory_space<vmem>>, vector<1x1x128xf32>
    %109 = vector.shape_cast %108 : vector<1x1x128xf32> to vector<1x128xf32>
    %cst_68 = arith.constant dense<0.000000e+00> : vector<16x128xf32>
    %110 = tpu.matmul %79, %93, %cst_68 {dimension_numbers = #tpu.dot_dimension_numbers<[1], [0], [0], [1], [0, 0, 1, 1], [], []>} : vector<16x32xf32>, vector<32x128xf32>, vector<16x128xf32> -> vector<16x128xf32>
    %111 = vector.broadcast %105 : vector<1x128xf32> to vector<16x128xf32>
    %112 = arith.addf %110, %111 : vector<16x128xf32>
    %cst_69 = arith.constant 0.000000e+00 : f32
    %113 = vector.broadcast %cst_69 : f32 to vector<1x32xf32>
    %cst_70 = arith.constant 0xFF800000 : f32
    %114 = vector.broadcast %cst_70 : f32 to vector<1x32xf32>
    %115 = vector.extract_strided_slice %112 {offsets = [0, 0], sizes = [1, 128], strides = [1, 1]} : vector<16x128xf32> to vector<1x128xf32>
    %cst_71 = arith.constant dense<0.000000e+00> : vector<1x128xf32>
    %116 = tpu.matmul %113, %99, %cst_71 {dimension_numbers = #tpu.dot_dimension_numbers<[1], [0], [0], [1], [0, 0, 1, 1], [], []>} : vector<1x32xf32>, vector<32x128xf32>, vector<1x128xf32> -> vector<1x128xf32>
    %117 = arith.addf %115, %116 : vector<1x128xf32>
    %118 = arith.mulf %117, %88 : vector<1x128xf32>
    %119 = math.tanh %118 : vector<1x128xf32>
    %120 = arith.mulf %119, %88 : vector<1x128xf32>
    %121 = arith.addf %120, %91 : vector<1x128xf32>
    %122 = vector.extract_strided_slice %121 {offsets = [0, 0], sizes = [1, 32], strides = [1, 1]} : vector<1x128xf32> to vector<1x32xf32>
    %123 = vector.extract_strided_slice %121 {offsets = [0, 32], sizes = [1, 32], strides = [1, 1]} : vector<1x128xf32> to vector<1x32xf32>
    %124 = vector.extract_strided_slice %121 {offsets = [0, 64], sizes = [1, 32], strides = [1, 1]} : vector<1x128xf32> to vector<1x32xf32>
    %125 = vector.extract_strided_slice %121 {offsets = [0, 96], sizes = [1, 32], strides = [1, 1]} : vector<1x128xf32> to vector<1x32xf32>
    %126 = arith.mulf %123, %113 : vector<1x32xf32>
    %127 = arith.mulf %122, %124 : vector<1x32xf32>
    %128 = arith.addf %126, %127 : vector<1x32xf32>
    %129 = math.tanh %128 : vector<1x32xf32>
    %130 = arith.mulf %125, %129 : vector<1x32xf32>
    %131 = vector.extract_strided_slice %112 {offsets = [1, 0], sizes = [1, 128], strides = [1, 1]} : vector<16x128xf32> to vector<1x128xf32>
    %cst_72 = arith.constant dense<0.000000e+00> : vector<1x128xf32>
    %132 = tpu.matmul %130, %99, %cst_72 {dimension_numbers = #tpu.dot_dimension_numbers<[1], [0], [0], [1], [0, 0, 1, 1], [], []>} : vector<1x32xf32>, vector<32x128xf32>, vector<1x128xf32> -> vector<1x128xf32>
    %133 = arith.addf %131, %132 : vector<1x128xf32>
    %134 = arith.mulf %133, %88 : vector<1x128xf32>
    %135 = math.tanh %134 : vector<1x128xf32>
    %136 = arith.mulf %135, %88 : vector<1x128xf32>
    %137 = arith.addf %136, %91 : vector<1x128xf32>
    %138 = vector.extract_strided_slice %137 {offsets = [0, 0], sizes = [1, 32], strides = [1, 1]} : vector<1x128xf32> to vector<1x32xf32>
    %139 = vector.extract_strided_slice %137 {offsets = [0, 32], sizes = [1, 32], strides = [1, 1]} : vector<1x128xf32> to vector<1x32xf32>
    %140 = vector.extract_strided_slice %137 {offsets = [0, 64], sizes = [1, 32], strides = [1, 1]} : vector<1x128xf32> to vector<1x32xf32>
    %141 = vector.extract_strided_slice %137 {offsets = [0, 96], sizes = [1, 32], strides = [1, 1]} : vector<1x128xf32> to vector<1x32xf32>
    %142 = arith.mulf %139, %128 : vector<1x32xf32>
    %143 = arith.mulf %138, %140 : vector<1x32xf32>
    %144 = arith.addf %142, %143 : vector<1x32xf32>
    %145 = math.tanh %144 : vector<1x32xf32>
    %146 = arith.mulf %141, %145 : vector<1x32xf32>
    %cst_73 = arith.constant dense<0.000000e+00> : vector<1x128xf32>
    %147 = tpu.matmul %130, %95, %cst_73 {dimension_numbers = #tpu.dot_dimension_numbers<[1], [0], [0], [1], [0, 0, 1, 1], [], []>} : vector<1x32xf32>, vector<32x128xf32>, vector<1x128xf32> -> vector<1x128xf32>
    %148 = arith.addf %147, %107 : vector<1x128xf32>
    %cst_74 = arith.constant dense<0.000000e+00> : vector<1x128xf32>
    %149 = tpu.matmul %113, %101, %cst_74 {dimension_numbers = #tpu.dot_dimension_numbers<[1], [0], [0], [1], [0, 0, 1, 1], [], []>} : vector<1x32xf32>, vector<32x128xf32>, vector<1x128xf32> -> vector<1x128xf32>
    %150 = arith.addf %148, %149 : vector<1x128xf32>
    %151 = arith.mulf %150, %88 : vector<1x128xf32>
    %152 = math.tanh %151 : vector<1x128xf32>
    %153 = arith.mulf %152, %88 : vector<1x128xf32>
    %154 = arith.addf %153, %91 : vector<1x128xf32>
    %155 = vector.extract_strided_slice %154 {offsets = [0, 0], sizes = [1, 32], strides = [1, 1]} : vector<1x128xf32> to vector<1x32xf32>
    %156 = vector.extract_strided_slice %154 {offsets = [0, 32], sizes = [1, 32], strides = [1, 1]} : vector<1x128xf32> to vector<1x32xf32>
    %157 = vector.extract_strided_slice %154 {offsets = [0, 64], sizes = [1, 32], strides = [1, 1]} : vector<1x128xf32> to vector<1x32xf32>
    %158 = vector.extract_strided_slice %154 {offsets = [0, 96], sizes = [1, 32], strides = [1, 1]} : vector<1x128xf32> to vector<1x32xf32>
    %159 = arith.mulf %156, %113 : vector<1x32xf32>
    %160 = arith.mulf %155, %157 : vector<1x32xf32>
    %161 = arith.addf %159, %160 : vector<1x32xf32>
    %162 = math.tanh %161 : vector<1x32xf32>
    %163 = arith.mulf %158, %162 : vector<1x32xf32>
    %164 = vector.extract_strided_slice %112 {offsets = [2, 0], sizes = [1, 128], strides = [1, 1]} : vector<16x128xf32> to vector<1x128xf32>
    %cst_75 = arith.constant dense<0.000000e+00> : vector<1x128xf32>
    %165 = tpu.matmul %146, %99, %cst_75 {dimension_numbers = #tpu.dot_dimension_numbers<[1], [0], [0], [1], [0, 0, 1, 1], [], []>} : vector<1x32xf32>, vector<32x128xf32>, vector<1x128xf32> -> vector<1x128xf32>
    %166 = arith.addf %164, %165 : vector<1x128xf32>
    %167 = arith.mulf %166, %88 : vector<1x128xf32>
    %168 = math.tanh %167 : vector<1x128xf32>
    %169 = arith.mulf %168, %88 : vector<1x128xf32>
    %170 = arith.addf %169, %91 : vector<1x128xf32>
    %171 = vector.extract_strided_slice %170 {offsets = [0, 0], sizes = [1, 32], strides = [1, 1]} : vector<1x128xf32> to vector<1x32xf32>
    %172 = vector.extract_strided_slice %170 {offsets = [0, 32], sizes = [1, 32], strides = [1, 1]} : vector<1x128xf32> to vector<1x32xf32>
    %173 = vector.extract_strided_slice %170 {offsets = [0, 64], sizes = [1, 32], strides = [1, 1]} : vector<1x128xf32> to vector<1x32xf32>
    %174 = vector.extract_strided_slice %170 {offsets = [0, 96], sizes = [1, 32], strides = [1, 1]} : vector<1x128xf32> to vector<1x32xf32>
    %175 = arith.mulf %172, %144 : vector<1x32xf32>
    %176 = arith.mulf %171, %173 : vector<1x32xf32>
    %177 = arith.addf %175, %176 : vector<1x32xf32>
    %178 = math.tanh %177 : vector<1x32xf32>
    %179 = arith.mulf %174, %178 : vector<1x32xf32>
    %cst_76 = arith.constant dense<0.000000e+00> : vector<1x128xf32>
    %180 = tpu.matmul %146, %95, %cst_76 {dimension_numbers = #tpu.dot_dimension_numbers<[1], [0], [0], [1], [0, 0, 1, 1], [], []>} : vector<1x32xf32>, vector<32x128xf32>, vector<1x128xf32> -> vector<1x128xf32>
    %181 = arith.addf %180, %107 : vector<1x128xf32>
    %cst_77 = arith.constant dense<0.000000e+00> : vector<1x128xf32>
    %182 = tpu.matmul %163, %101, %cst_77 {dimension_numbers = #tpu.dot_dimension_numbers<[1], [0], [0], [1], [0, 0, 1, 1], [], []>} : vector<1x32xf32>, vector<32x128xf32>, vector<1x128xf32> -> vector<1x128xf32>
    %183 = arith.addf %181, %182 : vector<1x128xf32>
    %184 = arith.mulf %183, %88 : vector<1x128xf32>
    %185 = math.tanh %184 : vector<1x128xf32>
    %186 = arith.mulf %185, %88 : vector<1x128xf32>
    %187 = arith.addf %186, %91 : vector<1x128xf32>
    %188 = vector.extract_strided_slice %187 {offsets = [0, 0], sizes = [1, 32], strides = [1, 1]} : vector<1x128xf32> to vector<1x32xf32>
    %189 = vector.extract_strided_slice %187 {offsets = [0, 32], sizes = [1, 32], strides = [1, 1]} : vector<1x128xf32> to vector<1x32xf32>
    %190 = vector.extract_strided_slice %187 {offsets = [0, 64], sizes = [1, 32], strides = [1, 1]} : vector<1x128xf32> to vector<1x32xf32>
    %191 = vector.extract_strided_slice %187 {offsets = [0, 96], sizes = [1, 32], strides = [1, 1]} : vector<1x128xf32> to vector<1x32xf32>
    %192 = arith.mulf %189, %161 : vector<1x32xf32>
    %193 = arith.mulf %188, %190 : vector<1x32xf32>
    %194 = arith.addf %192, %193 : vector<1x32xf32>
    %195 = math.tanh %194 : vector<1x32xf32>
    %196 = arith.mulf %191, %195 : vector<1x32xf32>
    %cst_78 = arith.constant dense<0.000000e+00> : vector<1x128xf32>
    %197 = tpu.matmul %163, %97, %cst_78 {dimension_numbers = #tpu.dot_dimension_numbers<[1], [0], [0], [1], [0, 0, 1, 1], [], []>} : vector<1x32xf32>, vector<32x128xf32>, vector<1x128xf32> -> vector<1x128xf32>
    %198 = arith.addf %197, %109 : vector<1x128xf32>
    %cst_79 = arith.constant dense<0.000000e+00> : vector<1x128xf32>
    %199 = tpu.matmul %113, %103, %cst_79 {dimension_numbers = #tpu.dot_dimension_numbers<[1], [0], [0], [1], [0, 0, 1, 1], [], []>} : vector<1x32xf32>, vector<32x128xf32>, vector<1x128xf32> -> vector<1x128xf32>
    %200 = arith.addf %198, %199 : vector<1x128xf32>
    %201 = arith.mulf %200, %88 : vector<1x128xf32>
    %202 = math.tanh %201 : vector<1x128xf32>
    %203 = arith.mulf %202, %88 : vector<1x128xf32>
    %204 = arith.addf %203, %91 : vector<1x128xf32>
    %205 = vector.extract_strided_slice %204 {offsets = [0, 0], sizes = [1, 32], strides = [1, 1]} : vector<1x128xf32> to vector<1x32xf32>
    %206 = vector.extract_strided_slice %204 {offsets = [0, 32], sizes = [1, 32], strides = [1, 1]} : vector<1x128xf32> to vector<1x32xf32>
    %207 = vector.extract_strided_slice %204 {offsets = [0, 64], sizes = [1, 32], strides = [1, 1]} : vector<1x128xf32> to vector<1x32xf32>
    %208 = vector.extract_strided_slice %204 {offsets = [0, 96], sizes = [1, 32], strides = [1, 1]} : vector<1x128xf32> to vector<1x32xf32>
    %209 = arith.mulf %206, %113 : vector<1x32xf32>
    %210 = arith.mulf %205, %207 : vector<1x32xf32>
    %211 = arith.addf %209, %210 : vector<1x32xf32>
    %212 = math.tanh %211 : vector<1x32xf32>
    %213 = arith.mulf %208, %212 : vector<1x32xf32>
    %214 = arith.maximumf %114, %213 : vector<1x32xf32>
    %215 = vector.extract_strided_slice %112 {offsets = [3, 0], sizes = [1, 128], strides = [1, 1]} : vector<16x128xf32> to vector<1x128xf32>
    %cst_80 = arith.constant dense<0.000000e+00> : vector<1x128xf32>
    %216 = tpu.matmul %179, %99, %cst_80 {dimension_numbers = #tpu.dot_dimension_numbers<[1], [0], [0], [1], [0, 0, 1, 1], [], []>} : vector<1x32xf32>, vector<32x128xf32>, vector<1x128xf32> -> vector<1x128xf32>
    %217 = arith.addf %215, %216 : vector<1x128xf32>
    %218 = arith.mulf %217, %88 : vector<1x128xf32>
    %219 = math.tanh %218 : vector<1x128xf32>
    %220 = arith.mulf %219, %88 : vector<1x128xf32>
    %221 = arith.addf %220, %91 : vector<1x128xf32>
    %222 = vector.extract_strided_slice %221 {offsets = [0, 0], sizes = [1, 32], strides = [1, 1]} : vector<1x128xf32> to vector<1x32xf32>
    %223 = vector.extract_strided_slice %221 {offsets = [0, 32], sizes = [1, 32], strides = [1, 1]} : vector<1x128xf32> to vector<1x32xf32>
    %224 = vector.extract_strided_slice %221 {offsets = [0, 64], sizes = [1, 32], strides = [1, 1]} : vector<1x128xf32> to vector<1x32xf32>
    %225 = vector.extract_strided_slice %221 {offsets = [0, 96], sizes = [1, 32], strides = [1, 1]} : vector<1x128xf32> to vector<1x32xf32>
    %226 = arith.mulf %223, %177 : vector<1x32xf32>
    %227 = arith.mulf %222, %224 : vector<1x32xf32>
    %228 = arith.addf %226, %227 : vector<1x32xf32>
    %229 = math.tanh %228 : vector<1x32xf32>
    %230 = arith.mulf %225, %229 : vector<1x32xf32>
    %cst_81 = arith.constant dense<0.000000e+00> : vector<1x128xf32>
    %231 = tpu.matmul %179, %95, %cst_81 {dimension_numbers = #tpu.dot_dimension_numbers<[1], [0], [0], [1], [0, 0, 1, 1], [], []>} : vector<1x32xf32>, vector<32x128xf32>, vector<1x128xf32> -> vector<1x128xf32>
    %232 = arith.addf %231, %107 : vector<1x128xf32>
    %cst_82 = arith.constant dense<0.000000e+00> : vector<1x128xf32>
    %233 = tpu.matmul %196, %101, %cst_82 {dimension_numbers = #tpu.dot_dimension_numbers<[1], [0], [0], [1], [0, 0, 1, 1], [], []>} : vector<1x32xf32>, vector<32x128xf32>, vector<1x128xf32> -> vector<1x128xf32>
    %234 = arith.addf %232, %233 : vector<1x128xf32>
    %235 = arith.mulf %234, %88 : vector<1x128xf32>
    %236 = math.tanh %235 : vector<1x128xf32>
    %237 = arith.mulf %236, %88 : vector<1x128xf32>
    %238 = arith.addf %237, %91 : vector<1x128xf32>
    %239 = vector.extract_strided_slice %238 {offsets = [0, 0], sizes = [1, 32], strides = [1, 1]} : vector<1x128xf32> to vector<1x32xf32>
    %240 = vector.extract_strided_slice %238 {offsets = [0, 32], sizes = [1, 32], strides = [1, 1]} : vector<1x128xf32> to vector<1x32xf32>
    %241 = vector.extract_strided_slice %238 {offsets = [0, 64], sizes = [1, 32], strides = [1, 1]} : vector<1x128xf32> to vector<1x32xf32>
    %242 = vector.extract_strided_slice %238 {offsets = [0, 96], sizes = [1, 32], strides = [1, 1]} : vector<1x128xf32> to vector<1x32xf32>
    %243 = arith.mulf %240, %194 : vector<1x32xf32>
    %244 = arith.mulf %239, %241 : vector<1x32xf32>
    %245 = arith.addf %243, %244 : vector<1x32xf32>
    %246 = math.tanh %245 : vector<1x32xf32>
    %247 = arith.mulf %242, %246 : vector<1x32xf32>
    %cst_83 = arith.constant dense<0.000000e+00> : vector<1x128xf32>
    %248 = tpu.matmul %196, %97, %cst_83 {dimension_numbers = #tpu.dot_dimension_numbers<[1], [0], [0], [1], [0, 0, 1, 1], [], []>} : vector<1x32xf32>, vector<32x128xf32>, vector<1x128xf32> -> vector<1x128xf32>
    %249 = arith.addf %248, %109 : vector<1x128xf32>
    %cst_84 = arith.constant dense<0.000000e+00> : vector<1x128xf32>
    %250 = tpu.matmul %213, %103, %cst_84 {dimension_numbers = #tpu.dot_dimension_numbers<[1], [0], [0], [1], [0, 0, 1, 1], [], []>} : vector<1x32xf32>, vector<32x128xf32>, vector<1x128xf32> -> vector<1x128xf32>
    %251 = arith.addf %249, %250 : vector<1x128xf32>
    %252 = arith.mulf %251, %88 : vector<1x128xf32>
    %253 = math.tanh %252 : vector<1x128xf32>
    %254 = arith.mulf %253, %88 : vector<1x128xf32>
    %255 = arith.addf %254, %91 : vector<1x128xf32>
    %256 = vector.extract_strided_slice %255 {offsets = [0, 0], sizes = [1, 32], strides = [1, 1]} : vector<1x128xf32> to vector<1x32xf32>
    %257 = vector.extract_strided_slice %255 {offsets = [0, 32], sizes = [1, 32], strides = [1, 1]} : vector<1x128xf32> to vector<1x32xf32>
    %258 = vector.extract_strided_slice %255 {offsets = [0, 64], sizes = [1, 32], strides = [1, 1]} : vector<1x128xf32> to vector<1x32xf32>
    %259 = vector.extract_strided_slice %255 {offsets = [0, 96], sizes = [1, 32], strides = [1, 1]} : vector<1x128xf32> to vector<1x32xf32>
    %260 = arith.mulf %257, %211 : vector<1x32xf32>
    %261 = arith.mulf %256, %258 : vector<1x32xf32>
    %262 = arith.addf %260, %261 : vector<1x32xf32>
    %263 = math.tanh %262 : vector<1x32xf32>
    %264 = arith.mulf %259, %263 : vector<1x32xf32>
    %265 = arith.maximumf %214, %264 : vector<1x32xf32>
    %266 = vector.extract_strided_slice %112 {offsets = [4, 0], sizes = [1, 128], strides = [1, 1]} : vector<16x128xf32> to vector<1x128xf32>
    %cst_85 = arith.constant dense<0.000000e+00> : vector<1x128xf32>
    %267 = tpu.matmul %230, %99, %cst_85 {dimension_numbers = #tpu.dot_dimension_numbers<[1], [0], [0], [1], [0, 0, 1, 1], [], []>} : vector<1x32xf32>, vector<32x128xf32>, vector<1x128xf32> -> vector<1x128xf32>
    %268 = arith.addf %266, %267 : vector<1x128xf32>
    %269 = arith.mulf %268, %88 : vector<1x128xf32>
    %270 = math.tanh %269 : vector<1x128xf32>
    %271 = arith.mulf %270, %88 : vector<1x128xf32>
    %272 = arith.addf %271, %91 : vector<1x128xf32>
    %273 = vector.extract_strided_slice %272 {offsets = [0, 0], sizes = [1, 32], strides = [1, 1]} : vector<1x128xf32> to vector<1x32xf32>
    %274 = vector.extract_strided_slice %272 {offsets = [0, 32], sizes = [1, 32], strides = [1, 1]} : vector<1x128xf32> to vector<1x32xf32>
    %275 = vector.extract_strided_slice %272 {offsets = [0, 64], sizes = [1, 32], strides = [1, 1]} : vector<1x128xf32> to vector<1x32xf32>
    %276 = vector.extract_strided_slice %272 {offsets = [0, 96], sizes = [1, 32], strides = [1, 1]} : vector<1x128xf32> to vector<1x32xf32>
    %277 = arith.mulf %274, %228 : vector<1x32xf32>
    %278 = arith.mulf %273, %275 : vector<1x32xf32>
    %279 = arith.addf %277, %278 : vector<1x32xf32>
    %280 = math.tanh %279 : vector<1x32xf32>
    %281 = arith.mulf %276, %280 : vector<1x32xf32>
    %cst_86 = arith.constant dense<0.000000e+00> : vector<1x128xf32>
    %282 = tpu.matmul %230, %95, %cst_86 {dimension_numbers = #tpu.dot_dimension_numbers<[1], [0], [0], [1], [0, 0, 1, 1], [], []>} : vector<1x32xf32>, vector<32x128xf32>, vector<1x128xf32> -> vector<1x128xf32>
    %283 = arith.addf %282, %107 : vector<1x128xf32>
    %cst_87 = arith.constant dense<0.000000e+00> : vector<1x128xf32>
    %284 = tpu.matmul %247, %101, %cst_87 {dimension_numbers = #tpu.dot_dimension_numbers<[1], [0], [0], [1], [0, 0, 1, 1], [], []>} : vector<1x32xf32>, vector<32x128xf32>, vector<1x128xf32> -> vector<1x128xf32>
    %285 = arith.addf %283, %284 : vector<1x128xf32>
    %286 = arith.mulf %285, %88 : vector<1x128xf32>
    %287 = math.tanh %286 : vector<1x128xf32>
    %288 = arith.mulf %287, %88 : vector<1x128xf32>
    %289 = arith.addf %288, %91 : vector<1x128xf32>
    %290 = vector.extract_strided_slice %289 {offsets = [0, 0], sizes = [1, 32], strides = [1, 1]} : vector<1x128xf32> to vector<1x32xf32>
    %291 = vector.extract_strided_slice %289 {offsets = [0, 32], sizes = [1, 32], strides = [1, 1]} : vector<1x128xf32> to vector<1x32xf32>
    %292 = vector.extract_strided_slice %289 {offsets = [0, 64], sizes = [1, 32], strides = [1, 1]} : vector<1x128xf32> to vector<1x32xf32>
    %293 = vector.extract_strided_slice %289 {offsets = [0, 96], sizes = [1, 32], strides = [1, 1]} : vector<1x128xf32> to vector<1x32xf32>
    %294 = arith.mulf %291, %245 : vector<1x32xf32>
    %295 = arith.mulf %290, %292 : vector<1x32xf32>
    %296 = arith.addf %294, %295 : vector<1x32xf32>
    %297 = math.tanh %296 : vector<1x32xf32>
    %298 = arith.mulf %293, %297 : vector<1x32xf32>
    %cst_88 = arith.constant dense<0.000000e+00> : vector<1x128xf32>
    %299 = tpu.matmul %247, %97, %cst_88 {dimension_numbers = #tpu.dot_dimension_numbers<[1], [0], [0], [1], [0, 0, 1, 1], [], []>} : vector<1x32xf32>, vector<32x128xf32>, vector<1x128xf32> -> vector<1x128xf32>
    %300 = arith.addf %299, %109 : vector<1x128xf32>
    %cst_89 = arith.constant dense<0.000000e+00> : vector<1x128xf32>
    %301 = tpu.matmul %264, %103, %cst_89 {dimension_numbers = #tpu.dot_dimension_numbers<[1], [0], [0], [1], [0, 0, 1, 1], [], []>} : vector<1x32xf32>, vector<32x128xf32>, vector<1x128xf32> -> vector<1x128xf32>
    %302 = arith.addf %300, %301 : vector<1x128xf32>
    %303 = arith.mulf %302, %88 : vector<1x128xf32>
    %304 = math.tanh %303 : vector<1x128xf32>
    %305 = arith.mulf %304, %88 : vector<1x128xf32>
    %306 = arith.addf %305, %91 : vector<1x128xf32>
    %307 = vector.extract_strided_slice %306 {offsets = [0, 0], sizes = [1, 32], strides = [1, 1]} : vector<1x128xf32> to vector<1x32xf32>
    %308 = vector.extract_strided_slice %306 {offsets = [0, 32], sizes = [1, 32], strides = [1, 1]} : vector<1x128xf32> to vector<1x32xf32>
    %309 = vector.extract_strided_slice %306 {offsets = [0, 64], sizes = [1, 32], strides = [1, 1]} : vector<1x128xf32> to vector<1x32xf32>
    %310 = vector.extract_strided_slice %306 {offsets = [0, 96], sizes = [1, 32], strides = [1, 1]} : vector<1x128xf32> to vector<1x32xf32>
    %311 = arith.mulf %308, %262 : vector<1x32xf32>
    %312 = arith.mulf %307, %309 : vector<1x32xf32>
    %313 = arith.addf %311, %312 : vector<1x32xf32>
    %314 = math.tanh %313 : vector<1x32xf32>
    %315 = arith.mulf %310, %314 : vector<1x32xf32>
    %316 = arith.maximumf %265, %315 : vector<1x32xf32>
    %317 = vector.extract_strided_slice %112 {offsets = [5, 0], sizes = [1, 128], strides = [1, 1]} : vector<16x128xf32> to vector<1x128xf32>
    %cst_90 = arith.constant dense<0.000000e+00> : vector<1x128xf32>
    %318 = tpu.matmul %281, %99, %cst_90 {dimension_numbers = #tpu.dot_dimension_numbers<[1], [0], [0], [1], [0, 0, 1, 1], [], []>} : vector<1x32xf32>, vector<32x128xf32>, vector<1x128xf32> -> vector<1x128xf32>
    %319 = arith.addf %317, %318 : vector<1x128xf32>
    %320 = arith.mulf %319, %88 : vector<1x128xf32>
    %321 = math.tanh %320 : vector<1x128xf32>
    %322 = arith.mulf %321, %88 : vector<1x128xf32>
    %323 = arith.addf %322, %91 : vector<1x128xf32>
    %324 = vector.extract_strided_slice %323 {offsets = [0, 0], sizes = [1, 32], strides = [1, 1]} : vector<1x128xf32> to vector<1x32xf32>
    %325 = vector.extract_strided_slice %323 {offsets = [0, 32], sizes = [1, 32], strides = [1, 1]} : vector<1x128xf32> to vector<1x32xf32>
    %326 = vector.extract_strided_slice %323 {offsets = [0, 64], sizes = [1, 32], strides = [1, 1]} : vector<1x128xf32> to vector<1x32xf32>
    %327 = vector.extract_strided_slice %323 {offsets = [0, 96], sizes = [1, 32], strides = [1, 1]} : vector<1x128xf32> to vector<1x32xf32>
    %328 = arith.mulf %325, %279 : vector<1x32xf32>
    %329 = arith.mulf %324, %326 : vector<1x32xf32>
    %330 = arith.addf %328, %329 : vector<1x32xf32>
    %331 = math.tanh %330 : vector<1x32xf32>
    %332 = arith.mulf %327, %331 : vector<1x32xf32>
    %cst_91 = arith.constant dense<0.000000e+00> : vector<1x128xf32>
    %333 = tpu.matmul %281, %95, %cst_91 {dimension_numbers = #tpu.dot_dimension_numbers<[1], [0], [0], [1], [0, 0, 1, 1], [], []>} : vector<1x32xf32>, vector<32x128xf32>, vector<1x128xf32> -> vector<1x128xf32>
    %334 = arith.addf %333, %107 : vector<1x128xf32>
    %cst_92 = arith.constant dense<0.000000e+00> : vector<1x128xf32>
    %335 = tpu.matmul %298, %101, %cst_92 {dimension_numbers = #tpu.dot_dimension_numbers<[1], [0], [0], [1], [0, 0, 1, 1], [], []>} : vector<1x32xf32>, vector<32x128xf32>, vector<1x128xf32> -> vector<1x128xf32>
    %336 = arith.addf %334, %335 : vector<1x128xf32>
    %337 = arith.mulf %336, %88 : vector<1x128xf32>
    %338 = math.tanh %337 : vector<1x128xf32>
    %339 = arith.mulf %338, %88 : vector<1x128xf32>
    %340 = arith.addf %339, %91 : vector<1x128xf32>
    %341 = vector.extract_strided_slice %340 {offsets = [0, 0], sizes = [1, 32], strides = [1, 1]} : vector<1x128xf32> to vector<1x32xf32>
    %342 = vector.extract_strided_slice %340 {offsets = [0, 32], sizes = [1, 32], strides = [1, 1]} : vector<1x128xf32> to vector<1x32xf32>
    %343 = vector.extract_strided_slice %340 {offsets = [0, 64], sizes = [1, 32], strides = [1, 1]} : vector<1x128xf32> to vector<1x32xf32>
    %344 = vector.extract_strided_slice %340 {offsets = [0, 96], sizes = [1, 32], strides = [1, 1]} : vector<1x128xf32> to vector<1x32xf32>
    %345 = arith.mulf %342, %296 : vector<1x32xf32>
    %346 = arith.mulf %341, %343 : vector<1x32xf32>
    %347 = arith.addf %345, %346 : vector<1x32xf32>
    %348 = math.tanh %347 : vector<1x32xf32>
    %349 = arith.mulf %344, %348 : vector<1x32xf32>
    %cst_93 = arith.constant dense<0.000000e+00> : vector<1x128xf32>
    %350 = tpu.matmul %298, %97, %cst_93 {dimension_numbers = #tpu.dot_dimension_numbers<[1], [0], [0], [1], [0, 0, 1, 1], [], []>} : vector<1x32xf32>, vector<32x128xf32>, vector<1x128xf32> -> vector<1x128xf32>
    %351 = arith.addf %350, %109 : vector<1x128xf32>
    %cst_94 = arith.constant dense<0.000000e+00> : vector<1x128xf32>
    %352 = tpu.matmul %315, %103, %cst_94 {dimension_numbers = #tpu.dot_dimension_numbers<[1], [0], [0], [1], [0, 0, 1, 1], [], []>} : vector<1x32xf32>, vector<32x128xf32>, vector<1x128xf32> -> vector<1x128xf32>
    %353 = arith.addf %351, %352 : vector<1x128xf32>
    %354 = arith.mulf %353, %88 : vector<1x128xf32>
    %355 = math.tanh %354 : vector<1x128xf32>
    %356 = arith.mulf %355, %88 : vector<1x128xf32>
    %357 = arith.addf %356, %91 : vector<1x128xf32>
    %358 = vector.extract_strided_slice %357 {offsets = [0, 0], sizes = [1, 32], strides = [1, 1]} : vector<1x128xf32> to vector<1x32xf32>
    %359 = vector.extract_strided_slice %357 {offsets = [0, 32], sizes = [1, 32], strides = [1, 1]} : vector<1x128xf32> to vector<1x32xf32>
    %360 = vector.extract_strided_slice %357 {offsets = [0, 64], sizes = [1, 32], strides = [1, 1]} : vector<1x128xf32> to vector<1x32xf32>
    %361 = vector.extract_strided_slice %357 {offsets = [0, 96], sizes = [1, 32], strides = [1, 1]} : vector<1x128xf32> to vector<1x32xf32>
    %362 = arith.mulf %359, %313 : vector<1x32xf32>
    %363 = arith.mulf %358, %360 : vector<1x32xf32>
    %364 = arith.addf %362, %363 : vector<1x32xf32>
    %365 = math.tanh %364 : vector<1x32xf32>
    %366 = arith.mulf %361, %365 : vector<1x32xf32>
    %367 = arith.maximumf %316, %366 : vector<1x32xf32>
    %368 = vector.extract_strided_slice %112 {offsets = [6, 0], sizes = [1, 128], strides = [1, 1]} : vector<16x128xf32> to vector<1x128xf32>
    %cst_95 = arith.constant dense<0.000000e+00> : vector<1x128xf32>
    %369 = tpu.matmul %332, %99, %cst_95 {dimension_numbers = #tpu.dot_dimension_numbers<[1], [0], [0], [1], [0, 0, 1, 1], [], []>} : vector<1x32xf32>, vector<32x128xf32>, vector<1x128xf32> -> vector<1x128xf32>
    %370 = arith.addf %368, %369 : vector<1x128xf32>
    %371 = arith.mulf %370, %88 : vector<1x128xf32>
    %372 = math.tanh %371 : vector<1x128xf32>
    %373 = arith.mulf %372, %88 : vector<1x128xf32>
    %374 = arith.addf %373, %91 : vector<1x128xf32>
    %375 = vector.extract_strided_slice %374 {offsets = [0, 0], sizes = [1, 32], strides = [1, 1]} : vector<1x128xf32> to vector<1x32xf32>
    %376 = vector.extract_strided_slice %374 {offsets = [0, 32], sizes = [1, 32], strides = [1, 1]} : vector<1x128xf32> to vector<1x32xf32>
    %377 = vector.extract_strided_slice %374 {offsets = [0, 64], sizes = [1, 32], strides = [1, 1]} : vector<1x128xf32> to vector<1x32xf32>
    %378 = vector.extract_strided_slice %374 {offsets = [0, 96], sizes = [1, 32], strides = [1, 1]} : vector<1x128xf32> to vector<1x32xf32>
    %379 = arith.mulf %376, %330 : vector<1x32xf32>
    %380 = arith.mulf %375, %377 : vector<1x32xf32>
    %381 = arith.addf %379, %380 : vector<1x32xf32>
    %382 = math.tanh %381 : vector<1x32xf32>
    %383 = arith.mulf %378, %382 : vector<1x32xf32>
    %cst_96 = arith.constant dense<0.000000e+00> : vector<1x128xf32>
    %384 = tpu.matmul %332, %95, %cst_96 {dimension_numbers = #tpu.dot_dimension_numbers<[1], [0], [0], [1], [0, 0, 1, 1], [], []>} : vector<1x32xf32>, vector<32x128xf32>, vector<1x128xf32> -> vector<1x128xf32>
    %385 = arith.addf %384, %107 : vector<1x128xf32>
    %cst_97 = arith.constant dense<0.000000e+00> : vector<1x128xf32>
    %386 = tpu.matmul %349, %101, %cst_97 {dimension_numbers = #tpu.dot_dimension_numbers<[1], [0], [0], [1], [0, 0, 1, 1], [], []>} : vector<1x32xf32>, vector<32x128xf32>, vector<1x128xf32> -> vector<1x128xf32>
    %387 = arith.addf %385, %386 : vector<1x128xf32>
    %388 = arith.mulf %387, %88 : vector<1x128xf32>
    %389 = math.tanh %388 : vector<1x128xf32>
    %390 = arith.mulf %389, %88 : vector<1x128xf32>
    %391 = arith.addf %390, %91 : vector<1x128xf32>
    %392 = vector.extract_strided_slice %391 {offsets = [0, 0], sizes = [1, 32], strides = [1, 1]} : vector<1x128xf32> to vector<1x32xf32>
    %393 = vector.extract_strided_slice %391 {offsets = [0, 32], sizes = [1, 32], strides = [1, 1]} : vector<1x128xf32> to vector<1x32xf32>
    %394 = vector.extract_strided_slice %391 {offsets = [0, 64], sizes = [1, 32], strides = [1, 1]} : vector<1x128xf32> to vector<1x32xf32>
    %395 = vector.extract_strided_slice %391 {offsets = [0, 96], sizes = [1, 32], strides = [1, 1]} : vector<1x128xf32> to vector<1x32xf32>
    %396 = arith.mulf %393, %347 : vector<1x32xf32>
    %397 = arith.mulf %392, %394 : vector<1x32xf32>
    %398 = arith.addf %396, %397 : vector<1x32xf32>
    %399 = math.tanh %398 : vector<1x32xf32>
    %400 = arith.mulf %395, %399 : vector<1x32xf32>
    %cst_98 = arith.constant dense<0.000000e+00> : vector<1x128xf32>
    %401 = tpu.matmul %349, %97, %cst_98 {dimension_numbers = #tpu.dot_dimension_numbers<[1], [0], [0], [1], [0, 0, 1, 1], [], []>} : vector<1x32xf32>, vector<32x128xf32>, vector<1x128xf32> -> vector<1x128xf32>
    %402 = arith.addf %401, %109 : vector<1x128xf32>
    %cst_99 = arith.constant dense<0.000000e+00> : vector<1x128xf32>
    %403 = tpu.matmul %366, %103, %cst_99 {dimension_numbers = #tpu.dot_dimension_numbers<[1], [0], [0], [1], [0, 0, 1, 1], [], []>} : vector<1x32xf32>, vector<32x128xf32>, vector<1x128xf32> -> vector<1x128xf32>
    %404 = arith.addf %402, %403 : vector<1x128xf32>
    %405 = arith.mulf %404, %88 : vector<1x128xf32>
    %406 = math.tanh %405 : vector<1x128xf32>
    %407 = arith.mulf %406, %88 : vector<1x128xf32>
    %408 = arith.addf %407, %91 : vector<1x128xf32>
    %409 = vector.extract_strided_slice %408 {offsets = [0, 0], sizes = [1, 32], strides = [1, 1]} : vector<1x128xf32> to vector<1x32xf32>
    %410 = vector.extract_strided_slice %408 {offsets = [0, 32], sizes = [1, 32], strides = [1, 1]} : vector<1x128xf32> to vector<1x32xf32>
    %411 = vector.extract_strided_slice %408 {offsets = [0, 64], sizes = [1, 32], strides = [1, 1]} : vector<1x128xf32> to vector<1x32xf32>
    %412 = vector.extract_strided_slice %408 {offsets = [0, 96], sizes = [1, 32], strides = [1, 1]} : vector<1x128xf32> to vector<1x32xf32>
    %413 = arith.mulf %410, %364 : vector<1x32xf32>
    %414 = arith.mulf %409, %411 : vector<1x32xf32>
    %415 = arith.addf %413, %414 : vector<1x32xf32>
    %416 = math.tanh %415 : vector<1x32xf32>
    %417 = arith.mulf %412, %416 : vector<1x32xf32>
    %418 = arith.maximumf %367, %417 : vector<1x32xf32>
    %419 = vector.extract_strided_slice %112 {offsets = [7, 0], sizes = [1, 128], strides = [1, 1]} : vector<16x128xf32> to vector<1x128xf32>
    %cst_100 = arith.constant dense<0.000000e+00> : vector<1x128xf32>
    %420 = tpu.matmul %383, %99, %cst_100 {dimension_numbers = #tpu.dot_dimension_numbers<[1], [0], [0], [1], [0, 0, 1, 1], [], []>} : vector<1x32xf32>, vector<32x128xf32>, vector<1x128xf32> -> vector<1x128xf32>
    %421 = arith.addf %419, %420 : vector<1x128xf32>
    %422 = arith.mulf %421, %88 : vector<1x128xf32>
    %423 = math.tanh %422 : vector<1x128xf32>
    %424 = arith.mulf %423, %88 : vector<1x128xf32>
    %425 = arith.addf %424, %91 : vector<1x128xf32>
    %426 = vector.extract_strided_slice %425 {offsets = [0, 0], sizes = [1, 32], strides = [1, 1]} : vector<1x128xf32> to vector<1x32xf32>
    %427 = vector.extract_strided_slice %425 {offsets = [0, 32], sizes = [1, 32], strides = [1, 1]} : vector<1x128xf32> to vector<1x32xf32>
    %428 = vector.extract_strided_slice %425 {offsets = [0, 64], sizes = [1, 32], strides = [1, 1]} : vector<1x128xf32> to vector<1x32xf32>
    %429 = vector.extract_strided_slice %425 {offsets = [0, 96], sizes = [1, 32], strides = [1, 1]} : vector<1x128xf32> to vector<1x32xf32>
    %430 = arith.mulf %427, %381 : vector<1x32xf32>
    %431 = arith.mulf %426, %428 : vector<1x32xf32>
    %432 = arith.addf %430, %431 : vector<1x32xf32>
    %433 = math.tanh %432 : vector<1x32xf32>
    %434 = arith.mulf %429, %433 : vector<1x32xf32>
    %cst_101 = arith.constant dense<0.000000e+00> : vector<1x128xf32>
    %435 = tpu.matmul %383, %95, %cst_101 {dimension_numbers = #tpu.dot_dimension_numbers<[1], [0], [0], [1], [0, 0, 1, 1], [], []>} : vector<1x32xf32>, vector<32x128xf32>, vector<1x128xf32> -> vector<1x128xf32>
    %436 = arith.addf %435, %107 : vector<1x128xf32>
    %cst_102 = arith.constant dense<0.000000e+00> : vector<1x128xf32>
    %437 = tpu.matmul %400, %101, %cst_102 {dimension_numbers = #tpu.dot_dimension_numbers<[1], [0], [0], [1], [0, 0, 1, 1], [], []>} : vector<1x32xf32>, vector<32x128xf32>, vector<1x128xf32> -> vector<1x128xf32>
    %438 = arith.addf %436, %437 : vector<1x128xf32>
    %439 = arith.mulf %438, %88 : vector<1x128xf32>
    %440 = math.tanh %439 : vector<1x128xf32>
    %441 = arith.mulf %440, %88 : vector<1x128xf32>
    %442 = arith.addf %441, %91 : vector<1x128xf32>
    %443 = vector.extract_strided_slice %442 {offsets = [0, 0], sizes = [1, 32], strides = [1, 1]} : vector<1x128xf32> to vector<1x32xf32>
    %444 = vector.extract_strided_slice %442 {offsets = [0, 32], sizes = [1, 32], strides = [1, 1]} : vector<1x128xf32> to vector<1x32xf32>
    %445 = vector.extract_strided_slice %442 {offsets = [0, 64], sizes = [1, 32], strides = [1, 1]} : vector<1x128xf32> to vector<1x32xf32>
    %446 = vector.extract_strided_slice %442 {offsets = [0, 96], sizes = [1, 32], strides = [1, 1]} : vector<1x128xf32> to vector<1x32xf32>
    %447 = arith.mulf %444, %398 : vector<1x32xf32>
    %448 = arith.mulf %443, %445 : vector<1x32xf32>
    %449 = arith.addf %447, %448 : vector<1x32xf32>
    %450 = math.tanh %449 : vector<1x32xf32>
    %451 = arith.mulf %446, %450 : vector<1x32xf32>
    %cst_103 = arith.constant dense<0.000000e+00> : vector<1x128xf32>
    %452 = tpu.matmul %400, %97, %cst_103 {dimension_numbers = #tpu.dot_dimension_numbers<[1], [0], [0], [1], [0, 0, 1, 1], [], []>} : vector<1x32xf32>, vector<32x128xf32>, vector<1x128xf32> -> vector<1x128xf32>
    %453 = arith.addf %452, %109 : vector<1x128xf32>
    %cst_104 = arith.constant dense<0.000000e+00> : vector<1x128xf32>
    %454 = tpu.matmul %417, %103, %cst_104 {dimension_numbers = #tpu.dot_dimension_numbers<[1], [0], [0], [1], [0, 0, 1, 1], [], []>} : vector<1x32xf32>, vector<32x128xf32>, vector<1x128xf32> -> vector<1x128xf32>
    %455 = arith.addf %453, %454 : vector<1x128xf32>
    %456 = arith.mulf %455, %88 : vector<1x128xf32>
    %457 = math.tanh %456 : vector<1x128xf32>
    %458 = arith.mulf %457, %88 : vector<1x128xf32>
    %459 = arith.addf %458, %91 : vector<1x128xf32>
    %460 = vector.extract_strided_slice %459 {offsets = [0, 0], sizes = [1, 32], strides = [1, 1]} : vector<1x128xf32> to vector<1x32xf32>
    %461 = vector.extract_strided_slice %459 {offsets = [0, 32], sizes = [1, 32], strides = [1, 1]} : vector<1x128xf32> to vector<1x32xf32>
    %462 = vector.extract_strided_slice %459 {offsets = [0, 64], sizes = [1, 32], strides = [1, 1]} : vector<1x128xf32> to vector<1x32xf32>
    %463 = vector.extract_strided_slice %459 {offsets = [0, 96], sizes = [1, 32], strides = [1, 1]} : vector<1x128xf32> to vector<1x32xf32>
    %464 = arith.mulf %461, %415 : vector<1x32xf32>
    %465 = arith.mulf %460, %462 : vector<1x32xf32>
    %466 = arith.addf %464, %465 : vector<1x32xf32>
    %467 = math.tanh %466 : vector<1x32xf32>
    %468 = arith.mulf %463, %467 : vector<1x32xf32>
    %469 = arith.maximumf %418, %468 : vector<1x32xf32>
    %470 = vector.extract_strided_slice %112 {offsets = [8, 0], sizes = [1, 128], strides = [1, 1]} : vector<16x128xf32> to vector<1x128xf32>
    %cst_105 = arith.constant dense<0.000000e+00> : vector<1x128xf32>
    %471 = tpu.matmul %434, %99, %cst_105 {dimension_numbers = #tpu.dot_dimension_numbers<[1], [0], [0], [1], [0, 0, 1, 1], [], []>} : vector<1x32xf32>, vector<32x128xf32>, vector<1x128xf32> -> vector<1x128xf32>
    %472 = arith.addf %470, %471 : vector<1x128xf32>
    %473 = arith.mulf %472, %88 : vector<1x128xf32>
    %474 = math.tanh %473 : vector<1x128xf32>
    %475 = arith.mulf %474, %88 : vector<1x128xf32>
    %476 = arith.addf %475, %91 : vector<1x128xf32>
    %477 = vector.extract_strided_slice %476 {offsets = [0, 0], sizes = [1, 32], strides = [1, 1]} : vector<1x128xf32> to vector<1x32xf32>
    %478 = vector.extract_strided_slice %476 {offsets = [0, 32], sizes = [1, 32], strides = [1, 1]} : vector<1x128xf32> to vector<1x32xf32>
    %479 = vector.extract_strided_slice %476 {offsets = [0, 64], sizes = [1, 32], strides = [1, 1]} : vector<1x128xf32> to vector<1x32xf32>
    %480 = vector.extract_strided_slice %476 {offsets = [0, 96], sizes = [1, 32], strides = [1, 1]} : vector<1x128xf32> to vector<1x32xf32>
    %481 = arith.mulf %478, %432 : vector<1x32xf32>
    %482 = arith.mulf %477, %479 : vector<1x32xf32>
    %483 = arith.addf %481, %482 : vector<1x32xf32>
    %484 = math.tanh %483 : vector<1x32xf32>
    %485 = arith.mulf %480, %484 : vector<1x32xf32>
    %cst_106 = arith.constant dense<0.000000e+00> : vector<1x128xf32>
    %486 = tpu.matmul %434, %95, %cst_106 {dimension_numbers = #tpu.dot_dimension_numbers<[1], [0], [0], [1], [0, 0, 1, 1], [], []>} : vector<1x32xf32>, vector<32x128xf32>, vector<1x128xf32> -> vector<1x128xf32>
    %487 = arith.addf %486, %107 : vector<1x128xf32>
    %cst_107 = arith.constant dense<0.000000e+00> : vector<1x128xf32>
    %488 = tpu.matmul %451, %101, %cst_107 {dimension_numbers = #tpu.dot_dimension_numbers<[1], [0], [0], [1], [0, 0, 1, 1], [], []>} : vector<1x32xf32>, vector<32x128xf32>, vector<1x128xf32> -> vector<1x128xf32>
    %489 = arith.addf %487, %488 : vector<1x128xf32>
    %490 = arith.mulf %489, %88 : vector<1x128xf32>
    %491 = math.tanh %490 : vector<1x128xf32>
    %492 = arith.mulf %491, %88 : vector<1x128xf32>
    %493 = arith.addf %492, %91 : vector<1x128xf32>
    %494 = vector.extract_strided_slice %493 {offsets = [0, 0], sizes = [1, 32], strides = [1, 1]} : vector<1x128xf32> to vector<1x32xf32>
    %495 = vector.extract_strided_slice %493 {offsets = [0, 32], sizes = [1, 32], strides = [1, 1]} : vector<1x128xf32> to vector<1x32xf32>
    %496 = vector.extract_strided_slice %493 {offsets = [0, 64], sizes = [1, 32], strides = [1, 1]} : vector<1x128xf32> to vector<1x32xf32>
    %497 = vector.extract_strided_slice %493 {offsets = [0, 96], sizes = [1, 32], strides = [1, 1]} : vector<1x128xf32> to vector<1x32xf32>
    %498 = arith.mulf %495, %449 : vector<1x32xf32>
    %499 = arith.mulf %494, %496 : vector<1x32xf32>
    %500 = arith.addf %498, %499 : vector<1x32xf32>
    %501 = math.tanh %500 : vector<1x32xf32>
    %502 = arith.mulf %497, %501 : vector<1x32xf32>
    %cst_108 = arith.constant dense<0.000000e+00> : vector<1x128xf32>
    %503 = tpu.matmul %451, %97, %cst_108 {dimension_numbers = #tpu.dot_dimension_numbers<[1], [0], [0], [1], [0, 0, 1, 1], [], []>} : vector<1x32xf32>, vector<32x128xf32>, vector<1x128xf32> -> vector<1x128xf32>
    %504 = arith.addf %503, %109 : vector<1x128xf32>
    %cst_109 = arith.constant dense<0.000000e+00> : vector<1x128xf32>
    %505 = tpu.matmul %468, %103, %cst_109 {dimension_numbers = #tpu.dot_dimension_numbers<[1], [0], [0], [1], [0, 0, 1, 1], [], []>} : vector<1x32xf32>, vector<32x128xf32>, vector<1x128xf32> -> vector<1x128xf32>
    %506 = arith.addf %504, %505 : vector<1x128xf32>
    %507 = arith.mulf %506, %88 : vector<1x128xf32>
    %508 = math.tanh %507 : vector<1x128xf32>
    %509 = arith.mulf %508, %88 : vector<1x128xf32>
    %510 = arith.addf %509, %91 : vector<1x128xf32>
    %511 = vector.extract_strided_slice %510 {offsets = [0, 0], sizes = [1, 32], strides = [1, 1]} : vector<1x128xf32> to vector<1x32xf32>
    %512 = vector.extract_strided_slice %510 {offsets = [0, 32], sizes = [1, 32], strides = [1, 1]} : vector<1x128xf32> to vector<1x32xf32>
    %513 = vector.extract_strided_slice %510 {offsets = [0, 64], sizes = [1, 32], strides = [1, 1]} : vector<1x128xf32> to vector<1x32xf32>
    %514 = vector.extract_strided_slice %510 {offsets = [0, 96], sizes = [1, 32], strides = [1, 1]} : vector<1x128xf32> to vector<1x32xf32>
    %515 = arith.mulf %512, %466 : vector<1x32xf32>
    %516 = arith.mulf %511, %513 : vector<1x32xf32>
    %517 = arith.addf %515, %516 : vector<1x32xf32>
    %518 = math.tanh %517 : vector<1x32xf32>
    %519 = arith.mulf %514, %518 : vector<1x32xf32>
    %520 = arith.maximumf %469, %519 : vector<1x32xf32>
    %521 = vector.extract_strided_slice %112 {offsets = [9, 0], sizes = [1, 128], strides = [1, 1]} : vector<16x128xf32> to vector<1x128xf32>
    %cst_110 = arith.constant dense<0.000000e+00> : vector<1x128xf32>
    %522 = tpu.matmul %485, %99, %cst_110 {dimension_numbers = #tpu.dot_dimension_numbers<[1], [0], [0], [1], [0, 0, 1, 1], [], []>} : vector<1x32xf32>, vector<32x128xf32>, vector<1x128xf32> -> vector<1x128xf32>
    %523 = arith.addf %521, %522 : vector<1x128xf32>
    %524 = arith.mulf %523, %88 : vector<1x128xf32>
    %525 = math.tanh %524 : vector<1x128xf32>
    %526 = arith.mulf %525, %88 : vector<1x128xf32>
    %527 = arith.addf %526, %91 : vector<1x128xf32>
    %528 = vector.extract_strided_slice %527 {offsets = [0, 0], sizes = [1, 32], strides = [1, 1]} : vector<1x128xf32> to vector<1x32xf32>
    %529 = vector.extract_strided_slice %527 {offsets = [0, 32], sizes = [1, 32], strides = [1, 1]} : vector<1x128xf32> to vector<1x32xf32>
    %530 = vector.extract_strided_slice %527 {offsets = [0, 64], sizes = [1, 32], strides = [1, 1]} : vector<1x128xf32> to vector<1x32xf32>
    %531 = vector.extract_strided_slice %527 {offsets = [0, 96], sizes = [1, 32], strides = [1, 1]} : vector<1x128xf32> to vector<1x32xf32>
    %532 = arith.mulf %529, %483 : vector<1x32xf32>
    %533 = arith.mulf %528, %530 : vector<1x32xf32>
    %534 = arith.addf %532, %533 : vector<1x32xf32>
    %535 = math.tanh %534 : vector<1x32xf32>
    %536 = arith.mulf %531, %535 : vector<1x32xf32>
    %cst_111 = arith.constant dense<0.000000e+00> : vector<1x128xf32>
    %537 = tpu.matmul %485, %95, %cst_111 {dimension_numbers = #tpu.dot_dimension_numbers<[1], [0], [0], [1], [0, 0, 1, 1], [], []>} : vector<1x32xf32>, vector<32x128xf32>, vector<1x128xf32> -> vector<1x128xf32>
    %538 = arith.addf %537, %107 : vector<1x128xf32>
    %cst_112 = arith.constant dense<0.000000e+00> : vector<1x128xf32>
    %539 = tpu.matmul %502, %101, %cst_112 {dimension_numbers = #tpu.dot_dimension_numbers<[1], [0], [0], [1], [0, 0, 1, 1], [], []>} : vector<1x32xf32>, vector<32x128xf32>, vector<1x128xf32> -> vector<1x128xf32>
    %540 = arith.addf %538, %539 : vector<1x128xf32>
    %541 = arith.mulf %540, %88 : vector<1x128xf32>
    %542 = math.tanh %541 : vector<1x128xf32>
    %543 = arith.mulf %542, %88 : vector<1x128xf32>
    %544 = arith.addf %543, %91 : vector<1x128xf32>
    %545 = vector.extract_strided_slice %544 {offsets = [0, 0], sizes = [1, 32], strides = [1, 1]} : vector<1x128xf32> to vector<1x32xf32>
    %546 = vector.extract_strided_slice %544 {offsets = [0, 32], sizes = [1, 32], strides = [1, 1]} : vector<1x128xf32> to vector<1x32xf32>
    %547 = vector.extract_strided_slice %544 {offsets = [0, 64], sizes = [1, 32], strides = [1, 1]} : vector<1x128xf32> to vector<1x32xf32>
    %548 = vector.extract_strided_slice %544 {offsets = [0, 96], sizes = [1, 32], strides = [1, 1]} : vector<1x128xf32> to vector<1x32xf32>
    %549 = arith.mulf %546, %500 : vector<1x32xf32>
    %550 = arith.mulf %545, %547 : vector<1x32xf32>
    %551 = arith.addf %549, %550 : vector<1x32xf32>
    %552 = math.tanh %551 : vector<1x32xf32>
    %553 = arith.mulf %548, %552 : vector<1x32xf32>
    %cst_113 = arith.constant dense<0.000000e+00> : vector<1x128xf32>
    %554 = tpu.matmul %502, %97, %cst_113 {dimension_numbers = #tpu.dot_dimension_numbers<[1], [0], [0], [1], [0, 0, 1, 1], [], []>} : vector<1x32xf32>, vector<32x128xf32>, vector<1x128xf32> -> vector<1x128xf32>
    %555 = arith.addf %554, %109 : vector<1x128xf32>
    %cst_114 = arith.constant dense<0.000000e+00> : vector<1x128xf32>
    %556 = tpu.matmul %519, %103, %cst_114 {dimension_numbers = #tpu.dot_dimension_numbers<[1], [0], [0], [1], [0, 0, 1, 1], [], []>} : vector<1x32xf32>, vector<32x128xf32>, vector<1x128xf32> -> vector<1x128xf32>
    %557 = arith.addf %555, %556 : vector<1x128xf32>
    %558 = arith.mulf %557, %88 : vector<1x128xf32>
    %559 = math.tanh %558 : vector<1x128xf32>
    %560 = arith.mulf %559, %88 : vector<1x128xf32>
    %561 = arith.addf %560, %91 : vector<1x128xf32>
    %562 = vector.extract_strided_slice %561 {offsets = [0, 0], sizes = [1, 32], strides = [1, 1]} : vector<1x128xf32> to vector<1x32xf32>
    %563 = vector.extract_strided_slice %561 {offsets = [0, 32], sizes = [1, 32], strides = [1, 1]} : vector<1x128xf32> to vector<1x32xf32>
    %564 = vector.extract_strided_slice %561 {offsets = [0, 64], sizes = [1, 32], strides = [1, 1]} : vector<1x128xf32> to vector<1x32xf32>
    %565 = vector.extract_strided_slice %561 {offsets = [0, 96], sizes = [1, 32], strides = [1, 1]} : vector<1x128xf32> to vector<1x32xf32>
    %566 = arith.mulf %563, %517 : vector<1x32xf32>
    %567 = arith.mulf %562, %564 : vector<1x32xf32>
    %568 = arith.addf %566, %567 : vector<1x32xf32>
    %569 = math.tanh %568 : vector<1x32xf32>
    %570 = arith.mulf %565, %569 : vector<1x32xf32>
    %571 = arith.maximumf %520, %570 : vector<1x32xf32>
    %572 = vector.extract_strided_slice %112 {offsets = [10, 0], sizes = [1, 128], strides = [1, 1]} : vector<16x128xf32> to vector<1x128xf32>
    %cst_115 = arith.constant dense<0.000000e+00> : vector<1x128xf32>
    %573 = tpu.matmul %536, %99, %cst_115 {dimension_numbers = #tpu.dot_dimension_numbers<[1], [0], [0], [1], [0, 0, 1, 1], [], []>} : vector<1x32xf32>, vector<32x128xf32>, vector<1x128xf32> -> vector<1x128xf32>
    %574 = arith.addf %572, %573 : vector<1x128xf32>
    %575 = arith.mulf %574, %88 : vector<1x128xf32>
    %576 = math.tanh %575 : vector<1x128xf32>
    %577 = arith.mulf %576, %88 : vector<1x128xf32>
    %578 = arith.addf %577, %91 : vector<1x128xf32>
    %579 = vector.extract_strided_slice %578 {offsets = [0, 0], sizes = [1, 32], strides = [1, 1]} : vector<1x128xf32> to vector<1x32xf32>
    %580 = vector.extract_strided_slice %578 {offsets = [0, 32], sizes = [1, 32], strides = [1, 1]} : vector<1x128xf32> to vector<1x32xf32>
    %581 = vector.extract_strided_slice %578 {offsets = [0, 64], sizes = [1, 32], strides = [1, 1]} : vector<1x128xf32> to vector<1x32xf32>
    %582 = vector.extract_strided_slice %578 {offsets = [0, 96], sizes = [1, 32], strides = [1, 1]} : vector<1x128xf32> to vector<1x32xf32>
    %583 = arith.mulf %580, %534 : vector<1x32xf32>
    %584 = arith.mulf %579, %581 : vector<1x32xf32>
    %585 = arith.addf %583, %584 : vector<1x32xf32>
    %586 = math.tanh %585 : vector<1x32xf32>
    %587 = arith.mulf %582, %586 : vector<1x32xf32>
    %cst_116 = arith.constant dense<0.000000e+00> : vector<1x128xf32>
    %588 = tpu.matmul %536, %95, %cst_116 {dimension_numbers = #tpu.dot_dimension_numbers<[1], [0], [0], [1], [0, 0, 1, 1], [], []>} : vector<1x32xf32>, vector<32x128xf32>, vector<1x128xf32> -> vector<1x128xf32>
    %589 = arith.addf %588, %107 : vector<1x128xf32>
    %cst_117 = arith.constant dense<0.000000e+00> : vector<1x128xf32>
    %590 = tpu.matmul %553, %101, %cst_117 {dimension_numbers = #tpu.dot_dimension_numbers<[1], [0], [0], [1], [0, 0, 1, 1], [], []>} : vector<1x32xf32>, vector<32x128xf32>, vector<1x128xf32> -> vector<1x128xf32>
    %591 = arith.addf %589, %590 : vector<1x128xf32>
    %592 = arith.mulf %591, %88 : vector<1x128xf32>
    %593 = math.tanh %592 : vector<1x128xf32>
    %594 = arith.mulf %593, %88 : vector<1x128xf32>
    %595 = arith.addf %594, %91 : vector<1x128xf32>
    %596 = vector.extract_strided_slice %595 {offsets = [0, 0], sizes = [1, 32], strides = [1, 1]} : vector<1x128xf32> to vector<1x32xf32>
    %597 = vector.extract_strided_slice %595 {offsets = [0, 32], sizes = [1, 32], strides = [1, 1]} : vector<1x128xf32> to vector<1x32xf32>
    %598 = vector.extract_strided_slice %595 {offsets = [0, 64], sizes = [1, 32], strides = [1, 1]} : vector<1x128xf32> to vector<1x32xf32>
    %599 = vector.extract_strided_slice %595 {offsets = [0, 96], sizes = [1, 32], strides = [1, 1]} : vector<1x128xf32> to vector<1x32xf32>
    %600 = arith.mulf %597, %551 : vector<1x32xf32>
    %601 = arith.mulf %596, %598 : vector<1x32xf32>
    %602 = arith.addf %600, %601 : vector<1x32xf32>
    %603 = math.tanh %602 : vector<1x32xf32>
    %604 = arith.mulf %599, %603 : vector<1x32xf32>
    %cst_118 = arith.constant dense<0.000000e+00> : vector<1x128xf32>
    %605 = tpu.matmul %553, %97, %cst_118 {dimension_numbers = #tpu.dot_dimension_numbers<[1], [0], [0], [1], [0, 0, 1, 1], [], []>} : vector<1x32xf32>, vector<32x128xf32>, vector<1x128xf32> -> vector<1x128xf32>
    %606 = arith.addf %605, %109 : vector<1x128xf32>
    %cst_119 = arith.constant dense<0.000000e+00> : vector<1x128xf32>
    %607 = tpu.matmul %570, %103, %cst_119 {dimension_numbers = #tpu.dot_dimension_numbers<[1], [0], [0], [1], [0, 0, 1, 1], [], []>} : vector<1x32xf32>, vector<32x128xf32>, vector<1x128xf32> -> vector<1x128xf32>
    %608 = arith.addf %606, %607 : vector<1x128xf32>
    %609 = arith.mulf %608, %88 : vector<1x128xf32>
    %610 = math.tanh %609 : vector<1x128xf32>
    %611 = arith.mulf %610, %88 : vector<1x128xf32>
    %612 = arith.addf %611, %91 : vector<1x128xf32>
    %613 = vector.extract_strided_slice %612 {offsets = [0, 0], sizes = [1, 32], strides = [1, 1]} : vector<1x128xf32> to vector<1x32xf32>
    %614 = vector.extract_strided_slice %612 {offsets = [0, 32], sizes = [1, 32], strides = [1, 1]} : vector<1x128xf32> to vector<1x32xf32>
    %615 = vector.extract_strided_slice %612 {offsets = [0, 64], sizes = [1, 32], strides = [1, 1]} : vector<1x128xf32> to vector<1x32xf32>
    %616 = vector.extract_strided_slice %612 {offsets = [0, 96], sizes = [1, 32], strides = [1, 1]} : vector<1x128xf32> to vector<1x32xf32>
    %617 = arith.mulf %614, %568 : vector<1x32xf32>
    %618 = arith.mulf %613, %615 : vector<1x32xf32>
    %619 = arith.addf %617, %618 : vector<1x32xf32>
    %620 = math.tanh %619 : vector<1x32xf32>
    %621 = arith.mulf %616, %620 : vector<1x32xf32>
    %622 = arith.maximumf %571, %621 : vector<1x32xf32>
    %623 = vector.extract_strided_slice %112 {offsets = [11, 0], sizes = [1, 128], strides = [1, 1]} : vector<16x128xf32> to vector<1x128xf32>
    %cst_120 = arith.constant dense<0.000000e+00> : vector<1x128xf32>
    %624 = tpu.matmul %587, %99, %cst_120 {dimension_numbers = #tpu.dot_dimension_numbers<[1], [0], [0], [1], [0, 0, 1, 1], [], []>} : vector<1x32xf32>, vector<32x128xf32>, vector<1x128xf32> -> vector<1x128xf32>
    %625 = arith.addf %623, %624 : vector<1x128xf32>
    %626 = arith.mulf %625, %88 : vector<1x128xf32>
    %627 = math.tanh %626 : vector<1x128xf32>
    %628 = arith.mulf %627, %88 : vector<1x128xf32>
    %629 = arith.addf %628, %91 : vector<1x128xf32>
    %630 = vector.extract_strided_slice %629 {offsets = [0, 0], sizes = [1, 32], strides = [1, 1]} : vector<1x128xf32> to vector<1x32xf32>
    %631 = vector.extract_strided_slice %629 {offsets = [0, 32], sizes = [1, 32], strides = [1, 1]} : vector<1x128xf32> to vector<1x32xf32>
    %632 = vector.extract_strided_slice %629 {offsets = [0, 64], sizes = [1, 32], strides = [1, 1]} : vector<1x128xf32> to vector<1x32xf32>
    %633 = vector.extract_strided_slice %629 {offsets = [0, 96], sizes = [1, 32], strides = [1, 1]} : vector<1x128xf32> to vector<1x32xf32>
    %634 = arith.mulf %631, %585 : vector<1x32xf32>
    %635 = arith.mulf %630, %632 : vector<1x32xf32>
    %636 = arith.addf %634, %635 : vector<1x32xf32>
    %637 = math.tanh %636 : vector<1x32xf32>
    %638 = arith.mulf %633, %637 : vector<1x32xf32>
    %cst_121 = arith.constant dense<0.000000e+00> : vector<1x128xf32>
    %639 = tpu.matmul %587, %95, %cst_121 {dimension_numbers = #tpu.dot_dimension_numbers<[1], [0], [0], [1], [0, 0, 1, 1], [], []>} : vector<1x32xf32>, vector<32x128xf32>, vector<1x128xf32> -> vector<1x128xf32>
    %640 = arith.addf %639, %107 : vector<1x128xf32>
    %cst_122 = arith.constant dense<0.000000e+00> : vector<1x128xf32>
    %641 = tpu.matmul %604, %101, %cst_122 {dimension_numbers = #tpu.dot_dimension_numbers<[1], [0], [0], [1], [0, 0, 1, 1], [], []>} : vector<1x32xf32>, vector<32x128xf32>, vector<1x128xf32> -> vector<1x128xf32>
    %642 = arith.addf %640, %641 : vector<1x128xf32>
    %643 = arith.mulf %642, %88 : vector<1x128xf32>
    %644 = math.tanh %643 : vector<1x128xf32>
    %645 = arith.mulf %644, %88 : vector<1x128xf32>
    %646 = arith.addf %645, %91 : vector<1x128xf32>
    %647 = vector.extract_strided_slice %646 {offsets = [0, 0], sizes = [1, 32], strides = [1, 1]} : vector<1x128xf32> to vector<1x32xf32>
    %648 = vector.extract_strided_slice %646 {offsets = [0, 32], sizes = [1, 32], strides = [1, 1]} : vector<1x128xf32> to vector<1x32xf32>
    %649 = vector.extract_strided_slice %646 {offsets = [0, 64], sizes = [1, 32], strides = [1, 1]} : vector<1x128xf32> to vector<1x32xf32>
    %650 = vector.extract_strided_slice %646 {offsets = [0, 96], sizes = [1, 32], strides = [1, 1]} : vector<1x128xf32> to vector<1x32xf32>
    %651 = arith.mulf %648, %602 : vector<1x32xf32>
    %652 = arith.mulf %647, %649 : vector<1x32xf32>
    %653 = arith.addf %651, %652 : vector<1x32xf32>
    %654 = math.tanh %653 : vector<1x32xf32>
    %655 = arith.mulf %650, %654 : vector<1x32xf32>
    %cst_123 = arith.constant dense<0.000000e+00> : vector<1x128xf32>
    %656 = tpu.matmul %604, %97, %cst_123 {dimension_numbers = #tpu.dot_dimension_numbers<[1], [0], [0], [1], [0, 0, 1, 1], [], []>} : vector<1x32xf32>, vector<32x128xf32>, vector<1x128xf32> -> vector<1x128xf32>
    %657 = arith.addf %656, %109 : vector<1x128xf32>
    %cst_124 = arith.constant dense<0.000000e+00> : vector<1x128xf32>
    %658 = tpu.matmul %621, %103, %cst_124 {dimension_numbers = #tpu.dot_dimension_numbers<[1], [0], [0], [1], [0, 0, 1, 1], [], []>} : vector<1x32xf32>, vector<32x128xf32>, vector<1x128xf32> -> vector<1x128xf32>
    %659 = arith.addf %657, %658 : vector<1x128xf32>
    %660 = arith.mulf %659, %88 : vector<1x128xf32>
    %661 = math.tanh %660 : vector<1x128xf32>
    %662 = arith.mulf %661, %88 : vector<1x128xf32>
    %663 = arith.addf %662, %91 : vector<1x128xf32>
    %664 = vector.extract_strided_slice %663 {offsets = [0, 0], sizes = [1, 32], strides = [1, 1]} : vector<1x128xf32> to vector<1x32xf32>
    %665 = vector.extract_strided_slice %663 {offsets = [0, 32], sizes = [1, 32], strides = [1, 1]} : vector<1x128xf32> to vector<1x32xf32>
    %666 = vector.extract_strided_slice %663 {offsets = [0, 64], sizes = [1, 32], strides = [1, 1]} : vector<1x128xf32> to vector<1x32xf32>
    %667 = vector.extract_strided_slice %663 {offsets = [0, 96], sizes = [1, 32], strides = [1, 1]} : vector<1x128xf32> to vector<1x32xf32>
    %668 = arith.mulf %665, %619 : vector<1x32xf32>
    %669 = arith.mulf %664, %666 : vector<1x32xf32>
    %670 = arith.addf %668, %669 : vector<1x32xf32>
    %671 = math.tanh %670 : vector<1x32xf32>
    %672 = arith.mulf %667, %671 : vector<1x32xf32>
    %673 = arith.maximumf %622, %672 : vector<1x32xf32>
    %674 = vector.extract_strided_slice %112 {offsets = [12, 0], sizes = [1, 128], strides = [1, 1]} : vector<16x128xf32> to vector<1x128xf32>
    %cst_125 = arith.constant dense<0.000000e+00> : vector<1x128xf32>
    %675 = tpu.matmul %638, %99, %cst_125 {dimension_numbers = #tpu.dot_dimension_numbers<[1], [0], [0], [1], [0, 0, 1, 1], [], []>} : vector<1x32xf32>, vector<32x128xf32>, vector<1x128xf32> -> vector<1x128xf32>
    %676 = arith.addf %674, %675 : vector<1x128xf32>
    %677 = arith.mulf %676, %88 : vector<1x128xf32>
    %678 = math.tanh %677 : vector<1x128xf32>
    %679 = arith.mulf %678, %88 : vector<1x128xf32>
    %680 = arith.addf %679, %91 : vector<1x128xf32>
    %681 = vector.extract_strided_slice %680 {offsets = [0, 0], sizes = [1, 32], strides = [1, 1]} : vector<1x128xf32> to vector<1x32xf32>
    %682 = vector.extract_strided_slice %680 {offsets = [0, 32], sizes = [1, 32], strides = [1, 1]} : vector<1x128xf32> to vector<1x32xf32>
    %683 = vector.extract_strided_slice %680 {offsets = [0, 64], sizes = [1, 32], strides = [1, 1]} : vector<1x128xf32> to vector<1x32xf32>
    %684 = vector.extract_strided_slice %680 {offsets = [0, 96], sizes = [1, 32], strides = [1, 1]} : vector<1x128xf32> to vector<1x32xf32>
    %685 = arith.mulf %682, %636 : vector<1x32xf32>
    %686 = arith.mulf %681, %683 : vector<1x32xf32>
    %687 = arith.addf %685, %686 : vector<1x32xf32>
    %688 = math.tanh %687 : vector<1x32xf32>
    %689 = arith.mulf %684, %688 : vector<1x32xf32>
    %cst_126 = arith.constant dense<0.000000e+00> : vector<1x128xf32>
    %690 = tpu.matmul %638, %95, %cst_126 {dimension_numbers = #tpu.dot_dimension_numbers<[1], [0], [0], [1], [0, 0, 1, 1], [], []>} : vector<1x32xf32>, vector<32x128xf32>, vector<1x128xf32> -> vector<1x128xf32>
    %691 = arith.addf %690, %107 : vector<1x128xf32>
    %cst_127 = arith.constant dense<0.000000e+00> : vector<1x128xf32>
    %692 = tpu.matmul %655, %101, %cst_127 {dimension_numbers = #tpu.dot_dimension_numbers<[1], [0], [0], [1], [0, 0, 1, 1], [], []>} : vector<1x32xf32>, vector<32x128xf32>, vector<1x128xf32> -> vector<1x128xf32>
    %693 = arith.addf %691, %692 : vector<1x128xf32>
    %694 = arith.mulf %693, %88 : vector<1x128xf32>
    %695 = math.tanh %694 : vector<1x128xf32>
    %696 = arith.mulf %695, %88 : vector<1x128xf32>
    %697 = arith.addf %696, %91 : vector<1x128xf32>
    %698 = vector.extract_strided_slice %697 {offsets = [0, 0], sizes = [1, 32], strides = [1, 1]} : vector<1x128xf32> to vector<1x32xf32>
    %699 = vector.extract_strided_slice %697 {offsets = [0, 32], sizes = [1, 32], strides = [1, 1]} : vector<1x128xf32> to vector<1x32xf32>
    %700 = vector.extract_strided_slice %697 {offsets = [0, 64], sizes = [1, 32], strides = [1, 1]} : vector<1x128xf32> to vector<1x32xf32>
    %701 = vector.extract_strided_slice %697 {offsets = [0, 96], sizes = [1, 32], strides = [1, 1]} : vector<1x128xf32> to vector<1x32xf32>
    %702 = arith.mulf %699, %653 : vector<1x32xf32>
    %703 = arith.mulf %698, %700 : vector<1x32xf32>
    %704 = arith.addf %702, %703 : vector<1x32xf32>
    %705 = math.tanh %704 : vector<1x32xf32>
    %706 = arith.mulf %701, %705 : vector<1x32xf32>
    %cst_128 = arith.constant dense<0.000000e+00> : vector<1x128xf32>
    %707 = tpu.matmul %655, %97, %cst_128 {dimension_numbers = #tpu.dot_dimension_numbers<[1], [0], [0], [1], [0, 0, 1, 1], [], []>} : vector<1x32xf32>, vector<32x128xf32>, vector<1x128xf32> -> vector<1x128xf32>
    %708 = arith.addf %707, %109 : vector<1x128xf32>
    %cst_129 = arith.constant dense<0.000000e+00> : vector<1x128xf32>
    %709 = tpu.matmul %672, %103, %cst_129 {dimension_numbers = #tpu.dot_dimension_numbers<[1], [0], [0], [1], [0, 0, 1, 1], [], []>} : vector<1x32xf32>, vector<32x128xf32>, vector<1x128xf32> -> vector<1x128xf32>
    %710 = arith.addf %708, %709 : vector<1x128xf32>
    %711 = arith.mulf %710, %88 : vector<1x128xf32>
    %712 = math.tanh %711 : vector<1x128xf32>
    %713 = arith.mulf %712, %88 : vector<1x128xf32>
    %714 = arith.addf %713, %91 : vector<1x128xf32>
    %715 = vector.extract_strided_slice %714 {offsets = [0, 0], sizes = [1, 32], strides = [1, 1]} : vector<1x128xf32> to vector<1x32xf32>
    %716 = vector.extract_strided_slice %714 {offsets = [0, 32], sizes = [1, 32], strides = [1, 1]} : vector<1x128xf32> to vector<1x32xf32>
    %717 = vector.extract_strided_slice %714 {offsets = [0, 64], sizes = [1, 32], strides = [1, 1]} : vector<1x128xf32> to vector<1x32xf32>
    %718 = vector.extract_strided_slice %714 {offsets = [0, 96], sizes = [1, 32], strides = [1, 1]} : vector<1x128xf32> to vector<1x32xf32>
    %719 = arith.mulf %716, %670 : vector<1x32xf32>
    %720 = arith.mulf %715, %717 : vector<1x32xf32>
    %721 = arith.addf %719, %720 : vector<1x32xf32>
    %722 = math.tanh %721 : vector<1x32xf32>
    %723 = arith.mulf %718, %722 : vector<1x32xf32>
    %724 = arith.maximumf %673, %723 : vector<1x32xf32>
    %725 = vector.extract_strided_slice %112 {offsets = [13, 0], sizes = [1, 128], strides = [1, 1]} : vector<16x128xf32> to vector<1x128xf32>
    %cst_130 = arith.constant dense<0.000000e+00> : vector<1x128xf32>
    %726 = tpu.matmul %689, %99, %cst_130 {dimension_numbers = #tpu.dot_dimension_numbers<[1], [0], [0], [1], [0, 0, 1, 1], [], []>} : vector<1x32xf32>, vector<32x128xf32>, vector<1x128xf32> -> vector<1x128xf32>
    %727 = arith.addf %725, %726 : vector<1x128xf32>
    %728 = arith.mulf %727, %88 : vector<1x128xf32>
    %729 = math.tanh %728 : vector<1x128xf32>
    %730 = arith.mulf %729, %88 : vector<1x128xf32>
    %731 = arith.addf %730, %91 : vector<1x128xf32>
    %732 = vector.extract_strided_slice %731 {offsets = [0, 0], sizes = [1, 32], strides = [1, 1]} : vector<1x128xf32> to vector<1x32xf32>
    %733 = vector.extract_strided_slice %731 {offsets = [0, 32], sizes = [1, 32], strides = [1, 1]} : vector<1x128xf32> to vector<1x32xf32>
    %734 = vector.extract_strided_slice %731 {offsets = [0, 64], sizes = [1, 32], strides = [1, 1]} : vector<1x128xf32> to vector<1x32xf32>
    %735 = vector.extract_strided_slice %731 {offsets = [0, 96], sizes = [1, 32], strides = [1, 1]} : vector<1x128xf32> to vector<1x32xf32>
    %736 = arith.mulf %733, %687 : vector<1x32xf32>
    %737 = arith.mulf %732, %734 : vector<1x32xf32>
    %738 = arith.addf %736, %737 : vector<1x32xf32>
    %739 = math.tanh %738 : vector<1x32xf32>
    %740 = arith.mulf %735, %739 : vector<1x32xf32>
    %cst_131 = arith.constant dense<0.000000e+00> : vector<1x128xf32>
    %741 = tpu.matmul %689, %95, %cst_131 {dimension_numbers = #tpu.dot_dimension_numbers<[1], [0], [0], [1], [0, 0, 1, 1], [], []>} : vector<1x32xf32>, vector<32x128xf32>, vector<1x128xf32> -> vector<1x128xf32>
    %742 = arith.addf %741, %107 : vector<1x128xf32>
    %cst_132 = arith.constant dense<0.000000e+00> : vector<1x128xf32>
    %743 = tpu.matmul %706, %101, %cst_132 {dimension_numbers = #tpu.dot_dimension_numbers<[1], [0], [0], [1], [0, 0, 1, 1], [], []>} : vector<1x32xf32>, vector<32x128xf32>, vector<1x128xf32> -> vector<1x128xf32>
    %744 = arith.addf %742, %743 : vector<1x128xf32>
    %745 = arith.mulf %744, %88 : vector<1x128xf32>
    %746 = math.tanh %745 : vector<1x128xf32>
    %747 = arith.mulf %746, %88 : vector<1x128xf32>
    %748 = arith.addf %747, %91 : vector<1x128xf32>
    %749 = vector.extract_strided_slice %748 {offsets = [0, 0], sizes = [1, 32], strides = [1, 1]} : vector<1x128xf32> to vector<1x32xf32>
    %750 = vector.extract_strided_slice %748 {offsets = [0, 32], sizes = [1, 32], strides = [1, 1]} : vector<1x128xf32> to vector<1x32xf32>
    %751 = vector.extract_strided_slice %748 {offsets = [0, 64], sizes = [1, 32], strides = [1, 1]} : vector<1x128xf32> to vector<1x32xf32>
    %752 = vector.extract_strided_slice %748 {offsets = [0, 96], sizes = [1, 32], strides = [1, 1]} : vector<1x128xf32> to vector<1x32xf32>
    %753 = arith.mulf %750, %704 : vector<1x32xf32>
    %754 = arith.mulf %749, %751 : vector<1x32xf32>
    %755 = arith.addf %753, %754 : vector<1x32xf32>
    %756 = math.tanh %755 : vector<1x32xf32>
    %757 = arith.mulf %752, %756 : vector<1x32xf32>
    %cst_133 = arith.constant dense<0.000000e+00> : vector<1x128xf32>
    %758 = tpu.matmul %706, %97, %cst_133 {dimension_numbers = #tpu.dot_dimension_numbers<[1], [0], [0], [1], [0, 0, 1, 1], [], []>} : vector<1x32xf32>, vector<32x128xf32>, vector<1x128xf32> -> vector<1x128xf32>
    %759 = arith.addf %758, %109 : vector<1x128xf32>
    %cst_134 = arith.constant dense<0.000000e+00> : vector<1x128xf32>
    %760 = tpu.matmul %723, %103, %cst_134 {dimension_numbers = #tpu.dot_dimension_numbers<[1], [0], [0], [1], [0, 0, 1, 1], [], []>} : vector<1x32xf32>, vector<32x128xf32>, vector<1x128xf32> -> vector<1x128xf32>
    %761 = arith.addf %759, %760 : vector<1x128xf32>
    %762 = arith.mulf %761, %88 : vector<1x128xf32>
    %763 = math.tanh %762 : vector<1x128xf32>
    %764 = arith.mulf %763, %88 : vector<1x128xf32>
    %765 = arith.addf %764, %91 : vector<1x128xf32>
    %766 = vector.extract_strided_slice %765 {offsets = [0, 0], sizes = [1, 32], strides = [1, 1]} : vector<1x128xf32> to vector<1x32xf32>
    %767 = vector.extract_strided_slice %765 {offsets = [0, 32], sizes = [1, 32], strides = [1, 1]} : vector<1x128xf32> to vector<1x32xf32>
    %768 = vector.extract_strided_slice %765 {offsets = [0, 64], sizes = [1, 32], strides = [1, 1]} : vector<1x128xf32> to vector<1x32xf32>
    %769 = vector.extract_strided_slice %765 {offsets = [0, 96], sizes = [1, 32], strides = [1, 1]} : vector<1x128xf32> to vector<1x32xf32>
    %770 = arith.mulf %767, %721 : vector<1x32xf32>
    %771 = arith.mulf %766, %768 : vector<1x32xf32>
    %772 = arith.addf %770, %771 : vector<1x32xf32>
    %773 = math.tanh %772 : vector<1x32xf32>
    %774 = arith.mulf %769, %773 : vector<1x32xf32>
    %775 = arith.maximumf %724, %774 : vector<1x32xf32>
    %776 = vector.extract_strided_slice %112 {offsets = [14, 0], sizes = [1, 128], strides = [1, 1]} : vector<16x128xf32> to vector<1x128xf32>
    %cst_135 = arith.constant dense<0.000000e+00> : vector<1x128xf32>
    %777 = tpu.matmul %740, %99, %cst_135 {dimension_numbers = #tpu.dot_dimension_numbers<[1], [0], [0], [1], [0, 0, 1, 1], [], []>} : vector<1x32xf32>, vector<32x128xf32>, vector<1x128xf32> -> vector<1x128xf32>
    %778 = arith.addf %776, %777 : vector<1x128xf32>
    %779 = arith.mulf %778, %88 : vector<1x128xf32>
    %780 = math.tanh %779 : vector<1x128xf32>
    %781 = arith.mulf %780, %88 : vector<1x128xf32>
    %782 = arith.addf %781, %91 : vector<1x128xf32>
    %783 = vector.extract_strided_slice %782 {offsets = [0, 0], sizes = [1, 32], strides = [1, 1]} : vector<1x128xf32> to vector<1x32xf32>
    %784 = vector.extract_strided_slice %782 {offsets = [0, 32], sizes = [1, 32], strides = [1, 1]} : vector<1x128xf32> to vector<1x32xf32>
    %785 = vector.extract_strided_slice %782 {offsets = [0, 64], sizes = [1, 32], strides = [1, 1]} : vector<1x128xf32> to vector<1x32xf32>
    %786 = vector.extract_strided_slice %782 {offsets = [0, 96], sizes = [1, 32], strides = [1, 1]} : vector<1x128xf32> to vector<1x32xf32>
    %787 = arith.mulf %784, %738 : vector<1x32xf32>
    %788 = arith.mulf %783, %785 : vector<1x32xf32>
    %789 = arith.addf %787, %788 : vector<1x32xf32>
    %790 = math.tanh %789 : vector<1x32xf32>
    %791 = arith.mulf %786, %790 : vector<1x32xf32>
    %cst_136 = arith.constant dense<0.000000e+00> : vector<1x128xf32>
    %792 = tpu.matmul %740, %95, %cst_136 {dimension_numbers = #tpu.dot_dimension_numbers<[1], [0], [0], [1], [0, 0, 1, 1], [], []>} : vector<1x32xf32>, vector<32x128xf32>, vector<1x128xf32> -> vector<1x128xf32>
    %793 = arith.addf %792, %107 : vector<1x128xf32>
    %cst_137 = arith.constant dense<0.000000e+00> : vector<1x128xf32>
    %794 = tpu.matmul %757, %101, %cst_137 {dimension_numbers = #tpu.dot_dimension_numbers<[1], [0], [0], [1], [0, 0, 1, 1], [], []>} : vector<1x32xf32>, vector<32x128xf32>, vector<1x128xf32> -> vector<1x128xf32>
    %795 = arith.addf %793, %794 : vector<1x128xf32>
    %796 = arith.mulf %795, %88 : vector<1x128xf32>
    %797 = math.tanh %796 : vector<1x128xf32>
    %798 = arith.mulf %797, %88 : vector<1x128xf32>
    %799 = arith.addf %798, %91 : vector<1x128xf32>
    %800 = vector.extract_strided_slice %799 {offsets = [0, 0], sizes = [1, 32], strides = [1, 1]} : vector<1x128xf32> to vector<1x32xf32>
    %801 = vector.extract_strided_slice %799 {offsets = [0, 32], sizes = [1, 32], strides = [1, 1]} : vector<1x128xf32> to vector<1x32xf32>
    %802 = vector.extract_strided_slice %799 {offsets = [0, 64], sizes = [1, 32], strides = [1, 1]} : vector<1x128xf32> to vector<1x32xf32>
    %803 = vector.extract_strided_slice %799 {offsets = [0, 96], sizes = [1, 32], strides = [1, 1]} : vector<1x128xf32> to vector<1x32xf32>
    %804 = arith.mulf %801, %755 : vector<1x32xf32>
    %805 = arith.mulf %800, %802 : vector<1x32xf32>
    %806 = arith.addf %804, %805 : vector<1x32xf32>
    %807 = math.tanh %806 : vector<1x32xf32>
    %808 = arith.mulf %803, %807 : vector<1x32xf32>
    %cst_138 = arith.constant dense<0.000000e+00> : vector<1x128xf32>
    %809 = tpu.matmul %757, %97, %cst_138 {dimension_numbers = #tpu.dot_dimension_numbers<[1], [0], [0], [1], [0, 0, 1, 1], [], []>} : vector<1x32xf32>, vector<32x128xf32>, vector<1x128xf32> -> vector<1x128xf32>
    %810 = arith.addf %809, %109 : vector<1x128xf32>
    %cst_139 = arith.constant dense<0.000000e+00> : vector<1x128xf32>
    %811 = tpu.matmul %774, %103, %cst_139 {dimension_numbers = #tpu.dot_dimension_numbers<[1], [0], [0], [1], [0, 0, 1, 1], [], []>} : vector<1x32xf32>, vector<32x128xf32>, vector<1x128xf32> -> vector<1x128xf32>
    %812 = arith.addf %810, %811 : vector<1x128xf32>
    %813 = arith.mulf %812, %88 : vector<1x128xf32>
    %814 = math.tanh %813 : vector<1x128xf32>
    %815 = arith.mulf %814, %88 : vector<1x128xf32>
    %816 = arith.addf %815, %91 : vector<1x128xf32>
    %817 = vector.extract_strided_slice %816 {offsets = [0, 0], sizes = [1, 32], strides = [1, 1]} : vector<1x128xf32> to vector<1x32xf32>
    %818 = vector.extract_strided_slice %816 {offsets = [0, 32], sizes = [1, 32], strides = [1, 1]} : vector<1x128xf32> to vector<1x32xf32>
    %819 = vector.extract_strided_slice %816 {offsets = [0, 64], sizes = [1, 32], strides = [1, 1]} : vector<1x128xf32> to vector<1x32xf32>
    %820 = vector.extract_strided_slice %816 {offsets = [0, 96], sizes = [1, 32], strides = [1, 1]} : vector<1x128xf32> to vector<1x32xf32>
    %821 = arith.mulf %818, %772 : vector<1x32xf32>
    %822 = arith.mulf %817, %819 : vector<1x32xf32>
    %823 = arith.addf %821, %822 : vector<1x32xf32>
    %824 = math.tanh %823 : vector<1x32xf32>
    %825 = arith.mulf %820, %824 : vector<1x32xf32>
    %826 = arith.maximumf %775, %825 : vector<1x32xf32>
    %827 = vector.extract_strided_slice %112 {offsets = [15, 0], sizes = [1, 128], strides = [1, 1]} : vector<16x128xf32> to vector<1x128xf32>
    %cst_140 = arith.constant dense<0.000000e+00> : vector<1x128xf32>
    %828 = tpu.matmul %791, %99, %cst_140 {dimension_numbers = #tpu.dot_dimension_numbers<[1], [0], [0], [1], [0, 0, 1, 1], [], []>} : vector<1x32xf32>, vector<32x128xf32>, vector<1x128xf32> -> vector<1x128xf32>
    %829 = arith.addf %827, %828 : vector<1x128xf32>
    %830 = arith.mulf %829, %88 : vector<1x128xf32>
    %831 = math.tanh %830 : vector<1x128xf32>
    %832 = arith.mulf %831, %88 : vector<1x128xf32>
    %833 = arith.addf %832, %91 : vector<1x128xf32>
    %834 = vector.extract_strided_slice %833 {offsets = [0, 0], sizes = [1, 32], strides = [1, 1]} : vector<1x128xf32> to vector<1x32xf32>
    %835 = vector.extract_strided_slice %833 {offsets = [0, 32], sizes = [1, 32], strides = [1, 1]} : vector<1x128xf32> to vector<1x32xf32>
    %836 = vector.extract_strided_slice %833 {offsets = [0, 64], sizes = [1, 32], strides = [1, 1]} : vector<1x128xf32> to vector<1x32xf32>
    %837 = vector.extract_strided_slice %833 {offsets = [0, 96], sizes = [1, 32], strides = [1, 1]} : vector<1x128xf32> to vector<1x32xf32>
    %838 = arith.mulf %835, %789 : vector<1x32xf32>
    %839 = arith.mulf %834, %836 : vector<1x32xf32>
    %840 = arith.addf %838, %839 : vector<1x32xf32>
    %841 = math.tanh %840 : vector<1x32xf32>
    %842 = arith.mulf %837, %841 : vector<1x32xf32>
    %cst_141 = arith.constant dense<0.000000e+00> : vector<1x128xf32>
    %843 = tpu.matmul %791, %95, %cst_141 {dimension_numbers = #tpu.dot_dimension_numbers<[1], [0], [0], [1], [0, 0, 1, 1], [], []>} : vector<1x32xf32>, vector<32x128xf32>, vector<1x128xf32> -> vector<1x128xf32>
    %844 = arith.addf %843, %107 : vector<1x128xf32>
    %cst_142 = arith.constant dense<0.000000e+00> : vector<1x128xf32>
    %845 = tpu.matmul %808, %101, %cst_142 {dimension_numbers = #tpu.dot_dimension_numbers<[1], [0], [0], [1], [0, 0, 1, 1], [], []>} : vector<1x32xf32>, vector<32x128xf32>, vector<1x128xf32> -> vector<1x128xf32>
    %846 = arith.addf %844, %845 : vector<1x128xf32>
    %847 = arith.mulf %846, %88 : vector<1x128xf32>
    %848 = math.tanh %847 : vector<1x128xf32>
    %849 = arith.mulf %848, %88 : vector<1x128xf32>
    %850 = arith.addf %849, %91 : vector<1x128xf32>
    %851 = vector.extract_strided_slice %850 {offsets = [0, 0], sizes = [1, 32], strides = [1, 1]} : vector<1x128xf32> to vector<1x32xf32>
    %852 = vector.extract_strided_slice %850 {offsets = [0, 32], sizes = [1, 32], strides = [1, 1]} : vector<1x128xf32> to vector<1x32xf32>
    %853 = vector.extract_strided_slice %850 {offsets = [0, 64], sizes = [1, 32], strides = [1, 1]} : vector<1x128xf32> to vector<1x32xf32>
    %854 = vector.extract_strided_slice %850 {offsets = [0, 96], sizes = [1, 32], strides = [1, 1]} : vector<1x128xf32> to vector<1x32xf32>
    %855 = arith.mulf %852, %806 : vector<1x32xf32>
    %856 = arith.mulf %851, %853 : vector<1x32xf32>
    %857 = arith.addf %855, %856 : vector<1x32xf32>
    %858 = math.tanh %857 : vector<1x32xf32>
    %859 = arith.mulf %854, %858 : vector<1x32xf32>
    %cst_143 = arith.constant dense<0.000000e+00> : vector<1x128xf32>
    %860 = tpu.matmul %808, %97, %cst_143 {dimension_numbers = #tpu.dot_dimension_numbers<[1], [0], [0], [1], [0, 0, 1, 1], [], []>} : vector<1x32xf32>, vector<32x128xf32>, vector<1x128xf32> -> vector<1x128xf32>
    %861 = arith.addf %860, %109 : vector<1x128xf32>
    %cst_144 = arith.constant dense<0.000000e+00> : vector<1x128xf32>
    %862 = tpu.matmul %825, %103, %cst_144 {dimension_numbers = #tpu.dot_dimension_numbers<[1], [0], [0], [1], [0, 0, 1, 1], [], []>} : vector<1x32xf32>, vector<32x128xf32>, vector<1x128xf32> -> vector<1x128xf32>
    %863 = arith.addf %861, %862 : vector<1x128xf32>
    %864 = arith.mulf %863, %88 : vector<1x128xf32>
    %865 = math.tanh %864 : vector<1x128xf32>
    %866 = arith.mulf %865, %88 : vector<1x128xf32>
    %867 = arith.addf %866, %91 : vector<1x128xf32>
    %868 = vector.extract_strided_slice %867 {offsets = [0, 0], sizes = [1, 32], strides = [1, 1]} : vector<1x128xf32> to vector<1x32xf32>
    %869 = vector.extract_strided_slice %867 {offsets = [0, 32], sizes = [1, 32], strides = [1, 1]} : vector<1x128xf32> to vector<1x32xf32>
    %870 = vector.extract_strided_slice %867 {offsets = [0, 64], sizes = [1, 32], strides = [1, 1]} : vector<1x128xf32> to vector<1x32xf32>
    %871 = vector.extract_strided_slice %867 {offsets = [0, 96], sizes = [1, 32], strides = [1, 1]} : vector<1x128xf32> to vector<1x32xf32>
    %872 = arith.mulf %869, %823 : vector<1x32xf32>
    %873 = arith.mulf %868, %870 : vector<1x32xf32>
    %874 = arith.addf %872, %873 : vector<1x32xf32>
    %875 = math.tanh %874 : vector<1x32xf32>
    %876 = arith.mulf %871, %875 : vector<1x32xf32>
    %877 = arith.maximumf %826, %876 : vector<1x32xf32>
    %cst_145 = arith.constant dense<0.000000e+00> : vector<1x128xf32>
    %878 = tpu.matmul %842, %95, %cst_145 {dimension_numbers = #tpu.dot_dimension_numbers<[1], [0], [0], [1], [0, 0, 1, 1], [], []>} : vector<1x32xf32>, vector<32x128xf32>, vector<1x128xf32> -> vector<1x128xf32>
    %879 = arith.addf %878, %107 : vector<1x128xf32>
    %cst_146 = arith.constant dense<0.000000e+00> : vector<1x128xf32>
    %880 = tpu.matmul %859, %101, %cst_146 {dimension_numbers = #tpu.dot_dimension_numbers<[1], [0], [0], [1], [0, 0, 1, 1], [], []>} : vector<1x32xf32>, vector<32x128xf32>, vector<1x128xf32> -> vector<1x128xf32>
    %881 = arith.addf %879, %880 : vector<1x128xf32>
    %882 = arith.mulf %881, %88 : vector<1x128xf32>
    %883 = math.tanh %882 : vector<1x128xf32>
    %884 = arith.mulf %883, %88 : vector<1x128xf32>
    %885 = arith.addf %884, %91 : vector<1x128xf32>
    %886 = vector.extract_strided_slice %885 {offsets = [0, 0], sizes = [1, 32], strides = [1, 1]} : vector<1x128xf32> to vector<1x32xf32>
    %887 = vector.extract_strided_slice %885 {offsets = [0, 32], sizes = [1, 32], strides = [1, 1]} : vector<1x128xf32> to vector<1x32xf32>
    %888 = vector.extract_strided_slice %885 {offsets = [0, 64], sizes = [1, 32], strides = [1, 1]} : vector<1x128xf32> to vector<1x32xf32>
    %889 = vector.extract_strided_slice %885 {offsets = [0, 96], sizes = [1, 32], strides = [1, 1]} : vector<1x128xf32> to vector<1x32xf32>
    %890 = arith.mulf %887, %857 : vector<1x32xf32>
    %891 = arith.mulf %886, %888 : vector<1x32xf32>
    %892 = arith.addf %890, %891 : vector<1x32xf32>
    %893 = math.tanh %892 : vector<1x32xf32>
    %894 = arith.mulf %889, %893 : vector<1x32xf32>
    %cst_147 = arith.constant dense<0.000000e+00> : vector<1x128xf32>
    %895 = tpu.matmul %859, %97, %cst_147 {dimension_numbers = #tpu.dot_dimension_numbers<[1], [0], [0], [1], [0, 0, 1, 1], [], []>} : vector<1x32xf32>, vector<32x128xf32>, vector<1x128xf32> -> vector<1x128xf32>
    %896 = arith.addf %895, %109 : vector<1x128xf32>
    %cst_148 = arith.constant dense<0.000000e+00> : vector<1x128xf32>
    %897 = tpu.matmul %876, %103, %cst_148 {dimension_numbers = #tpu.dot_dimension_numbers<[1], [0], [0], [1], [0, 0, 1, 1], [], []>} : vector<1x32xf32>, vector<32x128xf32>, vector<1x128xf32> -> vector<1x128xf32>
    %898 = arith.addf %896, %897 : vector<1x128xf32>
    %899 = arith.mulf %898, %88 : vector<1x128xf32>
    %900 = math.tanh %899 : vector<1x128xf32>
    %901 = arith.mulf %900, %88 : vector<1x128xf32>
    %902 = arith.addf %901, %91 : vector<1x128xf32>
    %903 = vector.extract_strided_slice %902 {offsets = [0, 0], sizes = [1, 32], strides = [1, 1]} : vector<1x128xf32> to vector<1x32xf32>
    %904 = vector.extract_strided_slice %902 {offsets = [0, 32], sizes = [1, 32], strides = [1, 1]} : vector<1x128xf32> to vector<1x32xf32>
    %905 = vector.extract_strided_slice %902 {offsets = [0, 64], sizes = [1, 32], strides = [1, 1]} : vector<1x128xf32> to vector<1x32xf32>
    %906 = vector.extract_strided_slice %902 {offsets = [0, 96], sizes = [1, 32], strides = [1, 1]} : vector<1x128xf32> to vector<1x32xf32>
    %907 = arith.mulf %904, %874 : vector<1x32xf32>
    %908 = arith.mulf %903, %905 : vector<1x32xf32>
    %909 = arith.addf %907, %908 : vector<1x32xf32>
    %910 = math.tanh %909 : vector<1x32xf32>
    %911 = arith.mulf %906, %910 : vector<1x32xf32>
    %912 = arith.maximumf %877, %911 : vector<1x32xf32>
    %cst_149 = arith.constant dense<0.000000e+00> : vector<1x128xf32>
    %913 = tpu.matmul %894, %97, %cst_149 {dimension_numbers = #tpu.dot_dimension_numbers<[1], [0], [0], [1], [0, 0, 1, 1], [], []>} : vector<1x32xf32>, vector<32x128xf32>, vector<1x128xf32> -> vector<1x128xf32>
    %914 = arith.addf %913, %109 : vector<1x128xf32>
    %cst_150 = arith.constant dense<0.000000e+00> : vector<1x128xf32>
    %915 = tpu.matmul %911, %103, %cst_150 {dimension_numbers = #tpu.dot_dimension_numbers<[1], [0], [0], [1], [0, 0, 1, 1], [], []>} : vector<1x32xf32>, vector<32x128xf32>, vector<1x128xf32> -> vector<1x128xf32>
    %916 = arith.addf %914, %915 : vector<1x128xf32>
    %917 = arith.mulf %916, %88 : vector<1x128xf32>
    %918 = math.tanh %917 : vector<1x128xf32>
    %919 = arith.mulf %918, %88 : vector<1x128xf32>
    %920 = arith.addf %919, %91 : vector<1x128xf32>
    %921 = vector.extract_strided_slice %920 {offsets = [0, 0], sizes = [1, 32], strides = [1, 1]} : vector<1x128xf32> to vector<1x32xf32>
    %922 = vector.extract_strided_slice %920 {offsets = [0, 32], sizes = [1, 32], strides = [1, 1]} : vector<1x128xf32> to vector<1x32xf32>
    %923 = vector.extract_strided_slice %920 {offsets = [0, 64], sizes = [1, 32], strides = [1, 1]} : vector<1x128xf32> to vector<1x32xf32>
    %924 = vector.extract_strided_slice %920 {offsets = [0, 96], sizes = [1, 32], strides = [1, 1]} : vector<1x128xf32> to vector<1x32xf32>
    %925 = arith.mulf %922, %909 : vector<1x32xf32>
    %926 = arith.mulf %921, %923 : vector<1x32xf32>
    %927 = arith.addf %925, %926 : vector<1x32xf32>
    %928 = math.tanh %927 : vector<1x32xf32>
    %929 = arith.mulf %924, %928 : vector<1x32xf32>
    %930 = arith.maximumf %912, %929 : vector<1x32xf32>
    %c0_151 = arith.constant 0 : index
    %c0_152 = arith.constant 0 : index
    %931 = vector.load %arg14[%c0_151, %c0_152] : memref<32x32xf32, #tpu.memory_space<vmem>>, vector<32x32xf32>
    %cst_153 = arith.constant dense<0.000000e+00> : vector<1x32xf32>
    %932 = tpu.matmul %930, %931, %cst_153 {dimension_numbers = #tpu.dot_dimension_numbers<[1], [0], [0], [1], [0, 0, 1, 1], [], []>} : vector<1x32xf32>, vector<32x32xf32>, vector<1x32xf32> -> vector<1x32xf32>
    %c0_154 = arith.constant 0 : index
    %c0_155 = arith.constant 0 : index
    %933 = vector.load %arg15[%c0_154, %c0_155] : memref<1x32xf32, #tpu.memory_space<vmem>>, vector<1x32xf32>
    %934 = arith.addf %932, %933 : vector<1x32xf32>
    %935 = math.tanh %934 : vector<1x32xf32>
    %cst_156 = arith.constant dense<0xFF800000> : vector<1xf32>
    %936 = vector.multi_reduction <maximumf>, %935, %cst_156 [1] : vector<1x32xf32> to vector<1xf32>
    %cst_157 = arith.constant 0xFF800000 : f32
    %937 = vector.broadcast %cst_157 : f32 to vector<1xf32>
    %938 = arith.maximumf %937, %936 : vector<1xf32>
    %939 = vector.shape_cast %938 : vector<1xf32> to vector<1x1xf32>
    %940 = vector.broadcast %939 : vector<1x1xf32> to vector<1x32xf32>
    %941 = arith.subf %935, %940 : vector<1x32xf32>
    %942 = math.exp %941 : vector<1x32xf32>
    %cst_158 = arith.constant dense<0.000000e+00> : vector<1xf32>
    %943 = vector.multi_reduction <add>, %942, %cst_158 [1] : vector<1x32xf32> to vector<1xf32>
    %944 = vector.shape_cast %943 : vector<1xf32> to vector<1x1xf32>
    %945 = vector.broadcast %944 : vector<1x1xf32> to vector<1x32xf32>
    %946 = arith.divf %942, %945 : vector<1x32xf32>
    %947 = arith.mulf %930, %946 : vector<1x32xf32>
    %c0_159 = arith.constant 0 : index
    %c0_160 = arith.constant 0 : index
    %948 = vector.load %arg16[%c0_159, %c0_160] : memref<32x9xf32, #tpu.memory_space<vmem>>, vector<32x9xf32>
    %cst_161 = arith.constant dense<0.000000e+00> : vector<1x9xf32>
    %949 = tpu.matmul %947, %948, %cst_161 {dimension_numbers = #tpu.dot_dimension_numbers<[1], [0], [0], [1], [0, 0, 1, 1], [], []>} : vector<1x32xf32>, vector<32x9xf32>, vector<1x9xf32> -> vector<1x9xf32>
    %c0_162 = arith.constant 0 : index
    %c0_163 = arith.constant 0 : index
    %950 = vector.load %arg17[%c0_162, %c0_163] : memref<1x9xf32, #tpu.memory_space<vmem>>, vector<1x9xf32>
    %951 = arith.addf %949, %950 : vector<1x9xf32>
    %c0_164 = arith.constant 0 : index
    %c0_165 = arith.constant 0 : index
    %952 = vector.load %arg18[%c0_164, %c0_165] : memref<1x9xf32, #tpu.memory_space<vmem>>, vector<1x9xf32>
    tpu.vector_store %arg18[%c0_164, %c0_165], %951 {strides = array<i32>} : memref<1x9xf32, #tpu.memory_space<vmem>>, vector<1x9xf32>,
    return
  }
}

</mosaic_0001>

<bundles_post_ra>
// kernel: gcn_lstm_forward.1
= control target key start
LH: loop header
LB: loop body
LE: loop exit
PB: predicated region body
PF: predicated region fallthrough
CT: control target
= control target key end

     0   :  { %s12421_s0 = inlined_call_operand.hbm [shape: s32[2,48], index: 0, kind: input, shape index: {}]   ;;  %s12422_s1 = inlined_call_operand.hbm [shape: f32[1,48], index: 1, kind: input, shape index: {}]   ;;  %s12423_s2 = inlined_call_operand.vmem [shape: f32[16,4], index: 2, kind: input, shape index: {}]   ;;  %s12424_s3 = inlined_call_operand.hbm [shape: f32[4,32], index: 3, kind: input, shape index: {}]   ;;  %s12425_s4 = inlined_call_operand.hbm [shape: f32[1,32], index: 4, kind: input, shape index: {}]   ;;  %s12426_s5 = inlined_call_operand.hbm [shape: f32[1,32], index: 5, kind: input, shape index: {}]   ;;  %s12427_s6 = inlined_call_operand.hbm [shape: f32[1,32], index: 6, kind: input, shape index: {}]   ;;  %s12428_s7 = inlined_call_operand.vmem [shape: f32[32,32], index: 7, kind: input, shape index: {}]   ;;  %s12429_s8 = inlined_call_operand.hbm [shape: f32[1,32], index: 8, kind: input, shape index: {}]   ;;  %s12430_s9 = inlined_call_operand.hbm [shape: f32[1,32], index: 9, kind: input, shape index: {}]   ;;  %s12431_s10 = inlined_call_operand.hbm [shape: f32[1,32], index: 10, kind: input, shape index: {}]   ;;  %s12432_s11 = inlined_call_operand.vmem [shape: f32[3,32,128], index: 11, kind: input, shape index: {}]   ;;  %s12433_s12 = inlined_call_operand.hbm [shape: f32[3,32,128], index: 12, kind: input, shape index: {}]   ;;  %s12434_s13 = inlined_call_operand.hbm [shape: f32[3,1,128], index: 13, kind: input, shape index: {}]   ;;  %s12435_s14 = inlined_call_operand.hbm [shape: f32[32,32], index: 14, kind: input, shape index: {}]   ;;  %s12436_s15 = inlined_call_operand.hbm [shape: f32[1,32], index: 15, kind: input, shape index: {}]   ;;  %s12437_s16 = inlined_call_operand.vmem [shape: f32[32,9], index: 16, kind: input, shape index: {}]   ;;  %s12438_s17 = inlined_call_operand.vmem [shape: f32[1,9], index: 17, kind: input, shape index: {}]   ;;  %s12439_s18 = inlined_call_operand.hbm [shape: f32[1,9], index: 18, kind: output, shape index: {}]  }
   0x1   :  { %12443 = sst [smem:[#allocation32_spill]] %s12421_s0 }
   0x2   :  { %12444 = sst [smem:[#allocation33_spill]] %s12422_s1 }
   0x3   :  { %12445 = sst [smem:[#allocation34_spill]] %s12423_s2 }
   0x4   :  { %23 = vsyncpa [#allocation3], 0 }
   0x5   :  { %24 = vsyncpa [#allocation6], 0 }
   0x6   :  { %25 = vsyncpa [#allocation9], 0 }
   0x7   :  { %26 = vsyncpa [#allocation12], 0 }
   0x8   :  { %27 = vsyncpa [#allocation15], 0 }
   0x9   :  { %28 = vsyncpa [#allocation18], 0 }
   0xa   :  { %29 = vsyncpa [#allocation21], 0 }
   0xb   :  { %30 = vsyncpa [#allocation4], 0  ;;  %s10795_s27 = smov [#allocation5]   ;;  %s10796_s29 = smov [#allocation8]  }
   0xc   :  { %s47_s28 = sshll.u32 %s10795_s27, 4  ;;  %s69_s30 = sshll.u32 %s10796_s29, 4  ;;  %s48_s28 = int_to_ptr.vmem [resolvable:$true] %s47_s28  ;;  %s70_s30 = int_to_ptr.vmem [resolvable:$true] %s69_s30 }
   0xd   :  { %s12446_s1 = sld [smem:[#allocation33_spill]] }
  0x13   :  { %s10471_s20 = scalar_lea.hbm %s12446_s1, 16 }
  0x14   :  { %p10472_p0 = scmp.ne.s32.totalorder %s12446_s1, %s10471_s20  ;;  %p10475_p1 = scmp.lt.u32.totalorder %s10471_s20, %s12446_s1 }
  0x16   :  { %p10477_p2 = pnand %p10475_p1, %p10472_p0 }
  0x18   :  { %10480 = shalt.err (!%p10477_p2)
}
  0x19   :  { %s10481_s24 = scalar_lea.vmem %s48_s28, 16  ;;  %s10485_s25 = scalar_lea.vmem %s48_s28, 32 }
  0x1a   :  { %p10482_p3 = scmp.ne.s32.totalorder %s48_s28, %s10481_s24  ;;  %p10486_p4 = scmp.lt.s32.totalorder %s48_s28, %s48_s28 }
  0x1b   :  { %p10487_p5 = scmp.lt.s32.totalorder %s10485_s25, %s10481_s24 }
  0x1d   :  { %p10488_p6 = por %p10487_p5, %p10486_p4 }
  0x1f   :  { %p10489_p7 = pnand %p10488_p6, %p10482_p3 }
  0x21   :  { %10492 = shalt.err (!%p10489_p7)
}
  0x22   :  { %50 = dma.hbm_to_vmem [thread:$0]  %s12446_s1, 16, %s48_s28, [#allocation6]  }
  0x23   :  { %s10493_s19 = scalar_lea.hbm %s12425_s4, 16 }
  0x24   :  { %p10494_p8 = scmp.ne.s32.totalorder %s12425_s4, %s10493_s19  ;;  %p10497_p9 = scmp.lt.u32.totalorder %s10493_s19, %s12425_s4 }
  0x26   :  { %p10499_p10 = pnand %p10497_p9, %p10494_p8 }
  0x28   :  { %10502 = shalt.err (!%p10499_p10)
}
  0x29   :  { %s10503_s23 = scalar_lea.vmem %s70_s30, 16  ;;  %s10507_s24 = scalar_lea.vmem %s70_s30, 32 }
  0x2a   :  { %p10504_p11 = scmp.ne.s32.totalorder %s70_s30, %s10503_s23  ;;  %p10508_p12 = scmp.lt.s32.totalorder %s70_s30, %s70_s30 }
  0x2b   :  { %p10509_p13 = scmp.lt.s32.totalorder %s10507_s24, %s10503_s23 }
  0x2d   :  { %p10510_p0 = por %p10509_p13, %p10508_p12 }
  0x2f   :  { %p10511_p1 = pnand %p10510_p0, %p10504_p11 }
  0x31   :  { %10514 = shalt.err (!%p10511_p1)
}
  0x32   :  { %72 = dma.hbm_to_vmem [thread:$0]  %s12425_s4, 16, %s70_s30, [#allocation9]  }
  0x33   :  { %s10797_s25 = smov [#allocation11]   ;;  %s10798_s27 = smov [#allocation14]  }
  0x34   :  { %s89_s26 = sshll.u32 %s10797_s25, 4  ;;  %s111_s29 = sshll.u32 %s10798_s27, 4  ;;  %s90_s26 = int_to_ptr.vmem [resolvable:$true] %s89_s26  ;;  %s112_s29 = int_to_ptr.vmem [resolvable:$true] %s111_s29 }
  0x35   :  { %s10515_s21 = scalar_lea.hbm %s12427_s6, 16 }
  0x36   :  { %p10516_p2 = scmp.ne.s32.totalorder %s12427_s6, %s10515_s21  ;;  %p10519_p3 = scmp.lt.u32.totalorder %s10515_s21, %s12427_s6 }
  0x38   :  { %p10521_p4 = pnand %p10519_p3, %p10516_p2 }
  0x3a   :  { %10524 = shalt.err (!%p10521_p4)
}
  0x3b   :  { %s10525_s4 = scalar_lea.vmem %s90_s26, 16  ;;  %s10529_s30 = scalar_lea.vmem %s90_s26, 32 }
  0x3c   :  { %p10526_p5 = scmp.ne.s32.totalorder %s90_s26, %s10525_s4  ;;  %p10530_p6 = scmp.lt.s32.totalorder %s90_s26, %s90_s26 }
  0x3d   :  { %p10531_p7 = scmp.lt.s32.totalorder %s10529_s30, %s10525_s4 }
  0x3f   :  { %p10532_p8 = por %p10531_p7, %p10530_p6 }
  0x41   :  { %p10533_p9 = pnand %p10532_p8, %p10526_p5 }
  0x43   :  { %10536 = shalt.err (!%p10533_p9)
}
  0x44   :  { %92 = dma.hbm_to_vmem [thread:$0]  %s12427_s6, 16, %s90_s26, [#allocation12]  }
  0x45   :  { %s10537_s27 = scalar_lea.hbm %s12430_s9, 16 }
  0x46   :  { %p10538_p10 = scmp.ne.s32.totalorder %s12430_s9, %s10537_s27  ;;  %p10541_p11 = scmp.lt.u32.totalorder %s10537_s27, %s12430_s9 }
  0x48   :  { %p10543_p12 = pnand %p10541_p11, %p10538_p10 }
  0x4a   :  { %10546 = shalt.err (!%p10543_p12)
}
  0x4b   :  { %s10547_s22 = scalar_lea.vmem %s112_s29, 16  ;;  %s10551_s2 = scalar_lea.vmem %s112_s29, 32 }
  0x4c   :  { %p10548_p13 = scmp.ne.s32.totalorder %s112_s29, %s10547_s22  ;;  %p10552_p0 = scmp.lt.s32.totalorder %s112_s29, %s112_s29 }
  0x4d   :  { %p10553_p1 = scmp.lt.s32.totalorder %s10551_s2, %s10547_s22 }
  0x4f   :  { %p10554_p2 = por %p10553_p1, %p10552_p0 }
  0x51   :  { %p10555_p3 = pnand %p10554_p2, %p10548_p13 }
  0x53   :  { %10558 = shalt.err (!%p10555_p3)
}
  0x54   :  { %114 = dma.hbm_to_vmem [thread:$0]  %s12430_s9, 16, %s112_s29, [#allocation15]  }
  0x55   :  { %s10799_s23 = smov [#allocation17]   ;;  %s10559_s28 = scalar_lea.hbm %s12433_s12, 1536 }
  0x56   :  { %s132_s4 = sshll.u32 %s10799_s23, 4  ;;  %p10560_p4 = scmp.ne.s32.totalorder %s12433_s12, %s10559_s28  ;;  %s133_s4 = int_to_ptr.vmem [resolvable:$true] %s132_s4 }
  0x57   :  { %p10563_p5 = scmp.lt.u32.totalorder %s10559_s28, %s12433_s12 }
  0x59   :  { %p10565_p6 = pnand %p10563_p5, %p10560_p4 }
  0x5b   :  { %10568 = shalt.err (!%p10565_p6)
}
  0x5c   :  { %s10569_s19 = scalar_lea.vmem %s133_s4, 1536  ;;  %p10574_p8 = scmp.lt.s32.totalorder %s133_s4, %s133_s4 }
  0x5d   :  { %p10570_p7 = scmp.ne.s32.totalorder %s133_s4, %s10569_s19  ;;  %p10575_p9 = scmp.lt.s32.totalorder %s10569_s19, %s10569_s19 }
  0x5f   :  { %p10576_p10 = por %p10575_p9, %p10574_p8 }
  0x61   :  { %p10577_p11 = pnand %p10576_p10, %p10570_p7 }
  0x63   :  { %10580 = shalt.err (!%p10577_p11)
}
  0x64   :  { %s10800_s9 = smov 128   ;;  %s10801_s29 = smov 8  }
  0x65   :  { %138 = dma.hbm_to_vmem [thread:$0]  %s12433_s12, 1536, %s133_s4, [#allocation18], %s10800_s9, %s10800_s9, %s10801_s29  }
  0x66   :  { %s10802_s22 = smov [#allocation20]   ;;  %s10803_s6 = smov [#allocation2]  }
  0x67   :  { %s156_s2 = sshll.u32 %s10802_s22, 4  ;;  %s37_s26 = sshll.u32 %s10803_s6, 4  ;;  %s157_s2 = int_to_ptr.vmem [resolvable:$true] %s156_s2  ;;  %s38_s26 = int_to_ptr.vmem [resolvable:$true] %s37_s26 }
  0x68   :  { %s10581_s24 = scalar_lea.hbm %s12435_s14, 512 }
  0x69   :  { %p10582_p12 = scmp.ne.s32.totalorder %s12435_s14, %s10581_s24  ;;  %p10585_p13 = scmp.lt.u32.totalorder %s10581_s24, %s12435_s14 }
  0x6b   :  { %p10587_p0 = pnand %p10585_p13, %p10582_p12 }
  0x6d   :  { %10590 = shalt.err (!%p10587_p0)
}
  0x6e   :  { %s10591_s12 = scalar_lea.vmem %s157_s2, 512  ;;  %p10596_p2 = scmp.lt.s32.totalorder %s157_s2, %s157_s2 }
  0x6f   :  { %p10592_p1 = scmp.ne.s32.totalorder %s157_s2, %s10591_s12  ;;  %p10597_p3 = scmp.lt.s32.totalorder %s10591_s12, %s10591_s12 }
  0x71   :  { %p10598_p4 = por %p10597_p3, %p10596_p2 }
  0x73   :  { %p10599_p5 = pnand %p10598_p4, %p10592_p1 }
  0x75   :  { %10602 = shalt.err (!%p10599_p5)
}
  0x76   :  { %162 = dma.hbm_to_vmem [thread:$0]  %s12435_s14, 512, %s157_s2, [#allocation21], %s10800_s9, %s10800_s9, %s10801_s29  }
  0x77   :  { %s12447_s20 = sld [smem:[#allocation32_spill]] }
  0x7d   :  { %s10603_s22 = scalar_lea.hbm %s12447_s20, 32 }
  0x7e   :  { %p10604_p6 = scmp.ne.s32.totalorder %s12447_s20, %s10603_s22  ;;  %p10607_p7 = scmp.lt.u32.totalorder %s10603_s22, %s12447_s20 }
  0x80   :  { %p10609_p8 = pnand %p10607_p7, %p10604_p6 }
  0x82   :  { %10612 = shalt.err (!%p10609_p8)
}
  0x83   :  { %s10613_s28 = scalar_lea.vmem %s38_s26, 32  ;;  %p10618_p10 = scmp.lt.s32.totalorder %s38_s26, %s38_s26 }
  0x84   :  { %p10614_p9 = scmp.ne.s32.totalorder %s38_s26, %s10613_s28  ;;  %p10619_p11 = scmp.lt.s32.totalorder %s10613_s28, %s10613_s28 }
  0x86   :  { %p10620_p12 = por %p10619_p11, %p10618_p10 }
  0x88   :  { %p10621_p13 = pnand %p10620_p12, %p10614_p9 }
  0x8a   :  { %10624 = shalt.err (!%p10621_p13)
}
  0x8b   :  { %40 = dma.hbm_to_vmem [thread:$0]  %s12447_s20, 32, %s38_s26, [#allocation3]  }
  0x8c   :  { %s10804_s29 = smov [#allocation7]   ;;  %s10805_s1 = smov [#allocation10]  }
  0x8d   :  { %s59_s2 = sshll.u32 %s10804_s29, 4  ;;  %s79_s25 = sshll.u32 %s10805_s1, 4  ;;  %s60_s2 = int_to_ptr.vmem [resolvable:$true] %s59_s2  ;;  %s80_s25 = int_to_ptr.vmem [resolvable:$true] %s79_s25 }
  0x8e   :  { %s10625_s4 = scalar_lea.hbm %s12424_s3, 64 }
  0x8f   :  { %p10626_p0 = scmp.ne.s32.totalorder %s12424_s3, %s10625_s4  ;;  %p10629_p1 = scmp.lt.u32.totalorder %s10625_s4, %s12424_s3 }
  0x91   :  { %p10631_p2 = pnand %p10629_p1, %p10626_p0 }
  0x93   :  { %10634 = shalt.err (!%p10631_p2)
}
  0x94   :  { %s10635_s26 = scalar_lea.vmem %s60_s2, 64  ;;  %p10640_p4 = scmp.lt.s32.totalorder %s60_s2, %s60_s2 }
  0x95   :  { %p10636_p3 = scmp.ne.s32.totalorder %s60_s2, %s10635_s26  ;;  %p10641_p5 = scmp.lt.s32.totalorder %s10635_s26, %s10635_s26 }
  0x97   :  { %p10642_p6 = por %p10641_p5, %p10640_p4 }
  0x99   :  { %p10643_p7 = pnand %p10642_p6, %p10636_p3 }
  0x9b   :  { %10646 = shalt.err (!%p10643_p7)
}
  0x9c   :  { %62 = dma.hbm_to_vmem [thread:$0]  %s12424_s3, 64, %s60_s2, [#allocation6]  }
  0x9d   :  { %s10647_s24 = scalar_lea.hbm %s12426_s5, 16 }
  0x9e   :  { %p10648_p8 = scmp.ne.s32.totalorder %s12426_s5, %s10647_s24  ;;  %p10651_p9 = scmp.lt.u32.totalorder %s10647_s24, %s12426_s5 }
  0xa0   :  { %p10653_p10 = pnand %p10651_p9, %p10648_p8 }
  0xa2   :  { %10656 = shalt.err (!%p10653_p10)
}
  0xa3   :  { %s10657_s1 = scalar_lea.vmem %s80_s25, 16  ;;  %s10661_s27 = scalar_lea.vmem %s80_s25, 32 }
  0xa4   :  { %p10658_p11 = scmp.ne.s32.totalorder %s80_s25, %s10657_s1  ;;  %p10662_p12 = scmp.lt.s32.totalorder %s80_s25, %s80_s25 }
  0xa5   :  { %p10663_p13 = scmp.lt.s32.totalorder %s10661_s27, %s10657_s1 }
  0xa7   :  { %p10664_p0 = por %p10663_p13, %p10662_p12 }
  0xa9   :  { %p10665_p1 = pnand %p10664_p0, %p10658_p11 }
  0xab   :  { %10668 = shalt.err (!%p10665_p1)
}
  0xac   :  { %82 = dma.hbm_to_vmem [thread:$0]  %s12426_s5, 16, %s80_s25, [#allocation9]  }
  0xad   :  { %s10806_s12 = smov [#allocation13]   ;;  %s10807_s0 = smov [#allocation16]  }
  0xae   :  { %s101_s4 = sshll.u32 %s10806_s12, 4  ;;  %s121_s19 = sshll.u32 %s10807_s0, 4  ;;  %s102_s4 = int_to_ptr.vmem [resolvable:$true] %s101_s4  ;;  %s122_s19 = int_to_ptr.vmem [resolvable:$true] %s121_s19 }
  0xaf   :  { %s10669_s26 = scalar_lea.hbm %s12429_s8, 16 }
  0xb0   :  { %p10670_p2 = scmp.ne.s32.totalorder %s12429_s8, %s10669_s26  ;;  %p10673_p3 = scmp.lt.u32.totalorder %s10669_s26, %s12429_s8 }
  0xb2   :  { %p10675_p4 = pnand %p10673_p3, %p10670_p2 }
  0xb4   :  { %10678 = shalt.err (!%p10675_p4)
}
  0xb5   :  { %s10679_s5 = scalar_lea.vmem %s102_s4, 16  ;;  %s10683_s25 = scalar_lea.vmem %s102_s4, 32 }
  0xb6   :  { %p10680_p5 = scmp.ne.s32.totalorder %s102_s4, %s10679_s5  ;;  %p10684_p6 = scmp.lt.s32.totalorder %s102_s4, %s102_s4 }
  0xb7   :  { %p10685_p7 = scmp.lt.s32.totalorder %s10683_s25, %s10679_s5 }
  0xb9   :  { %p10686_p8 = por %p10685_p7, %p10684_p6 }
  0xbb   :  { %p10687_p9 = pnand %p10686_p8, %p10680_p5 }
  0xbd   :  { %10690 = shalt.err (!%p10687_p9)
}
  0xbe   :  { %104 = dma.hbm_to_vmem [thread:$0]  %s12429_s8, 16, %s102_s4, [#allocation12]  }
  0xbf   :  { %s10691_s29 = scalar_lea.hbm %s12431_s10, 16 }
  0xc0   :  { %p10692_p10 = scmp.ne.s32.totalorder %s12431_s10, %s10691_s29  ;;  %p10695_p11 = scmp.lt.u32.totalorder %s10691_s29, %s12431_s10 }
  0xc2   :  { %p10697_p12 = pnand %p10695_p11, %p10692_p10 }
  0xc4   :  { %10700 = shalt.err (!%p10697_p12)
}
  0xc5   :  { %s10701_s12 = scalar_lea.vmem %s122_s19, 16  ;;  %s10705_s0 = scalar_lea.vmem %s122_s19, 32 }
  0xc6   :  { %p10702_p13 = scmp.ne.s32.totalorder %s122_s19, %s10701_s12  ;;  %p10706_p0 = scmp.lt.s32.totalorder %s122_s19, %s122_s19 }
  0xc7   :  { %p10707_p1 = scmp.lt.s32.totalorder %s10705_s0, %s10701_s12 }
  0xc9   :  { %p10708_p2 = por %p10707_p1, %p10706_p0 }
  0xcb   :  { %p10709_p3 = pnand %p10708_p2, %p10702_p13 }
  0xcd   :  { %10712 = shalt.err (!%p10709_p3)
}
  0xce   :  { %124 = dma.hbm_to_vmem [thread:$0]  %s12431_s10, 16, %s122_s19, [#allocation15]  }
  0xcf   :  { %s10808_s21 = smov [#allocation19]   ;;  %s10713_s6 = scalar_lea.hbm %s12434_s13, 48 }
  0xd0   :  { %s144_s22 = sshll.u32 %s10808_s21, 4  ;;  %p10714_p4 = scmp.ne.s32.totalorder %s12434_s13, %s10713_s6  ;;  %s145_s22 = int_to_ptr.vmem [resolvable:$true] %s144_s22 }
  0xd1   :  { %p10717_p5 = scmp.lt.u32.totalorder %s10713_s6, %s12434_s13 }
  0xd3   :  { %p10719_p6 = pnand %p10717_p5, %p10714_p4 }
  0xd5   :  { %10722 = shalt.err (!%p10719_p6)
}
  0xd6   :  { %s10723_s24 = scalar_lea.vmem %s145_s22, 48  ;;  %s10727_s10 = scalar_lea.vmem %s145_s22, 64 }
  0xd7   :  { %p10724_p7 = scmp.ne.s32.totalorder %s145_s22, %s10723_s24  ;;  %p10728_p8 = scmp.lt.s32.totalorder %s145_s22, %s145_s22 }
  0xd8   :  { %p10729_p9 = scmp.lt.s32.totalorder %s10727_s10, %s10723_s24 }
  0xda   :  { %p10730_p10 = por %p10729_p9, %p10728_p8 }
  0xdc   :  { %p10731_p11 = pnand %p10730_p10, %p10724_p7 }
  0xde   :  { %10734 = shalt.err (!%p10731_p11)
}
  0xdf   :  { %s10809_s19 = smov 16   ;;  %s10810_s28 = smov 1  }
  0xe0   :  { %150 = dma.hbm_to_vmem [thread:$0]  %s12434_s13, 48, %s145_s22, [#allocation18], %s10809_s19, %s10809_s19, %s10810_s28  }
  0xe1   :  { %s10811_s29 = smov [#allocation22]   ;;  %s10735_s2 = scalar_lea.hbm %s12436_s15, 16 }
  0xe2   :  { %s169_s1 = sshll.u32 %s10811_s29, 4  ;;  %p10736_p12 = scmp.ne.s32.totalorder %s12436_s15, %s10735_s2  ;;  %s170_s1 = int_to_ptr.vmem [resolvable:$true] %s169_s1 }
  0xe3   :  { %p10739_p13 = scmp.lt.u32.totalorder %s10735_s2, %s12436_s15 }
  0xe5   :  { %p10741_p0 = pnand %p10739_p13, %p10736_p12 }
  0xe7   :  { %10744 = shalt.err (!%p10741_p0)
}
  0xe8   :  { %s10745_s21 = scalar_lea.vmem %s170_s1, 16  ;;  %s10749_s13 = scalar_lea.vmem %s170_s1, 32 }
  0xe9   :  { %p10746_p1 = scmp.ne.s32.totalorder %s170_s1, %s10745_s21  ;;  %p10750_p2 = scmp.lt.s32.totalorder %s170_s1, %s170_s1 }
  0xea   :  { %p10751_p3 = scmp.lt.s32.totalorder %s10749_s13, %s10745_s21 }
  0xec   :  { %p10752_p4 = por %p10751_p3, %p10750_p2 }
  0xee   :  { %p10753_p5 = pnand %p10752_p4, %p10746_p1 }
  0xf0   :  { %10756 = shalt.err (!%p10753_p5)
}
  0xf1   :  { %172 = dma.hbm_to_vmem [thread:$0]  %s12436_s15, 16, %s170_s1, [#allocation21]  }
  0xf2   :  { %10779 = dma.done.wait [#allocation3], 32  }
  0xf3   :  { %10780 = vsyncadd [#allocation3], 4294967264 }
  0xf4   :  { %10781 = dma.done.wait [#allocation6], 80  }
  0xf5   :  { %10782 = vsyncadd [#allocation6], 4294967216 }
  0xf6   :  { %10783 = dma.done.wait [#allocation9], 32  }
  0xf7   :  { %10784 = vsyncadd [#allocation9], 4294967264 }
  0xf8   :  { %10785 = dma.done.wait [#allocation12], 32  }
  0xf9   :  { %10786 = vsyncadd [#allocation12], 4294967264 }
  0xfa   :  { %10787 = dma.done.wait [#allocation15], 32  }
  0xfb   :  { %10788 = vsyncadd [#allocation15], 4294967264 }
  0xfc   :  { %10789 = dma.done.wait [#allocation18], 1584  }
  0xfd   :  { %10790 = vsyncadd [#allocation18], 4294965712 }
  0xfe   :  { %10791 = dma.done.wait [#allocation21], 528  }
  0xff   :  { %10792 = vsyncadd [#allocation21], 4294966768  ;;  %v218_v0 = vlaneseq  ;;  %v8122_v3 = vld [vmem:[#allocation2] ss:$0 sm:$0xff]  ;;  %v8125_v4 = vld [vmem:[#allocation5] ss:$0 sm:$0xff] }
 0x100   :  { %v8119_v5 = vld [vmem:[#allocation2 + $0x1] ss:$0 sm:$0xff]  ;;  %vm250_vm2 = vcmask 392192   ;;  %s12448_s6 = sld [smem:[#allocation34_spill]]  ;;  %v10812_v8 = vmov 0.0   ;;  %vm437_vm6 = vcmask 1043456  }
 0x101   :  { %v219_v1 = vshrl.u32 %v218_v0, 7  ;;  %vm9623_vm4 = vmpackc.low %vm250_vm2, %vm250_vm2  ;;  %v422_v17 = vld [vmem:[#allocation7] sm:$0xf]  ;;  %vm340_vm7 = vcmask 130048   ;;  %vm430_vm8 = vcmask 31744   ;;  %v567_v23 = vld [vmem:[%s12428_s7 + $0x8] sm:$0xff] }
 0x102   :  { %v566_v22 = vld [vmem:[%s12428_s7] sm:$0xff]  ;;  %v568_v25 = vld [vmem:[%s12428_s7 + $0x10] sm:$0xff]  ;;  %v569_v26 = vld [vmem:[%s12428_s7 + $0x18] sm:$0xff]  ;;  %vm518_vm9 = vcmask 261120   ;;  %vm10814_vm10 = vmmov 0   ;;  %s10816_s8 = smov 64  }
 0x103   :  { %v220_v2 = vadd.s32 8, %v219_v1  ;;  %vm235_vm0 = vcmp.eq.s32.totalorder %v8122_v3, %v219_v1  ;;  %vm225_vm3 = vcmp.eq.s32.totalorder %v8119_v5, %v219_v1  ;;  %v9632_v24 = vpack.c.bf16 %v567_v23, %v566_v22  ;;  %v8132_v28 = vld [vmem:[#allocation8] ss:$0 sm:$0xff]  ;;  %v8136_v59 = vld [vmem:[#allocation10] ss:$0 sm:$0xff]  ;;  %s10817_s4 = smov 32  }
 0x104   :  { %v8123_v9 = vsel %vm235_vm0, 1.0, %v10812_v8  ;;  %v8120_v11 = vsel %vm225_vm3, 1.0, %v10812_v8  ;;  %v9636_v27 = vpack.c.bf16 %v569_v26, %v568_v25  ;;  %v8137_v62 = vld [vmem:[#allocation11] ss:$0 sm:$0xff]  ;;  %v8140_v23 = vld [vmem:[#allocation13] ss:$0 sm:$0xff] }
 0x105   :  { %vm236_vm1 = vcmp.eq.s32.totalorder %v8122_v3, %v220_v2  ;;  %v248_v12 = vmul.f32 %v8125_v4, %v8123_v9  ;;  %8676 = vmatprep.mubr.msk.f32.mxu0 %vm250_vm2, %v8120_v11  ;;  %vm226_vm5 = vcmp.eq.s32.totalorder %v8119_v5, %v220_v2  ;;  %v789_v11 = vld [vmem:[%s12432_s11 + $0x8] sm:$0xff]  ;;  %vm7999_vm14 = vcmask 253952   ;;  %s10818_s12 = smov 96  }
 0x106   :  { %v338_v6 = vld [vmem:[%s12448_s6] sm:$0xff]  ;;  %v339_v7 = vld [vmem:[%s12448_s6 + $0x8] sm:$0xff]  ;;  %v8124_v10 = vsel %vm236_vm1, 1.0, %v10812_v8  ;;  %v8121_v16 = vsel %vm226_vm5, 1.0, %v10812_v8  ;;  %vm8096_vm15 = vcmask 65536  }
 0x107   :  { %v249_v13 = vmul.f32 %v8125_v4, %v8124_v10  ;;  %v9628_v14 = vpack.c.bf16 %v339_v7, %v338_v6  ;;  %v788_v10 = vld [vmem:[%s12432_s11] sm:$0xff] }
 0x109   :  { %v9622_v15 = vpack.c.bf16 %v249_v13, %v248_v12  ;;  %9629 = vmatprep.subr.bf16.mxu1 %v9628_v14  ;;  %v9644_v12 = vpack.c.bf16 %v789_v11, %v788_v10  ;;  %v802_v13 = vld [vmem:[#allocation17] sm:$0xff]  ;;  %v10815_v10 = vmov 0.5  }
 0x10a   :  { %9631 = vmatpush3.bf16.msra.mxu1 %v9628_v14  ;;  %v803_v14 = vld [vmem:[#allocation17 + $0x8] sm:$0xff] }
 0x10b   :  { %9624 = vmatprep.subr.msk.bf16.mxu0 %vm9623_vm4, %v9622_v15  ;;  %8686 = vmatprep.subr.msk.mxu1 %vm437_vm6, %v422_v17 }
 0x10c   :  { %9627 = vmatpush3.bf16.xpose.msk.msra.mxu0 %vm9623_vm4, %v9622_v15  ;;  %v790_v15 = vld [vmem:[%s12432_s11 + $0x10] sm:$0xff] }
 0x10d   :  { %9633 = vmatprep.subr.bf16.mxu0 %v9632_v24 }
 0x113   :  { %8677 = vmatmul.mubr.msk.f32.vlgmr.msra.gmra.mrb[0].mxu0 %vm250_vm2, %v8121_v16  ;;  %v791_v16 = vld [vmem:[%s12432_s11 + $0x18] sm:$0xff] }
 0x114   :  { %9635 = vmatpush3.bf16.msra.mxu0 %v9632_v24 }
 0x115   :  { %9637 = vmatprep.subr.bf16.mxu0 %v9636_v27 }
 0x118   :  { %9639 = vmatpush3.bf16.msra.mxu0 %v9636_v27 }
 0x1e6   :  { %v11086_v18 = vpop.f32.mrb[0].mxu0 }
 0x1e7   :  { %v329_v19 = vpop.f32.mrb[1].mxu0 }
 0x1e8   :  { %8683 = vmatprep.mubr.msk.f32.mxu1 %vm340_vm7, %v329_v19 }
 0x1e9   :  { %8684 = vmatmul.mubr.msk.f32.vlgmr.msra.gmra.mrb[0].mxu1 %vm340_vm7, %v11086_v18 }
 0x1ea   :  { %8687 = vmatpush3.msk.msra.mxu1 %vm437_vm6, %v422_v17  ;;  %v11124_v17 = vpack.c.bf16 %v803_v14, %v802_v13 }
 0x2bc   :  { %v8685_v20 = vpop.f32.mrb[0].mxu1 }
 0x2bd   :  { %v413_v21 = vpop.f32.mrb[1].mxu1 }
 0x2be   :  { %8688 = vmatprep.mubr.msk.f32.mxu1 %vm430_vm8, %v413_v21  ;;  %v805_v21 = vld [vmem:[#allocation17 + $0x18] sm:$0xff] }
 0x2bf   :  { %8689 = vmatmul.mubr.msk.f32.vlgmr.msra.gmra.mrb[2].mxu1 %vm430_vm8, %v8685_v20  ;;  %v804_v20 = vld [vmem:[#allocation17 + $0x10] sm:$0xff] }
 0x2c0   :  { %8706 = vmatprep.mubr.msk.f32.mxu1 %vm340_vm7, %v329_v19  ;;  %v9648_v19 = vpack.c.bf16 %v791_v16, %v790_v15  ;;  %v11129_v22 = vpack.c.bf16 %v805_v21, %v804_v20 }
 0x392   :  { %v8690_v29 = vpop.f32.mrb[2].mxu1 }
 0x393   :  { %v513_v30 = vadd.f32 %v8690_v29, %v8132_v28  ;;  %v507_v31 = vpop.f32.mrb[3].mxu1 }
 0x394   :  { %v508_v32 = vadd.f32 %v8132_v28, %v507_v31 }
 0x395   :  { %v520_v33 = vsel %vm518_vm9, %v513_v30, 0.0 }
 0x396   :  { %v519_v34 = vsel %vm518_vm9, %v508_v32, 0.0 }
 0x397   :  { %v521_v35 = vadd.f32 %v520_v33, %v519_v34 }
 0x399   :  { %v522_v36 = vrot.slane %v521_v35, 4 }
 0x39b   :  { %v523_v37 = vadd.f32 %v522_v36, %v521_v35 }
 0x39d   :  { %v524_v38 = vrot.slane %v523_v37, 2 }
 0x39f   :  { %v525_v39 = vadd.f32 %v524_v38, %v523_v37 }
 0x3a1   :  { %v526_v40 = vrot.slane %v525_v39, 1 }
 0x3a3   :  { %v527_v41 = vadd.f32 %v526_v40, %v525_v39 }
 0x3a5   :  { %v529_v42 = vmul.f32 0.0625, %v527_v41 }
 0x3a7   :  { %v530_v43 = vsub.f32 %v508_v32, %v529_v42  ;;  %v531_v44 = vsub.f32 %v513_v30, %v529_v42 }
 0x3a9   :  { %v532_v45 = vmul.f32 %v530_v43, %v530_v43  ;;  %v533_v46 = vmul.f32 %v531_v44, %v531_v44 }
 0x3ab   :  { %v534_v47 = vsel %vm518_vm9, %v532_v45, 0.0  ;;  %v535_v48 = vsel %vm518_vm9, %v533_v46, 0.0 }
 0x3ac   :  { %v536_v49 = vadd.f32 %v535_v48, %v534_v47 }
 0x3ae   :  { %v537_v50 = vrot.slane %v536_v49, 4 }
 0x3b0   :  { %v538_v51 = vadd.f32 %v537_v50, %v536_v49 }
 0x3b2   :  { %v539_v52 = vrot.slane %v538_v51, 2 }
 0x3b4   :  { %v540_v53 = vadd.f32 %v539_v52, %v538_v51 }
 0x3b6   :  { %v541_v54 = vrot.slane %v540_v53, 1 }
 0x3b8   :  { %v542_v55 = vadd.f32 %v541_v54, %v540_v53  ;;  %v8143_v54 = vld [vmem:[#allocation14] ss:$0 sm:$0xff] }
 0x3ba   :  { %v543_v56 = vmul.f32 0.0625, %v542_v55 }
 0x3bc   :  { %v544_v57 = vadd.f32 1e-05, %v543_v56 }
 0x3be   :  { %10265 = vrsqrt.f32 %v544_v57  ;;  %v8144_v57 = vld [vmem:[#allocation16] ss:$0 sm:$0xff] }
 0x3c8   :  { %v10266_v58 = vpop.eup %10265 }
 0x3c9   :  { %v546_v60 = vmul.f32 %v10266_v58, %v530_v43  ;;  %v547_v61 = vmul.f32 %v10266_v58, %v531_v44 }
 0x3cb   :  { %v554_v63 = vmul.f32 %v8136_v59, %v546_v60  ;;  %v555_v1 = vmul.f32 %v8136_v59, %v547_v61 }
 0x3cd   :  { %v562_v2 = vadd.f32 %v8137_v62, %v554_v63  ;;  %v563_v3 = vadd.f32 %v8137_v62, %v555_v1 }
 0x3cf   :  { %v564_v4 = vmax.f32 %v562_v2, 0.0  ;;  %v565_v5 = vmax.f32 %v563_v3, 0.0  ;;  %v782_v3 = vand.u32 127, %v218_v0 }
 0x3d1   :  { %8699 = vmatprep.mubr.msk.f32.mxu0 %vm518_vm9, %v564_v4  ;;  %vm783_vm11 = vcmp.ge.s32.totalorder %v782_v3, 64  ;;  %vm784_vm12 = vcmp.lt.s32.totalorder %v782_v3, 96  ;;  %v8153_v4 = vld [vmem:[#allocation19] ss:$0 sm:$0xff] }
 0x3d2   :  { %8700 = vmatmul.mubr.msk.f32.vlgmr.msra.gmra.mrb[2].mxu0 %vm518_vm9, %v565_v5  ;;  %vm785_vm13 = vmand %vm783_vm11, %vm784_vm12 }
 0x3d3   :  { %8728 = vmatprep.mubr.msk.f32.mxu0 %vm10814_vm10, %v10812_v8  ;;  %v11156_v11 = vsel %vm785_vm13, 1.0, %v10815_v10  ;;  %v11160_v0 = vsel %vm785_vm13, 0.0, %v10815_v10 }
 0x4a5   :  { %v8701_v6 = vpop.f32.mrb[2].mxu0 }
 0x4a6   :  { %v642_v7 = vpop.f32.mrb[3].mxu0 }
 0x4a7   :  { %v9640_v9 = vpack.c.bf16 %v8701_v6, %v642_v7 }
 0x4a9   :  { %9641 = vmatprep.subr.bf16.mxu1 %v9640_v9 }
 0x4aa   :  { %9643 = vmatpush3.bf16.msra.mxu1 %v9640_v9 }
 0x4ab   :  { %9645 = vmatprep.subr.bf16.mxu1 %v9644_v12 }
 0x4ad   :  { %8707 = vmatmul.mubr.msk.f32.vlgmr.msra.gmra.mrb[4].mxu1 %vm340_vm7, %v11086_v18  ;;  %v10813_v18 = vmov 0.0|0.0  }
 0x4ae   :  { %9647 = vmatpush3.bf16.msra.mxu1 %v9644_v12  ;;  %9652 = vmatprep.subr.bf16.mxu0 %v10813_v18 }
 0x4af   :  { %9654 = vmatpush3.bf16.msra.mxu0 %v11124_v17  ;;  %9649 = vmatprep.subr.bf16.mxu1 %v9648_v19 }
 0x4b0   :  { %9655 = vmatprep.subr.bf16.mxu0 %v10813_v18 }
 0x4b2   :  { %9651 = vmatpush3.bf16.msra.mxu1 %v9648_v19 }
 0x4b3   :  { %9658 = vmatprep.subr.bf16.mxu1 %v10813_v18  ;;  %9657 = vmatpush3.bf16.msra.mxu0 %v11129_v22 }
 0x4b4   :  { %9664 = vmatprep.subr.bf16.mxu0 %v10813_v18 }
 0x4b6   :  { %8729 = vmatmul.mubr.f32.vlgmr.msra.gmra.mrb[4].mxu0 %v10812_v8 }
 0x4b7   :  { %8750 = vmatprep.mubr.msk.f32.mxu0 %vm10814_vm10, %v10812_v8 }
 0x580   :  { %v8708_v24 = vpop.f32.mrb[4].mxu1 }
 0x581   :  { %v730_v25 = vadd.f32 %v8708_v24, %v8140_v23  ;;  %v724_v26 = vpop.f32.mrb[5].mxu1 }
 0x582   :  { %v725_v27 = vadd.f32 %v8140_v23, %v724_v26  ;;  %v8146_v26 = vld [vmem:[%s12432_s11 + $0x28] sm:$0xff] }
 0x583   :  { %v736_v28 = vsel %vm518_vm9, %v730_v25, 0.0 }
 0x584   :  { %v735_v29 = vsel %vm518_vm9, %v725_v27, 0.0 }
 0x585   :  { %v737_v30 = vadd.f32 %v736_v28, %v735_v29  ;;  %v8148_v29 = vld [vmem:[%s12432_s11 + $0x38] sm:$0xff] }
 0x587   :  { %v738_v31 = vrot.slane %v737_v30, 4 }
 0x589   :  { %v739_v32 = vadd.f32 %v738_v31, %v737_v30  ;;  %v977_v1 = vpop.f32.mrb[4].mxu0 }
 0x58a   :  { %v8730_v2 = vpop.f32.mrb[5].mxu0 }
 0x58b   :  { %v740_v33 = vrot.slane %v739_v32, 2 }
 0x58d   :  { %v741_v34 = vadd.f32 %v740_v33, %v739_v32 }
 0x58f   :  { %v742_v35 = vrot.slane %v741_v34, 1 }
 0x591   :  { %v743_v36 = vadd.f32 %v742_v35, %v741_v34  ;;  %v807_v34 = vld [vmem:[#allocation17 + $0x20] sm:$0xff]  ;;  %v808_v35 = vld [vmem:[#allocation17 + $0x28] sm:$0xff] }
 0x593   :  { %v744_v37 = vmul.f32 0.0625, %v743_v36  ;;  %v11191_v36 = vpack.c.bf16 %v808_v35, %v807_v34 }
 0x595   :  { %v745_v38 = vsub.f32 %v725_v27, %v744_v37  ;;  %v746_v39 = vsub.f32 %v730_v25, %v744_v37  ;;  %v8145_v25 = vld [vmem:[%s12432_s11 + $0x20] sm:$0xff]  ;;  %v8147_v27 = vld [vmem:[%s12432_s11 + $0x30] sm:$0xff] }
 0x596   :  { %v11178_v28 = vpack.c.bf16 %v8146_v26, %v8145_v25  ;;  %v11184_v30 = vpack.c.bf16 %v8148_v29, %v8147_v27  ;;  %v809_v37 = vld [vmem:[#allocation17 + $0x30] sm:$0xff]  ;;  %v812_v25 = vld [vmem:[#allocation17 + $0x40] sm:$0xff]  ;;  %v813_v26 = vld [vmem:[#allocation17 + $0x48] sm:$0xff] }
 0x597   :  { %v747_v40 = vmul.f32 %v745_v38, %v745_v38  ;;  %v748_v41 = vmul.f32 %v746_v39, %v746_v39  ;;  %v11259_v29 = vpack.c.bf16 %v813_v26, %v812_v25 }
 0x598   :  { %9666 = vmatpush3.bf16.msra.mxu0 %v11178_v28 }
 0x599   :  { %v749_v42 = vsel %vm518_vm9, %v747_v40, 0.0  ;;  %v750_v43 = vsel %vm518_vm9, %v748_v41, 0.0  ;;  %9667 = vmatprep.subr.bf16.mxu0 %v10813_v18 }
 0x59a   :  { %v751_v44 = vadd.f32 %v750_v43, %v749_v42 }
 0x59c   :  { %v752_v45 = vrot.slane %v751_v44, 4  ;;  %9669 = vmatpush3.bf16.msra.mxu0 %v11184_v30 }
 0x59d   :  { %9670 = vmatprep.subr.bf16.mxu0 %v10813_v18 }
 0x59e   :  { %v753_v46 = vadd.f32 %v752_v45, %v751_v44 }
 0x5a0   :  { %v754_v47 = vrot.slane %v753_v46, 2 }
 0x5a2   :  { %v755_v48 = vadd.f32 %v754_v47, %v753_v46  ;;  %v11214_v46 = vld [vmem:[#allocation19 + $0x1] sm:$0x1] }
 0x5a4   :  { %v756_v49 = vrot.slane %v755_v48, 1 }
 0x5a6   :  { %v757_v50 = vadd.f32 %v756_v49, %v755_v48 }
 0x5a8   :  { %v758_v51 = vmul.f32 0.0625, %v757_v50 }
 0x5aa   :  { %v759_v52 = vadd.f32 1e-05, %v758_v51 }
 0x5ac   :  { %10267 = vrsqrt.f32 %v759_v52 }
 0x5b6   :  { %v10268_v53 = vpop.eup %10267 }
 0x5b7   :  { %v761_v55 = vmul.f32 %v10268_v53, %v745_v38  ;;  %v762_v56 = vmul.f32 %v10268_v53, %v746_v39  ;;  %v810_v38 = vld [vmem:[#allocation17 + $0x38] sm:$0xff] }
 0x5b8   :  { %v11196_v40 = vpack.c.bf16 %v810_v38, %v809_v37 }
 0x5b9   :  { %v769_v58 = vmul.f32 %v8143_v54, %v761_v55  ;;  %v770_v59 = vmul.f32 %v8143_v54, %v762_v56 }
 0x5bb   :  { %v777_v60 = vadd.f32 %v8144_v57, %v769_v58  ;;  %v778_v61 = vadd.f32 %v8144_v57, %v770_v59 }
 0x5bd   :  { %v779_v62 = vmax.f32 %v777_v60, 0.0  ;;  %v780_v63 = vmax.f32 %v778_v61, 0.0 }
 0x5bf   :  { %8717 = vmatprep.mubr.msk.f32.mxu1 %vm518_vm9, %v779_v62 }
 0x5c0   :  { %8718 = vmatmul.mubr.msk.f32.vlgmr.msra.gmra.mrb[6].mxu1 %vm518_vm9, %v780_v63 }
 0x5c1   :  { %9660 = vmatpush3.bf16.msra.mxu1 %v11124_v17  ;;  %8739 = vmatprep.mubr.msk.f32.mxu1 %vm10814_vm10, %v10812_v8 }
 0x5c2   :  { %9661 = vmatprep.subr.bf16.mxu1 %v10813_v18 }
 0x5c5   :  { %9663 = vmatpush3.bf16.msra.mxu1 %v11129_v22 }
 0x5c6   :  { %9676 = vmatprep.subr.bf16.mxu1 %v10813_v18 }
 0x693   :  { %v8719_v5 = vpop.f32.mrb[6].mxu1 }
 0x694   :  { %v11152_v6 = vadd.f32 %v8719_v5, %v8153_v4  ;;  %v899_v7 = vpop.f32.mrb[7].mxu1  ;;  %v8149_v5 = vld [vmem:[%s12432_s11 + $0x40] sm:$0xff] }
 0x695   :  { %v11154_v9 = vadd.f32 %v8153_v4, %v899_v7  ;;  %v8150_v7 = vld [vmem:[%s12432_s11 + $0x48] sm:$0xff] }
 0x696   :  { %v11239_v10 = vpack.c.bf16 %v8150_v7, %v8149_v5 }
 0x697   :  { %v981_v12 = vadd.f32 %v977_v1, %v11154_v9 }
 0x699   :  { %v982_v13 = vmul.f32 %v981_v12, %v11156_v11 }
 0x69b   :  { %10269 = vtanh.f32 %v982_v13 }
 0x6a5   :  { %v10270_v14 = vpop.eup %10269 }
 0x6a6   :  { %v984_v15 = vmul.f32 %v10270_v14, %v11156_v11  ;;  %v8151_v14 = vld [vmem:[%s12432_s11 + $0x50] sm:$0xff] }
 0x6a8   :  { %v985_v16 = vadd.f32 %v984_v15, %v11160_v0  ;;  %v8152_v15 = vld [vmem:[%s12432_s11 + $0x58] sm:$0xff] }
 0x6aa   :  { %988 = vrot.lane.b32.xlu0 %v985_v16, %s10816_s8  ;;  %v986_v21 = vmul.f32 0.0, %v985_v16 }
 0x71c   :  { %v989_v19 = vpop.permute.xlu0 %988 }
 0x71d   :  { %v991_v20 = vmul.f32 %v989_v19, %v985_v16 }
 0x71f   :  { %993 = vrot.lane.b32.xlu0 %v991_v20, %s10817_s4 }
 0x791   :  { %v994_v23 = vpop.permute.xlu0 %993 }
 0x792   :  { %v11166_v24 = vadd.f32 %v994_v23, %v986_v21 }
 0x794   :  { %10271 = vtanh.f32 %v11166_v24  ;;  %v1087_v61 = vrot.slane %v11166_v24, 7 }
 0x79e   :  { %v10272_v31 = vpop.eup %10271 }
 0x79f   :  { %999 = vrot.lane.b32.xlu1 %v10272_v31, %s10816_s8  ;;  %v814_v31 = vld [vmem:[#allocation17 + $0x50] sm:$0xff] }
 0x811   :  { %v1000_v32 = vpop.permute.xlu1 %999 }
 0x812   :  { %v1002_v33 = vmul.f32 %v1000_v32, %v985_v16  ;;  %v11251_v16 = vpack.c.bf16 %v8152_v15, %v8151_v14  ;;  %v815_v32 = vld [vmem:[#allocation17 + $0x58] sm:$0xff] }
 0x813   :  { %v11267_v34 = vpack.c.bf16 %v815_v32, %v814_v31 }
 0x814   :  { %1004 = vrot.lane.b32.xlu1 %v1002_v33, %s10817_s4 }
 0x886   :  { %v1005_v39 = vpop.permute.xlu1 %1004 }
 0x887   :  { %8740 = vmatmul.mubr.msk.f32.vlgmr.msra.gmra.mrb[8].mxu1 %vm518_vm9, %v1005_v39  ;;  %8751 = vmatmul.mubr.msk.f32.vlgmr.msra.gmra.mrb[6].mxu0 %vm518_vm9, %v1005_v39 }
 0x888   :  { %9672 = vmatpush3.bf16.msra.mxu0 %v11191_v36  ;;  %8761 = vmatprep.mubr.msk.f32.mxu0 %vm10814_vm10, %v10812_v8 }
 0x889   :  { %9673 = vmatprep.subr.bf16.mxu0 %v10813_v18  ;;  %9678 = vmatpush3.bf16.msra.mxu1 %v11124_v17 }
 0x88a   :  { %9679 = vmatprep.subr.bf16.mxu1 %v10813_v18  ;;  %8772 = vmatprep.mubr.msk.f32.mxu1 %vm10814_vm10, %v10812_v8 }
 0x88c   :  { %9675 = vmatpush3.bf16.msra.mxu0 %v11196_v40 }
 0x88d   :  { %9681 = vmatpush3.bf16.msra.mxu1 %v11129_v22  ;;  %9694 = vmatprep.subr.bf16.mxu0 %v10813_v18 }
 0x88e   :  { %9682 = vmatprep.subr.bf16.mxu1 %v10813_v18 }
 0x88f   :  { %8762 = vmatmul.mubr.f32.vlgmr.msra.gmra.mrb[6].mxu0 %v10812_v8 }
 0x890   :  { %8805 = vmatprep.mubr.msk.f32.mxu0 %vm10814_vm10, %v10812_v8  ;;  %9696 = vmatpush3.bf16.msra.mxu0 %v11239_v10 }
 0x891   :  { %9697 = vmatprep.subr.bf16.mxu0 %v10813_v18 }
 0x894   :  { %9699 = vmatpush3.bf16.msra.mxu0 %v11251_v16 }
 0x895   :  { %9700 = vmatprep.subr.bf16.mxu0 %v10813_v18 }
 0x95a   :  { %v1074_v41 = vpop.f32.mrb[8].mxu1 }
 0x95b   :  { %v1079_v42 = vrot.slane %v1074_v41, 7  ;;  %v8741_v43 = vpop.f32.mrb[9].mxu1 }
 0x95d   :  { %v1081_v44 = vadd.f32 %v1079_v42, %v11154_v9  ;;  %v11298_v42 = vld [vmem:[#allocation19 + $0x2] sm:$0x1] }
 0x95f   :  { %v1082_v45 = vmul.f32 %v1081_v44, %v11156_v11 }
 0x961   :  { %10273 = vtanh.f32 %v1082_v45 }
 0x962   :  { %v1242_v47 = vpop.f32.mrb[6].mxu0 }
 0x963   :  { %v10144_v48 = vadd.f32 %v1242_v47, %v11214_v46  ;;  %v8763_v49 = vpop.f32.mrb[7].mxu0 }
 0x965   :  { %v1247_v50 = vmul.f32 %v10144_v48, %v11156_v11 }
 0x967   :  { %10275 = vtanh.f32 %v1247_v50 }
 0x96b   :  { %v10274_v51 = vpop.eup %10273 }
 0x96c   :  { %v1084_v52 = vmul.f32 %v10274_v51, %v11156_v11 }
 0x96e   :  { %v1085_v53 = vadd.f32 %v1084_v52, %v11160_v0 }
 0x970   :  { %1091 = vrot.lane.b32.xlu0 %v1085_v53, %s10816_s8  ;;  %v1089_v62 = vmul.f32 %v1087_v61, %v1085_v53 }
 0x971   :  { %v10276_v54 = vpop.eup %10275 }
 0x972   :  { %v1249_v55 = vmul.f32 %v10276_v54, %v11156_v11 }
 0x974   :  { %v1250_v56 = vadd.f32 %v1249_v55, %v11160_v0 }
 0x976   :  { %1253 = vrot.lane.b32.xlu0 %v1250_v56, %s10816_s8  ;;  %v1251_v2 = vmul.f32 0.0, %v1250_v56 }
 0x9e2   :  { %v1092_v57 = vpop.permute.xlu0 %1091 }
 0x9e3   :  { %v1094_v58 = vmul.f32 %v1092_v57, %v1085_v53 }
 0x9e5   :  { %1096 = vrot.lane.b32.xlu1 %v1094_v58, %s10817_s4 }
 0x9e8   :  { %v1254_v59 = vpop.permute.xlu0 %1253 }
 0x9e9   :  { %v1256_v60 = vmul.f32 %v1254_v59, %v1250_v56 }
 0x9eb   :  { %1258 = vrot.lane.b32.xlu1 %v1256_v60, %s10817_s4 }
 0xa57   :  { %v1097_v63 = vpop.permute.xlu1 %1096 }
 0xa58   :  { %v11227_v1 = vadd.f32 %v1097_v63, %v1089_v62 }
 0xa5a   :  { %10277 = vtanh.f32 %v11227_v1  ;;  %v1353_v7 = vrot.slane %v11227_v1, 7 }
 0xa5d   :  { %v1259_v3 = vpop.permute.xlu1 %1258 }
 0xa5e   :  { %v11230_v4 = vadd.f32 %v1259_v3, %v1251_v2 }
 0xa60   :  { %10279 = vtanh.f32 %v11230_v4 }
 0xa64   :  { %v10278_v12 = vpop.eup %10277 }
 0xa65   :  { %1102 = vrot.lane.b32.xlu0 %v10278_v12, %s10816_s8 }
 0xa6a   :  { %v10280_v13 = vpop.eup %10279 }
 0xa6b   :  { %1264 = vrot.lane.b32.xlu1 %v10280_v13, %s10816_s8 }
 0xad7   :  { %v1103_v19 = vpop.permute.xlu0 %1102 }
 0xad8   :  { %v1105_v20 = vmul.f32 %v1103_v19, %v1085_v53 }
 0xada   :  { %v1269_v21 = vrot.slane %v1105_v20, 1 }
 0xadc   :  { %1270 = vrot.lane.b32.xlu0 %v1269_v21, %s10817_s4 }
 0xadd   :  { %v1265_v23 = vpop.permute.xlu1 %1264 }
 0xade   :  { %v1267_v24 = vmul.f32 %v1265_v23, %v1250_v56 }
 0xae0   :  { %1443 = vrot.lane.b32.xlu1 %v1267_v24, %s10817_s4 }
 0xb4e   :  { %v1271_v27 = vpop.permute.xlu0 %1270 }
 0xb4f   :  { %8773 = vmatmul.mubr.msk.f32.vlgmr.msra.gmra.mrb[10].mxu1 %vm518_vm9, %v1271_v27 }
 0xb50   :  { %9684 = vmatpush3.bf16.msra.mxu1 %v11178_v28  ;;  %8783 = vmatprep.mubr.msk.f32.mxu1 %vm10814_vm10, %v10812_v8 }
 0xb51   :  { %9685 = vmatprep.subr.bf16.mxu1 %v10813_v18 }
 0xb52   :  { %v1444_v33 = vpop.permute.xlu1 %1443 }
 0xb53   :  { %8806 = vmatmul.mubr.msk.f32.vlgmr.msra.gmra.mrb[8].mxu0 %vm518_vm9, %v1444_v33 }
 0xb54   :  { %9687 = vmatpush3.bf16.msra.mxu1 %v11184_v30  ;;  %9702 = vmatpush3.bf16.msra.mxu0 %v11259_v29 }
 0xb55   :  { %9688 = vmatprep.subr.bf16.mxu1 %v10813_v18  ;;  %9703 = vmatprep.subr.bf16.mxu0 %v10813_v18 }
 0xb56   :  { %8816 = vmatprep.mubr.msk.f32.mxu0 %vm10814_vm10, %v10812_v8 }
 0xb57   :  { %8784 = vmatmul.mubr.msk.f32.vlgmr.msra.gmra.mrb[12].mxu1 %vm518_vm9, %v1271_v27 }
 0xb58   :  { %9690 = vmatpush3.bf16.msra.mxu1 %v11191_v36  ;;  %9705 = vmatpush3.bf16.msra.mxu0 %v11267_v34 }
 0xb59   :  { %9691 = vmatprep.subr.bf16.mxu1 %v10813_v18  ;;  %8794 = vmatprep.mubr.msk.f32.mxu1 %vm10814_vm10, %v10812_v8 }
 0xb5a   :  { %9712 = vmatprep.subr.bf16.mxu0 %v10813_v18 }
 0xb5b   :  { %8817 = vmatmul.mubr.f32.vlgmr.msra.gmra.mrb[8].mxu0 %v10812_v8 }
 0xb5c   :  { %9693 = vmatpush3.bf16.msra.mxu1 %v11196_v40  ;;  %9714 = vmatpush3.bf16.msra.mxu0 %v11178_v28 }
 0xb5d   :  { %9706 = vmatprep.subr.bf16.mxu1 %v10813_v18  ;;  %9715 = vmatprep.subr.bf16.mxu0 %v10813_v18 }
 0xb5e   :  { %8838 = vmatprep.mubr.msk.f32.mxu0 %vm10814_vm10, %v10812_v8 }
 0xb5f   :  { %8795 = vmatmul.mubr.msk.f32.vlgmr.msra.gmra.mrb[12].mxu1 %vm518_vm9, %v1444_v33 }
 0xb60   :  { %9708 = vmatpush3.bf16.msra.mxu1 %v11124_v17  ;;  %9717 = vmatpush3.bf16.msra.mxu0 %v11184_v30 }
 0xb61   :  { %9709 = vmatprep.subr.bf16.mxu1 %v10813_v18  ;;  %8827 = vmatprep.mubr.msk.f32.mxu1 %vm10814_vm10, %v10812_v8 }
 0xb62   :  { %9718 = vmatprep.subr.bf16.mxu0 %v10813_v18 }
 0xb64   :  { %9711 = vmatpush3.bf16.msra.mxu1 %v11129_v22 }
 0xb65   :  { %9724 = vmatprep.subr.bf16.mxu1 %v10813_v18 }
 0xc22   :  { %v1340_v35 = vpop.f32.mrb[10].mxu1 }
 0xc23   :  { %v1345_v37 = vrot.slane %v1340_v35, 6  ;;  %v8774_v38 = vpop.f32.mrb[11].mxu1 }
 0xc25   :  { %v1347_v39 = vadd.f32 %v1345_v37, %v11154_v9 }
 0xc27   :  { %v1348_v41 = vmul.f32 %v1347_v39, %v11156_v11 }
 0xc29   :  { %10281 = vtanh.f32 %v1348_v41 }
 0xc2e   :  { %v1675_v43 = vpop.f32.mrb[8].mxu0 }
 0xc2f   :  { %v10146_v44 = vadd.f32 %v1675_v43, %v11298_v42  ;;  %v8818_v45 = vpop.f32.mrb[9].mxu0 }
 0xc31   :  { %v1680_v47 = vmul.f32 %v10146_v44, %v11156_v11 }
 0xc32   :  { %v1513_v48 = vpop.f32.mrb[12].mxu1 }
 0xc33   :  { %v10282_v49 = vpop.eup %10281  ;;  %v10145_v50 = vadd.f32 %v1513_v48, %v11214_v46  ;;  %v8796_v51 = vpop.f32.mrb[13].mxu1  ;;  %10283 = vtanh.f32 %v1680_v47 }
 0xc34   :  { %v1350_v52 = vmul.f32 %v10282_v49, %v11156_v11 }
 0xc35   :  { %v1518_v53 = vmul.f32 %v10145_v50, %v11156_v11 }
 0xc36   :  { %v1351_v54 = vadd.f32 %v1350_v52, %v11160_v0 }
 0xc37   :  { %10285 = vtanh.f32 %v1518_v53 }
 0xc38   :  { %1357 = vrot.lane.b32.xlu0 %v1351_v54, %s10816_s8  ;;  %v1355_v12 = vmul.f32 %v1353_v7, %v1351_v54 }
 0xc3d   :  { %v10284_v55 = vpop.eup %10283 }
 0xc3e   :  { %v1682_v59 = vmul.f32 %v10284_v55, %v11156_v11 }
 0xc40   :  { %v1683_v60 = vadd.f32 %v1682_v59, %v11160_v0 }
 0xc41   :  { %v10286_v56 = vpop.eup %10285 }
 0xc42   :  { %v1520_v57 = vmul.f32 %v10286_v56, %v11156_v11  ;;  %v1684_v23 = vmul.f32 0.0, %v1683_v60 }
 0xc44   :  { %v1521_v58 = vadd.f32 %v1520_v57, %v11160_v0 }
 0xc46   :  { %1524 = vrot.lane.b32.xlu1 %v1521_v58, %s10816_s8  ;;  %v1522_v19 = vmul.f32 %v1521_v58, %v11230_v4 }
 0xc4a   :  { %1686 = vrot.lane.b32.xlu1 %v1683_v60, %s10816_s8 }
 0xcaa   :  { %v1358_v61 = vpop.permute.xlu0 %1357 }
 0xcab   :  { %v1360_v62 = vmul.f32 %v1358_v61, %v1351_v54 }
 0xcad   :  { %1362 = vrot.lane.b32.xlu0 %v1360_v62, %s10817_s4 }
 0xcb8   :  { %v1525_v63 = vpop.permute.xlu1 %1524 }
 0xcb9   :  { %v1527_v2 = vmul.f32 %v1525_v63, %v1521_v58 }
 0xcbb   :  { %1529 = vrot.lane.b32.xlu0 %v1527_v2, %s10817_s4 }
 0xcbc   :  { %v1687_v3 = vpop.permute.xlu1 %1686 }
 0xcbd   :  { %v1689_v5 = vmul.f32 %v1687_v3, %v1683_v60 }
 0xcbf   :  { %1691 = vrot.lane.b32.xlu1 %v1689_v5, %s10817_s4 }
 0xd1f   :  { %v1363_v13 = vpop.permute.xlu0 %1362 }
 0xd20   :  { %v11317_v14 = vadd.f32 %v1363_v13, %v1355_v12 }
 0xd22   :  { %10287 = vtanh.f32 %v11317_v14 }
 0xd2c   :  { %v10288_v15 = vpop.eup %10287 }
 0xd2d   :  { %v1530_v20 = vpop.permute.xlu0 %1529  ;;  %1368 = vrot.lane.b32.xlu0 %v10288_v15, %s10816_s8 }
 0xd2e   :  { %v11322_v21 = vadd.f32 %v1530_v20, %v1522_v19  ;;  %v1786_v20 = vrot.slane %v11317_v14, 7 }
 0xd30   :  { %10289 = vtanh.f32 %v11322_v21 }
 0xd31   :  { %v1692_v24 = vpop.permute.xlu1 %1691 }
 0xd32   :  { %v11325_v25 = vadd.f32 %v1692_v24, %v1684_v23 }
 0xd34   :  { %10291 = vtanh.f32 %v11325_v25 }
 0xd3a   :  { %v10290_v1 = vpop.eup %10289 }
 0xd3b   :  { %1535 = vrot.lane.b32.xlu1 %v10290_v1, %s10816_s8 }
 0xd3e   :  { %v10292_v26 = vpop.eup %10291 }
 0xd3f   :  { %1697 = vrot.lane.b32.xlu1 %v10292_v26, %s10816_s8 }
 0xd9f   :  { %v1369_v4 = vpop.permute.xlu0 %1368 }
 0xda0   :  { %v1371_v27 = vmul.f32 %v1369_v4, %v1351_v54 }
 0xda2   :  { %v1702_v31 = vrot.slane %v1371_v27, 2 }
 0xda4   :  { %1703 = vrot.lane.b32.xlu0 %v1702_v31, %s10817_s4 }
 0xdad   :  { %v1536_v32 = vpop.permute.xlu1 %1535 }
 0xdae   :  { %v1538_v33 = vmul.f32 %v1536_v32, %v1521_v58 }
 0xdb0   :  { %1876 = vrot.lane.b32.xlu0 %v1538_v33, %s10817_s4 }
 0xdb1   :  { %v1698_v35 = vpop.permute.xlu1 %1697 }
 0xdb2   :  { %v11332_v37 = vmul.f32 %v1698_v35, %v1683_v60 }
 0xdb4   :  { %2043 = vrot.lane.b32.xlu1 %v11332_v37, %s10817_s4 }
 0xe16   :  { %v1704_v38 = vpop.permute.xlu0 %1703 }
 0xe17   :  { %8828 = vmatmul.mubr.msk.f32.vlgmr.msra.gmra.mrb[14].mxu1 %vm518_vm9, %v1704_v38  ;;  %8839 = vmatmul.mubr.msk.f32.vlgmr.msra.gmra.mrb[10].mxu0 %vm518_vm9, %v1704_v38 }
 0xe18   :  { %9720 = vmatpush3.bf16.msra.mxu0 %v11191_v36  ;;  %9726 = vmatpush3.bf16.msra.mxu1 %v11239_v10 }
 0xe19   :  { %9721 = vmatprep.subr.bf16.mxu0 %v10813_v18  ;;  %9727 = vmatprep.subr.bf16.mxu1 %v10813_v18 }
 0xe1a   :  { %8849 = vmatprep.mubr.msk.f32.mxu0 %vm10814_vm10, %v10812_v8  ;;  %8860 = vmatprep.mubr.msk.f32.mxu1 %vm10814_vm10, %v10812_v8 }
 0xe1c   :  { %9723 = vmatpush3.bf16.msra.mxu0 %v11196_v40  ;;  %9729 = vmatpush3.bf16.msra.mxu1 %v11251_v16 }
 0xe1d   :  { %9730 = vmatprep.subr.bf16.mxu1 %v10813_v18  ;;  %9736 = vmatprep.subr.bf16.mxu0 %v10813_v18 }
 0xe22   :  { %v1877_v39 = vpop.permute.xlu0 %1876 }
 0xe23   :  { %8850 = vmatmul.mubr.msk.f32.vlgmr.msra.gmra.mrb[10].mxu0 %vm518_vm9, %v1877_v39  ;;  %8861 = vmatmul.mubr.msk.f32.vlgmr.msra.gmra.mrb[16].mxu1 %vm518_vm9, %v1877_v39 }
 0xe24   :  { %9732 = vmatpush3.bf16.msra.mxu1 %v11259_v29  ;;  %8871 = vmatprep.mubr.msk.f32.mxu1 %vm10814_vm10, %v10812_v8 }
 0xe25   :  { %9733 = vmatprep.subr.bf16.mxu1 %v10813_v18  ;;  %9738 = vmatpush3.bf16.msra.mxu0 %v11124_v17 }
 0xe26   :  { %9739 = vmatprep.subr.bf16.mxu0 %v10813_v18  ;;  %8882 = vmatprep.mubr.msk.f32.mxu0 %vm10814_vm10, %v10812_v8  ;;  %v2044_v41 = vpop.permute.xlu1 %2043 }
 0xe28   :  { %9735 = vmatpush3.bf16.msra.mxu1 %v11267_v34 }
 0xe29   :  { %9742 = vmatprep.subr.bf16.mxu1 %v10813_v18  ;;  %9741 = vmatpush3.bf16.msra.mxu0 %v11129_v22 }
 0xe2a   :  { %9754 = vmatprep.subr.bf16.mxu0 %v10813_v18 }
 0xe2b   :  { %8872 = vmatmul.mubr.msk.f32.vlgmr.msra.gmra.mrb[16].mxu1 %vm518_vm9, %v2044_v41 }
 0xe2c   :  { %9744 = vmatpush3.bf16.msra.mxu1 %v11178_v28  ;;  %8893 = vmatprep.mubr.msk.f32.mxu1 %vm10814_vm10, %v10812_v8 }
 0xe2d   :  { %9745 = vmatprep.subr.bf16.mxu1 %v10813_v18 }
 0xe30   :  { %9747 = vmatpush3.bf16.msra.mxu1 %v11184_v30 }
 0xe31   :  { %9748 = vmatprep.subr.bf16.mxu1 %v10813_v18 }
 0xeea   :  { %v1773_v43 = vpop.f32.mrb[14].mxu1 }
 0xeeb   :  { %v1778_v44 = vrot.slane %v1773_v43, 5  ;;  %v8829_v45 = vpop.f32.mrb[15].mxu1 }
 0xeed   :  { %v1780_v47 = vadd.f32 %v1778_v44, %v11154_v9 }
 0xeef   :  { %v1781_v48 = vmul.f32 %v1780_v47, %v11156_v11 }
 0xef1   :  { %10293 = vtanh.f32 %v1781_v48 }
 0xef6   :  { %v1946_v49 = vpop.f32.mrb[10].mxu0 }
 0xef7   :  { %v10147_v50 = vadd.f32 %v1946_v49, %v11214_v46  ;;  %v8851_v51 = vpop.f32.mrb[11].mxu0 }
 0xef9   :  { %v1951_v52 = vmul.f32 %v10147_v50, %v11156_v11 }
 0xefb   :  { %v10294_v53 = vpop.eup %10293  ;;  %10295 = vtanh.f32 %v1951_v52 }
 0xefc   :  { %v1783_v54 = vmul.f32 %v10294_v53, %v11156_v11 }
 0xefe   :  { %v2113_v55 = vpop.f32.mrb[16].mxu1  ;;  %v1784_v56 = vadd.f32 %v1783_v54, %v11160_v0 }
 0xeff   :  { %v10148_v57 = vadd.f32 %v2113_v55, %v11298_v42  ;;  %v8873_v58 = vpop.f32.mrb[17].mxu1 }
 0xf00   :  { %1790 = vrot.lane.b32.xlu0 %v1784_v56, %s10816_s8  ;;  %v1788_v23 = vmul.f32 %v1786_v20, %v1784_v56 }
 0xf01   :  { %v2118_v59 = vmul.f32 %v10148_v57, %v11156_v11 }
 0xf03   :  { %10297 = vtanh.f32 %v2118_v59 }
 0xf05   :  { %v10296_v60 = vpop.eup %10295 }
 0xf06   :  { %v1953_v61 = vmul.f32 %v10296_v60, %v11156_v11 }
 0xf08   :  { %v1954_v62 = vadd.f32 %v1953_v61, %v11160_v0 }
 0xf0a   :  { %1957 = vrot.lane.b32.xlu1 %v1954_v62, %s10816_s8  ;;  %v1955_v26 = vmul.f32 %v1954_v62, %v11322_v21 }
 0xf0d   :  { %v10298_v63 = vpop.eup %10297 }
 0xf0e   :  { %v2120_v2 = vmul.f32 %v10298_v63, %v11156_v11 }
 0xf10   :  { %v2121_v3 = vadd.f32 %v2120_v2, %v11160_v0 }
 0xf12   :  { %2124 = vrot.lane.b32.xlu1 %v2121_v3, %s10816_s8  ;;  %v2122_v32 = vmul.f32 %v2121_v3, %v11325_v25 }
 0xf72   :  { %v1791_v5 = vpop.permute.xlu0 %1790 }
 0xf73   :  { %v1793_v7 = vmul.f32 %v1791_v5, %v1784_v56 }
 0xf75   :  { %1795 = vrot.lane.b32.xlu0 %v1793_v7, %s10817_s4 }
 0xf7c   :  { %v1958_v12 = vpop.permute.xlu1 %1957 }
 0xf7d   :  { %v1960_v13 = vmul.f32 %v1958_v12, %v1954_v62 }
 0xf7f   :  { %1962 = vrot.lane.b32.xlu0 %v1960_v13, %s10817_s4 }
 0xf84   :  { %v2125_v15 = vpop.permute.xlu1 %2124 }
 0xf85   :  { %v2127_v19 = vmul.f32 %v2125_v15, %v2121_v3 }
 0xf87   :  { %2129 = vrot.lane.b32.xlu1 %v2127_v19, %s10817_s4 }
 0xfe7   :  { %v1796_v24 = vpop.permute.xlu0 %1795 }
 0xfe8   :  { %v11390_v1 = vadd.f32 %v1796_v24, %v1788_v23 }
 0xfea   :  { %10299 = vtanh.f32 %v11390_v1 }
 0xff1   :  { %v1963_v4 = vpop.permute.xlu0 %1962 }
 0xff2   :  { %v11394_v27 = vadd.f32 %v1963_v4, %v1955_v26 }
 0xff4   :  { %v10300_v31 = vpop.eup %10299  ;;  %10301 = vtanh.f32 %v11394_v27 }
 0xff5   :  { %1801 = vrot.lane.b32.xlu0 %v10300_v31, %s10816_s8 }
 0xff9   :  { %v2130_v33 = vpop.permute.xlu1 %2129 }
 0xffa   :  { %v11399_v14 = vadd.f32 %v2130_v33, %v2122_v32  ;;  %v2225_v32 = vrot.slane %v11390_v1, 7 }
 0xffc   :  { %10303 = vtanh.f32 %v11399_v14 }
 0xffe   :  { %v10302_v35 = vpop.eup %10301 }
 0xfff   :  { %1968 = vrot.lane.b32.xlu1 %v10302_v35, %s10816_s8 }
0x1006   :  { %v10304_v38 = vpop.eup %10303 }
0x1007   :  { %2135 = vrot.lane.b32.xlu0 %v10304_v38, %s10816_s8 }
0x1067   :  { %v1802_v21 = vpop.permute.xlu0 %1801 }
0x1068   :  { %v1804_v39 = vmul.f32 %v1802_v21, %v1784_v56 }
0x106a   :  { %v2141_v41 = vrot.slane %v1804_v39, 3 }
0x106c   :  { %2142 = vrot.lane.b32.xlu1 %v2141_v41, %s10817_s4 }
0x1071   :  { %v1969_v43 = vpop.permute.xlu1 %1968 }
0x1072   :  { %v1971_v44 = vmul.f32 %v1969_v43, %v1954_v62 }
0x1074   :  { %2315 = vrot.lane.b32.xlu0 %v1971_v44, %s10817_s4 }
0x1079   :  { %v2136_v25 = vpop.permute.xlu0 %2135 }
0x107a   :  { %v11406_v45 = vmul.f32 %v2136_v25, %v2121_v3 }
0x107c   :  { %2482 = vrot.lane.b32.xlu1 %v11406_v45, %s10817_s4 }
0x10de   :  { %v2143_v47 = vpop.permute.xlu1 %2142 }
0x10df   :  { %8883 = vmatmul.mubr.msk.f32.vlgmr.msra.gmra.mrb[12].mxu0 %vm518_vm9, %v2143_v47  ;;  %8894 = vmatmul.mubr.msk.f32.vlgmr.msra.gmra.mrb[18].mxu1 %vm518_vm9, %v2143_v47 }
0x10e0   :  { %9756 = vmatpush3.bf16.msra.mxu0 %v11239_v10  ;;  %9750 = vmatpush3.bf16.msra.mxu1 %v11191_v36 }
0x10e1   :  { %9757 = vmatprep.subr.bf16.mxu0 %v10813_v18  ;;  %9751 = vmatprep.subr.bf16.mxu1 %v10813_v18 }
0x10e2   :  { %8915 = vmatprep.mubr.msk.f32.mxu0 %vm10814_vm10, %v10812_v8  ;;  %8904 = vmatprep.mubr.msk.f32.mxu1 %vm10814_vm10, %v10812_v8 }
0x10e4   :  { %9759 = vmatpush3.bf16.msra.mxu0 %v11251_v16  ;;  %9753 = vmatpush3.bf16.msra.mxu1 %v11196_v40 }
0x10e5   :  { %9760 = vmatprep.subr.bf16.mxu0 %v10813_v18  ;;  %9766 = vmatprep.subr.bf16.mxu1 %v10813_v18 }
0x10e6   :  { %v2316_v48 = vpop.permute.xlu0 %2315 }
0x10e7   :  { %8916 = vmatmul.mubr.msk.f32.vlgmr.msra.gmra.mrb[14].mxu0 %vm518_vm9, %v2316_v48  ;;  %8905 = vmatmul.mubr.msk.f32.vlgmr.msra.gmra.mrb[18].mxu1 %vm518_vm9, %v2316_v48 }
0x10e8   :  { %9762 = vmatpush3.bf16.msra.mxu0 %v11259_v29  ;;  %8926 = vmatprep.mubr.msk.f32.mxu0 %vm10814_vm10, %v10812_v8 }
0x10e9   :  { %9763 = vmatprep.subr.bf16.mxu0 %v10813_v18  ;;  %9768 = vmatpush3.bf16.msra.mxu1 %v11124_v17 }
0x10ea   :  { %9769 = vmatprep.subr.bf16.mxu1 %v10813_v18  ;;  %8937 = vmatprep.mubr.msk.f32.mxu1 %vm10814_vm10, %v10812_v8 }
0x10ec   :  { %9765 = vmatpush3.bf16.msra.mxu0 %v11267_v34 }
0x10ed   :  { %9772 = vmatprep.subr.bf16.mxu0 %v10813_v18  ;;  %9771 = vmatpush3.bf16.msra.mxu1 %v11129_v22 }
0x10ee   :  { %v2483_v49 = vpop.permute.xlu1 %2482  ;;  %9784 = vmatprep.subr.bf16.mxu1 %v10813_v18 }
0x10ef   :  { %8927 = vmatmul.mubr.msk.f32.vlgmr.msra.gmra.mrb[14].mxu0 %vm518_vm9, %v2483_v49 }
0x10f0   :  { %9774 = vmatpush3.bf16.msra.mxu0 %v11178_v28  ;;  %8948 = vmatprep.mubr.msk.f32.mxu0 %vm10814_vm10, %v10812_v8 }
0x10f1   :  { %9775 = vmatprep.subr.bf16.mxu0 %v10813_v18 }
0x10f4   :  { %9777 = vmatpush3.bf16.msra.mxu0 %v11184_v30 }
0x10f5   :  { %9778 = vmatprep.subr.bf16.mxu0 %v10813_v18 }
0x11b2   :  { %v2212_v50 = vpop.f32.mrb[12].mxu0 }
0x11b3   :  { %v2217_v51 = vrot.slane %v2212_v50, 4  ;;  %v8884_v52 = vpop.f32.mrb[13].mxu0 }
0x11b5   :  { %v2219_v53 = vadd.f32 %v2217_v51, %v11154_v9 }
0x11b7   :  { %v2220_v54 = vmul.f32 %v2219_v53, %v11156_v11  ;;  %v2139_v53 = vmax.f32 %v11332_v37, %v11406_v45 }
0x11b9   :  { %10305 = vtanh.f32 %v2220_v54 }
0x11ba   :  { %v2385_v55 = vpop.f32.mrb[18].mxu1 }
0x11bb   :  { %v10149_v56 = vadd.f32 %v2385_v55, %v11214_v46  ;;  %v8906_v57 = vpop.f32.mrb[19].mxu1 }
0x11bd   :  { %v2390_v58 = vmul.f32 %v10149_v56, %v11156_v11 }
0x11bf   :  { %10307 = vtanh.f32 %v2390_v58 }
0x11c2   :  { %v2552_v59 = vpop.f32.mrb[14].mxu0 }
0x11c3   :  { %v10306_v60 = vpop.eup %10305  ;;  %v10150_v61 = vadd.f32 %v2552_v59, %v11298_v42  ;;  %v8928_v62 = vpop.f32.mrb[15].mxu0 }
0x11c4   :  { %v2222_v63 = vmul.f32 %v10306_v60, %v11156_v11 }
0x11c5   :  { %v2557_v2 = vmul.f32 %v10150_v61, %v11156_v11 }
0x11c6   :  { %v2223_v3 = vadd.f32 %v2222_v63, %v11160_v0 }
0x11c7   :  { %10309 = vtanh.f32 %v2557_v2 }
0x11c8   :  { %2229 = vrot.lane.b32.xlu0 %v2223_v3, %s10816_s8  ;;  %v2227_v33 = vmul.f32 %v2225_v32, %v2223_v3 }
0x11c9   :  { %v10308_v5 = vpop.eup %10307 }
0x11ca   :  { %v2392_v7 = vmul.f32 %v10308_v5, %v11156_v11 }
0x11cc   :  { %v2393_v12 = vadd.f32 %v2392_v7, %v11160_v0 }
0x11ce   :  { %2396 = vrot.lane.b32.xlu1 %v2393_v12, %s10816_s8  ;;  %v2394_v21 = vmul.f32 %v2393_v12, %v11394_v27 }
0x11d1   :  { %v10310_v13 = vpop.eup %10309 }
0x11d2   :  { %v2559_v15 = vmul.f32 %v10310_v13, %v11156_v11 }
0x11d4   :  { %v2560_v19 = vadd.f32 %v2559_v15, %v11160_v0 }
0x11d6   :  { %2563 = vrot.lane.b32.xlu0 %v2560_v19, %s10816_s8  ;;  %v2561_v44 = vmul.f32 %v2560_v19, %v11399_v14 }
0x123a   :  { %v2230_v20 = vpop.permute.xlu0 %2229 }
0x123b   :  { %v2232_v23 = vmul.f32 %v2230_v20, %v2223_v3 }
0x123d   :  { %2234 = vrot.lane.b32.xlu1 %v2232_v23, %s10817_s4 }
0x1240   :  { %v2397_v24 = vpop.permute.xlu1 %2396 }
0x1241   :  { %v2399_v26 = vmul.f32 %v2397_v24, %v2393_v12 }
0x1243   :  { %2401 = vrot.lane.b32.xlu0 %v2399_v26, %s10817_s4 }
0x1248   :  { %v2564_v4 = vpop.permute.xlu0 %2563 }
0x1249   :  { %v2566_v31 = vmul.f32 %v2564_v4, %v2560_v19 }
0x124b   :  { %2568 = vrot.lane.b32.xlu1 %v2566_v31, %s10817_s4 }
0x12af   :  { %v2235_v35 = vpop.permute.xlu1 %2234 }
0x12b0   :  { %v11464_v38 = vadd.f32 %v2235_v35, %v2227_v33 }
0x12b2   :  { %10311 = vtanh.f32 %v11464_v38 }
0x12b5   :  { %v2402_v39 = vpop.permute.xlu0 %2401 }
0x12b6   :  { %v11468_v41 = vadd.f32 %v2402_v39, %v2394_v21 }
0x12b8   :  { %10313 = vtanh.f32 %v11468_v41 }
0x12bc   :  { %v10312_v43 = vpop.eup %10311 }
0x12bd   :  { %v2569_v25 = vpop.permute.xlu1 %2568  ;;  %2240 = vrot.lane.b32.xlu0 %v10312_v43, %s10816_s8 }
0x12be   :  { %v11473_v1 = vadd.f32 %v2569_v25, %v2561_v44  ;;  %v2664_v25 = vrot.slane %v11464_v38, 7 }
0x12c0   :  { %10315 = vtanh.f32 %v11473_v1 }
0x12c2   :  { %v10314_v47 = vpop.eup %10313 }
0x12c3   :  { %2407 = vrot.lane.b32.xlu1 %v10314_v47, %s10816_s8 }
0x12ca   :  { %v10316_v48 = vpop.eup %10315 }
0x12cb   :  { %2574 = vrot.lane.b32.xlu0 %v10316_v48, %s10816_s8 }
0x132f   :  { %v2241_v27 = vpop.permute.xlu0 %2240 }
0x1330   :  { %v2243_v49 = vmul.f32 %v2241_v27, %v2223_v3 }
0x1332   :  { %v2580_v50 = vrot.slane %v2243_v49, 4 }
0x1334   :  { %2581 = vrot.lane.b32.xlu1 %v2580_v50, %s10817_s4 }
0x1335   :  { %v2408_v51 = vpop.permute.xlu1 %2407 }
0x1336   :  { %v2410_v14 = vmul.f32 %v2408_v51, %v2393_v12 }
0x1338   :  { %2754 = vrot.lane.b32.xlu0 %v2410_v14, %s10817_s4 }
0x133d   :  { %v2575_v52 = vpop.permute.xlu0 %2574 }
0x133e   :  { %v2577_v54 = vmul.f32 %v2575_v52, %v2560_v19 }
0x1340   :  { %v11482_v55 = vmax.f32 %v2139_v53, %v2577_v54  ;;  %2921 = vrot.lane.b32.xlu1 %v2577_v54, %s10817_s4 }
0x13a6   :  { %v2582_v56 = vpop.permute.xlu1 %2581 }
0x13a7   :  { %8938 = vmatmul.mubr.msk.f32.vlgmr.msra.gmra.mrb[20].mxu1 %vm518_vm9, %v2582_v56  ;;  %8949 = vmatmul.mubr.msk.f32.vlgmr.msra.gmra.mrb[16].mxu0 %vm518_vm9, %v2582_v56 }
0x13a8   :  { %9786 = vmatpush3.bf16.msra.mxu1 %v11239_v10  ;;  %9780 = vmatpush3.bf16.msra.mxu0 %v11191_v36 }
0x13a9   :  { %9787 = vmatprep.subr.bf16.mxu1 %v10813_v18  ;;  %9781 = vmatprep.subr.bf16.mxu0 %v10813_v18 }
0x13aa   :  { %8970 = vmatprep.mubr.msk.f32.mxu1 %vm10814_vm10, %v10812_v8  ;;  %8959 = vmatprep.mubr.msk.f32.mxu0 %vm10814_vm10, %v10812_v8  ;;  %v2755_v37 = vpop.permute.xlu0 %2754 }
0x13ac   :  { %9789 = vmatpush3.bf16.msra.mxu1 %v11251_v16  ;;  %9783 = vmatpush3.bf16.msra.mxu0 %v11196_v40 }
0x13ad   :  { %9790 = vmatprep.subr.bf16.mxu1 %v10813_v18  ;;  %9796 = vmatprep.subr.bf16.mxu0 %v10813_v18 }
0x13af   :  { %8971 = vmatmul.mubr.msk.f32.vlgmr.msra.gmra.mrb[22].mxu1 %vm518_vm9, %v2755_v37  ;;  %8960 = vmatmul.mubr.msk.f32.vlgmr.msra.gmra.mrb[16].mxu0 %vm518_vm9, %v2755_v37 }
0x13b0   :  { %9792 = vmatpush3.bf16.msra.mxu1 %v11259_v29  ;;  %8981 = vmatprep.mubr.msk.f32.mxu1 %vm10814_vm10, %v10812_v8 }
0x13b1   :  { %9793 = vmatprep.subr.bf16.mxu1 %v10813_v18  ;;  %9798 = vmatpush3.bf16.msra.mxu0 %v11124_v17 }
0x13b2   :  { %9799 = vmatprep.subr.bf16.mxu0 %v10813_v18  ;;  %8992 = vmatprep.mubr.msk.f32.mxu0 %vm10814_vm10, %v10812_v8  ;;  %v2922_v45 = vpop.permute.xlu1 %2921 }
0x13b4   :  { %9795 = vmatpush3.bf16.msra.mxu1 %v11267_v34 }
0x13b5   :  { %9802 = vmatprep.subr.bf16.mxu1 %v10813_v18  ;;  %9801 = vmatpush3.bf16.msra.mxu0 %v11129_v22 }
0x13b6   :  { %9814 = vmatprep.subr.bf16.mxu0 %v10813_v18 }
0x13b7   :  { %8982 = vmatmul.mubr.msk.f32.vlgmr.msra.gmra.mrb[22].mxu1 %vm518_vm9, %v2922_v45 }
0x13b8   :  { %9804 = vmatpush3.bf16.msra.mxu1 %v11178_v28  ;;  %9003 = vmatprep.mubr.msk.f32.mxu1 %vm10814_vm10, %v10812_v8 }
0x13b9   :  { %9805 = vmatprep.subr.bf16.mxu1 %v10813_v18 }
0x13bc   :  { %9807 = vmatpush3.bf16.msra.mxu1 %v11184_v30 }
0x13bd   :  { %9808 = vmatprep.subr.bf16.mxu1 %v10813_v18 }
0x147a   :  { %v2651_v57 = vpop.f32.mrb[20].mxu1 }
0x147b   :  { %v2656_v58 = vrot.slane %v2651_v57, 3  ;;  %v8939_v59 = vpop.f32.mrb[21].mxu1 }
0x147d   :  { %v2658_v60 = vadd.f32 %v2656_v58, %v11154_v9 }
0x147f   :  { %v2659_v61 = vmul.f32 %v2658_v60, %v11156_v11 }
0x1481   :  { %10317 = vtanh.f32 %v2659_v61 }
0x1482   :  { %v2824_v62 = vpop.f32.mrb[16].mxu0 }
0x1483   :  { %v10151_v63 = vadd.f32 %v2824_v62, %v11214_v46  ;;  %v8961_v2 = vpop.f32.mrb[17].mxu0 }
0x1485   :  { %v2829_v3 = vmul.f32 %v10151_v63, %v11156_v11 }
0x1487   :  { %10319 = vtanh.f32 %v2829_v3 }
0x148a   :  { %v2991_v5 = vpop.f32.mrb[22].mxu1 }
0x148b   :  { %v10318_v7 = vpop.eup %10317  ;;  %v10152_v12 = vadd.f32 %v2991_v5, %v11298_v42  ;;  %v8983_v13 = vpop.f32.mrb[23].mxu1 }
0x148c   :  { %v2661_v15 = vmul.f32 %v10318_v7, %v11156_v11 }
0x148d   :  { %v2996_v19 = vmul.f32 %v10152_v12, %v11156_v11 }
0x148e   :  { %v2662_v20 = vadd.f32 %v2661_v15, %v11160_v0 }
0x148f   :  { %10321 = vtanh.f32 %v2996_v19 }
0x1490   :  { %2668 = vrot.lane.b32.xlu0 %v2662_v20, %s10816_s8  ;;  %v2666_v47 = vmul.f32 %v2664_v25, %v2662_v20 }
0x1491   :  { %v10320_v23 = vpop.eup %10319 }
0x1492   :  { %v2831_v24 = vmul.f32 %v10320_v23, %v11156_v11 }
0x1494   :  { %v2832_v26 = vadd.f32 %v2831_v24, %v11160_v0 }
0x1496   :  { %2835 = vrot.lane.b32.xlu1 %v2832_v26, %s10816_s8  ;;  %v2833_v49 = vmul.f32 %v2832_v26, %v11468_v41 }
0x1499   :  { %v10322_v4 = vpop.eup %10321 }
0x149a   :  { %v2998_v31 = vmul.f32 %v10322_v4, %v11156_v11 }
0x149c   :  { %v2999_v32 = vadd.f32 %v2998_v31, %v11160_v0 }
0x149e   :  { %3002 = vrot.lane.b32.xlu0 %v2999_v32, %s10816_s8  ;;  %v3000_v52 = vmul.f32 %v2999_v32, %v11473_v1 }
0x1502   :  { %v2669_v33 = vpop.permute.xlu0 %2668 }
0x1503   :  { %v2671_v35 = vmul.f32 %v2669_v33, %v2662_v20 }
0x1505   :  { %2673 = vrot.lane.b32.xlu1 %v2671_v35, %s10817_s4 }
0x1508   :  { %v2836_v21 = vpop.permute.xlu1 %2835 }
0x1509   :  { %v2838_v39 = vmul.f32 %v2836_v21, %v2832_v26 }
0x150b   :  { %2840 = vrot.lane.b32.xlu0 %v2838_v39, %s10817_s4 }
0x1510   :  { %v3003_v43 = vpop.permute.xlu0 %3002 }
0x1511   :  { %v3005_v44 = vmul.f32 %v3003_v43, %v2999_v32 }
0x1513   :  { %3007 = vrot.lane.b32.xlu1 %v3005_v44, %s10817_s4 }
0x1577   :  { %v2674_v48 = vpop.permute.xlu1 %2673 }
0x1578   :  { %v11539_v27 = vadd.f32 %v2674_v48, %v2666_v47 }
0x157a   :  { %10323 = vtanh.f32 %v11539_v27 }
0x157d   :  { %v2841_v50 = vpop.permute.xlu0 %2840 }
0x157e   :  { %v11543_v51 = vadd.f32 %v2841_v50, %v2833_v49 }
0x1580   :  { %10325 = vtanh.f32 %v11543_v51 }
0x1584   :  { %v10324_v14 = vpop.eup %10323 }
0x1585   :  { %v3008_v53 = vpop.permute.xlu1 %3007  ;;  %2679 = vrot.lane.b32.xlu0 %v10324_v14, %s10816_s8 }
0x1586   :  { %v11548_v38 = vadd.f32 %v3008_v53, %v3000_v52  ;;  %v3103_v52 = vrot.slane %v11539_v27, 7 }
0x1588   :  { %10327 = vtanh.f32 %v11548_v38 }
0x158a   :  { %v10326_v54 = vpop.eup %10325 }
0x158b   :  { %2846 = vrot.lane.b32.xlu1 %v10326_v54, %s10816_s8 }
0x1592   :  { %v10328_v56 = vpop.eup %10327 }
0x1593   :  { %3013 = vrot.lane.b32.xlu0 %v10328_v56, %s10816_s8 }
0x15f7   :  { %v2680_v41 = vpop.permute.xlu0 %2679 }
0x15f8   :  { %v2682_v37 = vmul.f32 %v2680_v41, %v2662_v20 }
0x15fa   :  { %v3019_v45 = vrot.slane %v2682_v37, 5 }
0x15fc   :  { %3020 = vrot.lane.b32.xlu1 %v3019_v45, %s10817_s4 }
0x15fd   :  { %v2847_v57 = vpop.permute.xlu1 %2846 }
0x15fe   :  { %v2849_v1 = vmul.f32 %v2847_v57, %v2832_v26 }
0x1600   :  { %3193 = vrot.lane.b32.xlu0 %v2849_v1, %s10817_s4 }
0x1605   :  { %v3014_v58 = vpop.permute.xlu0 %3013 }
0x1606   :  { %v11555_v59 = vmul.f32 %v3014_v58, %v2999_v32 }
0x1608   :  { %v3017_v60 = vmax.f32 %v11482_v55, %v11555_v59  ;;  %3360 = vrot.lane.b32.xlu1 %v11555_v59, %s10817_s4 }
0x166e   :  { %v3021_v61 = vpop.permute.xlu1 %3020 }
0x166f   :  { %8993 = vmatmul.mubr.msk.f32.vlgmr.msra.gmra.mrb[18].mxu0 %vm518_vm9, %v3021_v61  ;;  %9004 = vmatmul.mubr.msk.f32.vlgmr.msra.gmra.mrb[24].mxu1 %vm518_vm9, %v3021_v61 }
0x1670   :  { %9816 = vmatpush3.bf16.msra.mxu0 %v11239_v10  ;;  %9810 = vmatpush3.bf16.msra.mxu1 %v11191_v36 }
0x1671   :  { %9817 = vmatprep.subr.bf16.mxu0 %v10813_v18  ;;  %9811 = vmatprep.subr.bf16.mxu1 %v10813_v18 }
0x1672   :  { %9025 = vmatprep.mubr.msk.f32.mxu0 %vm10814_vm10, %v10812_v8  ;;  %9014 = vmatprep.mubr.msk.f32.mxu1 %vm10814_vm10, %v10812_v8  ;;  %v3194_v62 = vpop.permute.xlu0 %3193 }
0x1674   :  { %9819 = vmatpush3.bf16.msra.mxu0 %v11251_v16  ;;  %9813 = vmatpush3.bf16.msra.mxu1 %v11196_v40 }
0x1675   :  { %9820 = vmatprep.subr.bf16.mxu0 %v10813_v18  ;;  %9826 = vmatprep.subr.bf16.mxu1 %v10813_v18 }
0x1677   :  { %9026 = vmatmul.mubr.msk.f32.vlgmr.msra.gmra.mrb[20].mxu0 %vm518_vm9, %v3194_v62  ;;  %9015 = vmatmul.mubr.msk.f32.vlgmr.msra.gmra.mrb[24].mxu1 %vm518_vm9, %v3194_v62 }
0x1678   :  { %9822 = vmatpush3.bf16.msra.mxu0 %v11259_v29  ;;  %9036 = vmatprep.mubr.msk.f32.mxu0 %vm10814_vm10, %v10812_v8 }
0x1679   :  { %9823 = vmatprep.subr.bf16.mxu0 %v10813_v18  ;;  %9828 = vmatpush3.bf16.msra.mxu1 %v11124_v17 }
0x167a   :  { %9829 = vmatprep.subr.bf16.mxu1 %v10813_v18  ;;  %9047 = vmatprep.mubr.msk.f32.mxu1 %vm10814_vm10, %v10812_v8  ;;  %v3361_v63 = vpop.permute.xlu1 %3360 }
0x167c   :  { %9825 = vmatpush3.bf16.msra.mxu0 %v11267_v34 }
0x167d   :  { %9832 = vmatprep.subr.bf16.mxu0 %v10813_v18  ;;  %9831 = vmatpush3.bf16.msra.mxu1 %v11129_v22 }
0x167e   :  { %9844 = vmatprep.subr.bf16.mxu1 %v10813_v18 }
0x167f   :  { %9037 = vmatmul.mubr.msk.f32.vlgmr.msra.gmra.mrb[20].mxu0 %vm518_vm9, %v3361_v63 }
0x1680   :  { %9834 = vmatpush3.bf16.msra.mxu0 %v11178_v28  ;;  %9058 = vmatprep.mubr.msk.f32.mxu0 %vm10814_vm10, %v10812_v8 }
0x1681   :  { %9835 = vmatprep.subr.bf16.mxu0 %v10813_v18 }
0x1684   :  { %9837 = vmatpush3.bf16.msra.mxu0 %v11184_v30 }
0x1685   :  { %9838 = vmatprep.subr.bf16.mxu0 %v10813_v18 }
0x1742   :  { %v3090_v2 = vpop.f32.mrb[18].mxu0 }
0x1743   :  { %v3095_v3 = vrot.slane %v3090_v2, 2  ;;  %v8994_v5 = vpop.f32.mrb[19].mxu0 }
0x1745   :  { %v3097_v7 = vadd.f32 %v3095_v3, %v11154_v9 }
0x1747   :  { %v3098_v12 = vmul.f32 %v3097_v7, %v11156_v11 }
0x1749   :  { %10329 = vtanh.f32 %v3098_v12 }
0x174a   :  { %v3263_v13 = vpop.f32.mrb[24].mxu1 }
0x174b   :  { %v10153_v15 = vadd.f32 %v3263_v13, %v11214_v46  ;;  %v9016_v19 = vpop.f32.mrb[25].mxu1 }
0x174d   :  { %v3268_v20 = vmul.f32 %v10153_v15, %v11156_v11 }
0x174f   :  { %10331 = vtanh.f32 %v3268_v20 }
0x1752   :  { %v3430_v23 = vpop.f32.mrb[20].mxu0 }
0x1753   :  { %v10330_v24 = vpop.eup %10329  ;;  %v10154_v26 = vadd.f32 %v3430_v23, %v11298_v42  ;;  %v9038_v4 = vpop.f32.mrb[21].mxu0 }
0x1754   :  { %v3100_v31 = vmul.f32 %v10330_v24, %v11156_v11 }
0x1755   :  { %v3435_v32 = vmul.f32 %v10154_v26, %v11156_v11  ;;  %v11674_v26 = vld [vmem:[#allocation19 + $0x1] sm:$0x1] }
0x1756   :  { %v3101_v33 = vadd.f32 %v3100_v31, %v11160_v0 }
0x1757   :  { %10333 = vtanh.f32 %v3435_v32 }
0x1758   :  { %3107 = vrot.lane.b32.xlu0 %v3101_v33, %s10816_s8  ;;  %v3105_v53 = vmul.f32 %v3103_v52, %v3101_v33 }
0x1759   :  { %v10332_v35 = vpop.eup %10331 }
0x175a   :  { %v3270_v46 = vmul.f32 %v10332_v35, %v11156_v11 }
0x175c   :  { %v3271_v21 = vadd.f32 %v3270_v46, %v11160_v0 }
0x175e   :  { %3274 = vrot.lane.b32.xlu1 %v3271_v21, %s10816_s8  ;;  %v3272_v41 = vmul.f32 %v3271_v21, %v11543_v51 }
0x1761   :  { %v10334_v39 = vpop.eup %10333 }
0x1762   :  { %v3437_v43 = vmul.f32 %v10334_v39, %v11156_v11 }
0x1764   :  { %v3438_v44 = vadd.f32 %v3437_v43, %v11160_v0 }
0x1766   :  { %3441 = vrot.lane.b32.xlu0 %v3438_v44, %s10816_s8  ;;  %v3439_v1 = vmul.f32 %v3438_v44, %v11548_v38 }
0x17ca   :  { %v3108_v25 = vpop.permute.xlu0 %3107 }
0x17cb   :  { %v3110_v47 = vmul.f32 %v3108_v25, %v3101_v33 }
0x17cd   :  { %3112 = vrot.lane.b32.xlu1 %v3110_v47, %s10817_s4 }
0x17d0   :  { %v3275_v48 = vpop.permute.xlu1 %3274 }
0x17d1   :  { %v3277_v49 = vmul.f32 %v3275_v48, %v3271_v21 }
0x17d3   :  { %3279 = vrot.lane.b32.xlu0 %v3277_v49, %s10817_s4 }
0x17d8   :  { %v3442_v50 = vpop.permute.xlu0 %3441 }
0x17d9   :  { %v3444_v14 = vmul.f32 %v3442_v50, %v3438_v44 }
0x17db   :  { %3446 = vrot.lane.b32.xlu1 %v3444_v14, %s10817_s4 }
0x183f   :  { %v3113_v54 = vpop.permute.xlu1 %3112 }
0x1840   :  { %v11615_v56 = vadd.f32 %v3113_v54, %v3105_v53 }
0x1842   :  { %10335 = vtanh.f32 %v11615_v56 }
0x1845   :  { %v3280_v37 = vpop.permute.xlu0 %3279 }
0x1846   :  { %v11619_v45 = vadd.f32 %v3280_v37, %v3272_v41  ;;  %v3542_v37 = vrot.slane %v11615_v56, 7 }
0x1848   :  { %10337 = vtanh.f32 %v11619_v45 }
0x184c   :  { %v10336_v57 = vpop.eup %10335 }
0x184d   :  { %v3447_v58 = vpop.permute.xlu1 %3446  ;;  %3118 = vrot.lane.b32.xlu0 %v10336_v57, %s10816_s8 }
0x184e   :  { %v11624_v27 = vadd.f32 %v3447_v58, %v3439_v1 }
0x1850   :  { %10339 = vtanh.f32 %v11624_v27 }
0x1852   :  { %v10338_v61 = vpop.eup %10337 }
0x1853   :  { %3285 = vrot.lane.b32.xlu1 %v10338_v61, %s10816_s8 }
0x185a   :  { %v10340_v62 = vpop.eup %10339 }
0x185b   :  { %3452 = vrot.lane.b32.xlu0 %v10340_v62, %s10816_s8 }
0x18bf   :  { %v3119_v51 = vpop.permute.xlu0 %3118 }
0x18c0   :  { %v3121_v63 = vmul.f32 %v3119_v51, %v3101_v33 }
0x18c2   :  { %v3458_v2 = vrot.slane %v3121_v63, 6 }
0x18c4   :  { %3459 = vrot.lane.b32.xlu1 %v3458_v2, %s10817_s4 }
0x18c5   :  { %v3286_v3 = vpop.permute.xlu1 %3285 }
0x18c6   :  { %v3288_v38 = vmul.f32 %v3286_v3, %v3271_v21 }
0x18c8   :  { %3632 = vrot.lane.b32.xlu0 %v3288_v38, %s10817_s4 }
0x18cd   :  { %v3453_v5 = vpop.permute.xlu0 %3452 }
0x18ce   :  { %v3455_v7 = vmul.f32 %v3453_v5, %v3438_v44 }
0x18d0   :  { %v11634_v12 = vmax.f32 %v3017_v60, %v3455_v7  ;;  %3799 = vrot.lane.b32.xlu1 %v3455_v7, %s10817_s4 }
0x1936   :  { %v3460_v13 = vpop.permute.xlu1 %3459 }
0x1937   :  { %9048 = vmatmul.mubr.msk.f32.vlgmr.msra.gmra.mrb[26].mxu1 %vm518_vm9, %v3460_v13  ;;  %9059 = vmatmul.mubr.msk.f32.vlgmr.msra.gmra.mrb[22].mxu0 %vm518_vm9, %v3460_v13 }
0x1938   :  { %9846 = vmatpush3.bf16.msra.mxu1 %v11239_v10  ;;  %9840 = vmatpush3.bf16.msra.mxu0 %v11191_v36 }
0x1939   :  { %9847 = vmatprep.subr.bf16.mxu1 %v10813_v18  ;;  %9841 = vmatprep.subr.bf16.mxu0 %v10813_v18 }
0x193a   :  { %9080 = vmatprep.mubr.msk.f32.mxu1 %vm10814_vm10, %v10812_v8  ;;  %9069 = vmatprep.mubr.msk.f32.mxu0 %vm10814_vm10, %v10812_v8  ;;  %v3633_v55 = vpop.permute.xlu0 %3632 }
0x193c   :  { %9849 = vmatpush3.bf16.msra.mxu1 %v11251_v16  ;;  %9843 = vmatpush3.bf16.msra.mxu0 %v11196_v40 }
0x193d   :  { %9850 = vmatprep.subr.bf16.mxu1 %v10813_v18  ;;  %9856 = vmatprep.subr.bf16.mxu0 %v10813_v18 }
0x193f   :  { %9081 = vmatmul.mubr.msk.f32.vlgmr.msra.gmra.mrb[28].mxu1 %vm518_vm9, %v3633_v55  ;;  %9070 = vmatmul.mubr.msk.f32.vlgmr.msra.gmra.mrb[22].mxu0 %vm518_vm9, %v3633_v55 }
0x1940   :  { %9852 = vmatpush3.bf16.msra.mxu1 %v11259_v29  ;;  %9091 = vmatprep.mubr.msk.f32.mxu1 %vm10814_vm10, %v10812_v8 }
0x1941   :  { %9853 = vmatprep.subr.bf16.mxu1 %v10813_v18  ;;  %9858 = vmatpush3.bf16.msra.mxu0 %v11124_v17 }
0x1942   :  { %9859 = vmatprep.subr.bf16.mxu0 %v10813_v18  ;;  %9102 = vmatprep.mubr.msk.f32.mxu0 %vm10814_vm10, %v10812_v8  ;;  %v3800_v59 = vpop.permute.xlu1 %3799 }
0x1944   :  { %9855 = vmatpush3.bf16.msra.mxu1 %v11267_v34 }
0x1945   :  { %9862 = vmatprep.subr.bf16.mxu1 %v10813_v18  ;;  %9861 = vmatpush3.bf16.msra.mxu0 %v11129_v22 }
0x1946   :  { %9874 = vmatprep.subr.bf16.mxu0 %v10813_v18 }
0x1947   :  { %9092 = vmatmul.mubr.msk.f32.vlgmr.msra.gmra.mrb[28].mxu1 %vm518_vm9, %v3800_v59 }
0x1948   :  { %9864 = vmatpush3.bf16.msra.mxu1 %v11178_v28  ;;  %9113 = vmatprep.mubr.msk.f32.mxu1 %vm10814_vm10, %v10812_v8 }
0x1949   :  { %9865 = vmatprep.subr.bf16.mxu1 %v10813_v18 }
0x194c   :  { %9867 = vmatpush3.bf16.msra.mxu1 %v11184_v30 }
0x194d   :  { %9868 = vmatprep.subr.bf16.mxu1 %v10813_v18 }
0x1a0a   :  { %v3529_v60 = vpop.f32.mrb[26].mxu1 }
0x1a0b   :  { %v3534_v15 = vrot.slane %v3529_v60, 1  ;;  %v9049_v19 = vpop.f32.mrb[27].mxu1 }
0x1a0d   :  { %v3536_v20 = vadd.f32 %v3534_v15, %v11154_v9 }
0x1a0f   :  { %v3537_v23 = vmul.f32 %v3536_v20, %v11156_v11 }
0x1a11   :  { %10341 = vtanh.f32 %v3537_v23 }
0x1a12   :  { %v3702_v24 = vpop.f32.mrb[22].mxu0 }
0x1a13   :  { %v10155_v4 = vadd.f32 %v11674_v26, %v3702_v24  ;;  %v9071_v31 = vpop.f32.mrb[23].mxu0 }
0x1a15   :  { %v3707_v32 = vmul.f32 %v10155_v4, %v11156_v11 }
0x1a17   :  { %10343 = vtanh.f32 %v3707_v32 }
0x1a1a   :  { %v3869_v33 = vpop.f32.mrb[28].mxu1 }
0x1a1b   :  { %v10342_v35 = vpop.eup %10341  ;;  %v10156_v46 = vadd.f32 %v3869_v33, %v11298_v42  ;;  %v9093_v21 = vpop.f32.mrb[29].mxu1 }
0x1a1c   :  { %v3539_v39 = vmul.f32 %v10342_v35, %v11156_v11 }
0x1a1d   :  { %v3874_v9 = vmul.f32 %v10156_v46, %v11156_v11 }
0x1a1e   :  { %v3540_v43 = vadd.f32 %v3539_v39, %v11160_v0 }
0x1a1f   :  { %10345 = vtanh.f32 %v3874_v9 }
0x1a20   :  { %3546 = vrot.lane.b32.xlu0 %v3540_v43, %s10816_s8  ;;  %v3544_v57 = vmul.f32 %v3542_v37, %v3540_v43 }
0x1a21   :  { %v10344_v44 = vpop.eup %10343 }
0x1a22   :  { %v3709_v25 = vmul.f32 %v10344_v44, %v11156_v11  ;;  %v11755_v44 = vld [vmem:[#allocation19 + $0x2] sm:$0x1] }
0x1a24   :  { %v3710_v47 = vadd.f32 %v3709_v25, %v11160_v0 }
0x1a26   :  { %3713 = vrot.lane.b32.xlu1 %v3710_v47, %s10816_s8  ;;  %v3711_v61 = vmul.f32 %v3710_v47, %v11619_v45 }
0x1a29   :  { %v10346_v48 = vpop.eup %10345 }
0x1a2a   :  { %v3876_v42 = vmul.f32 %v10346_v48, %v11156_v11 }
0x1a2c   :  { %v3877_v49 = vadd.f32 %v3876_v42, %v11160_v0 }
0x1a2e   :  { %3880 = vrot.lane.b32.xlu0 %v3877_v49, %s10816_s8  ;;  %v3878_v2 = vmul.f32 %v3877_v49, %v11624_v27 }
0x1a92   :  { %v3547_v50 = vpop.permute.xlu0 %3546 }
0x1a93   :  { %v3549_v14 = vmul.f32 %v3547_v50, %v3540_v43 }
0x1a95   :  { %3551 = vrot.lane.b32.xlu1 %v3549_v14, %s10817_s4 }
0x1a98   :  { %v3714_v52 = vpop.permute.xlu1 %3713 }
0x1a99   :  { %v3716_v53 = vmul.f32 %v3714_v52, %v3710_v47 }
0x1a9b   :  { %3718 = vrot.lane.b32.xlu0 %v3716_v53, %s10817_s4 }
0x1aa0   :  { %v3881_v54 = vpop.permute.xlu0 %3880 }
0x1aa1   :  { %v3883_v41 = vmul.f32 %v3881_v54, %v3877_v49 }
0x1aa3   :  { %3885 = vrot.lane.b32.xlu1 %v3883_v41, %s10817_s4 }
0x1b07   :  { %v3552_v1 = vpop.permute.xlu1 %3551 }
0x1b08   :  { %v11693_v58 = vadd.f32 %v3552_v1, %v3544_v57 }
0x1b0a   :  { %10347 = vtanh.f32 %v11693_v58 }
0x1b0d   :  { %v3719_v62 = vpop.permute.xlu0 %3718 }
0x1b0e   :  { %v11697_v51 = vadd.f32 %v3719_v62, %v3711_v61 }
0x1b10   :  { %10349 = vtanh.f32 %v11697_v51 }
0x1b14   :  { %v10348_v63 = vpop.eup %10347 }
0x1b15   :  { %v3886_v3 = vpop.permute.xlu1 %3885  ;;  %3557 = vrot.lane.b32.xlu0 %v10348_v63, %s10816_s8  ;;  %v3978_v63 = vrot.slane %v11693_v58, 7 }
0x1b16   :  { %v11702_v56 = vadd.f32 %v3886_v3, %v3878_v2 }
0x1b18   :  { %10351 = vtanh.f32 %v11702_v56 }
0x1b1a   :  { %v10350_v38 = vpop.eup %10349 }
0x1b1b   :  { %3724 = vrot.lane.b32.xlu1 %v10350_v38, %s10816_s8 }
0x1b22   :  { %v10352_v5 = vpop.eup %10351 }
0x1b23   :  { %3891 = vrot.lane.b32.xlu0 %v10352_v5, %s10816_s8 }
0x1b87   :  { %v3558_v45 = vpop.permute.xlu0 %3557 }
0x1b88   :  { %v3560_v7 = vmul.f32 %v3558_v45, %v3540_v43 }
0x1b8a   :  { %v3897_v13 = vrot.slane %v3560_v7, 7 }
0x1b8c   :  { %3898 = vrot.lane.b32.xlu1 %v3897_v13, %s10817_s4 }
0x1b8d   :  { %v3725_v55 = vpop.permute.xlu1 %3724 }
0x1b8e   :  { %v3727_v27 = vmul.f32 %v3725_v55, %v3710_v47 }
0x1b90   :  { %4068 = vrot.lane.b32.xlu0 %v3727_v27, %s10817_s4 }
0x1b95   :  { %v3892_v59 = vpop.permute.xlu0 %3891 }
0x1b96   :  { %v11709_v60 = vmul.f32 %v3892_v59, %v3877_v49 }
0x1b98   :  { %v3895_v15 = vmax.f32 %v11634_v12, %v11709_v60  ;;  %4235 = vrot.lane.b32.xlu1 %v11709_v60, %s10817_s4 }
0x1bfe   :  { %v3899_v19 = vpop.permute.xlu1 %3898 }
0x1bff   :  { %9103 = vmatmul.mubr.msk.f32.vlgmr.msra.gmra.mrb[24].mxu0 %vm518_vm9, %v3899_v19  ;;  %9114 = vmatmul.mubr.msk.f32.vlgmr.msra.gmra.mrb[30].mxu1 %vm518_vm9, %v3899_v19 }
0x1c00   :  { %9876 = vmatpush3.bf16.msra.mxu0 %v11239_v10  ;;  %9870 = vmatpush3.bf16.msra.mxu1 %v11191_v36 }
0x1c01   :  { %9877 = vmatprep.subr.bf16.mxu0 %v10813_v18  ;;  %9871 = vmatprep.subr.bf16.mxu1 %v10813_v18 }
0x1c02   :  { %9135 = vmatprep.mubr.msk.f32.mxu0 %vm10814_vm10, %v10812_v8  ;;  %9124 = vmatprep.mubr.msk.f32.mxu1 %vm10814_vm10, %v10812_v8  ;;  %v4069_v20 = vpop.permute.xlu0 %4068 }
0x1c04   :  { %9879 = vmatpush3.bf16.msra.mxu0 %v11251_v16  ;;  %9873 = vmatpush3.bf16.msra.mxu1 %v11196_v40 }
0x1c05   :  { %9880 = vmatprep.subr.bf16.mxu0 %v10813_v18  ;;  %9886 = vmatprep.subr.bf16.mxu1 %v10813_v18 }
0x1c07   :  { %9136 = vmatmul.mubr.msk.f32.vlgmr.msra.gmra.mrb[26].mxu0 %vm518_vm9, %v4069_v20  ;;  %9125 = vmatmul.mubr.msk.f32.vlgmr.msra.gmra.mrb[30].mxu1 %vm518_vm9, %v4069_v20 }
0x1c08   :  { %9882 = vmatpush3.bf16.msra.mxu0 %v11259_v29  ;;  %9146 = vmatprep.mubr.msk.f32.mxu0 %vm10814_vm10, %v10812_v8 }
0x1c09   :  { %9883 = vmatprep.subr.bf16.mxu0 %v10813_v18  ;;  %9888 = vmatpush3.bf16.msra.mxu1 %v11124_v17 }
0x1c0a   :  { %9889 = vmatprep.subr.bf16.mxu1 %v10813_v18  ;;  %9157 = vmatprep.mubr.msk.f32.mxu1 %vm10814_vm10, %v10812_v8  ;;  %v4236_v23 = vpop.permute.xlu1 %4235 }
0x1c0c   :  { %9885 = vmatpush3.bf16.msra.mxu0 %v11267_v34 }
0x1c0d   :  { %9892 = vmatprep.subr.bf16.mxu0 %v10813_v18  ;;  %9891 = vmatpush3.bf16.msra.mxu1 %v11129_v22 }
0x1c0e   :  { %9904 = vmatprep.subr.bf16.mxu1 %v10813_v18 }
0x1c0f   :  { %9147 = vmatmul.mubr.msk.f32.vlgmr.msra.gmra.mrb[26].mxu0 %vm518_vm9, %v4236_v23 }
0x1c10   :  { %9894 = vmatpush3.bf16.msra.mxu0 %v11178_v28  ;;  %9168 = vmatprep.mubr.msk.f32.mxu0 %vm10814_vm10, %v10812_v8 }
0x1c11   :  { %9895 = vmatprep.subr.bf16.mxu0 %v10813_v18 }
0x1c14   :  { %9897 = vmatpush3.bf16.msra.mxu0 %v11184_v30 }
0x1c15   :  { %9898 = vmatprep.subr.bf16.mxu0 %v10813_v18 }
0x1cd2   :  { %v3968_v24 = vpop.f32.mrb[24].mxu0 }
0x1cd3   :  { %v3972_v4 = vadd.f32 %v3968_v24, %v11152_v6  ;;  %v9104_v31 = vpop.f32.mrb[25].mxu0 }
0x1cd5   :  { %v3973_v32 = vmul.f32 %v3972_v4, %v11156_v11 }
0x1cd7   :  { %10353 = vtanh.f32 %v3973_v32 }
0x1cda   :  { %v4138_v33 = vpop.f32.mrb[30].mxu1 }
0x1cdb   :  { %v10157_v35 = vadd.f32 %v11674_v26, %v4138_v33  ;;  %v9126_v46 = vpop.f32.mrb[31].mxu1 }
0x1cdd   :  { %v4143_v21 = vmul.f32 %v10157_v35, %v11156_v11 }
0x1cdf   :  { %10355 = vtanh.f32 %v4143_v21 }
0x1ce1   :  { %v10354_v39 = vpop.eup %10353 }
0x1ce2   :  { %v4305_v9 = vpop.f32.mrb[26].mxu0  ;;  %v3975_v43 = vmul.f32 %v10354_v39, %v11156_v11 }
0x1ce3   :  { %v10158_v25 = vadd.f32 %v11755_v44, %v4305_v9  ;;  %v9148_v47 = vpop.f32.mrb[27].mxu0 }
0x1ce4   :  { %v3976_v48 = vadd.f32 %v3975_v43, %v11160_v0 }
0x1ce5   :  { %v4310_v42 = vmul.f32 %v10158_v25, %v11156_v11 }
0x1ce6   :  { %3982 = vrot.lane.b32.xlu0 %v3976_v48, %s10816_s8  ;;  %v3980_v2 = vmul.f32 %v3978_v63, %v3976_v48 }
0x1ce7   :  { %10357 = vtanh.f32 %v4310_v42 }
0x1ce9   :  { %v10356_v49 = vpop.eup %10355 }
0x1cea   :  { %v4145_v50 = vmul.f32 %v10356_v49, %v11156_v11 }
0x1cec   :  { %v4146_v14 = vadd.f32 %v4145_v50, %v11160_v0 }
0x1cee   :  { %4149 = vrot.lane.b32.xlu1 %v4146_v14, %s10816_s8  ;;  %v4147_v5 = vmul.f32 %v4146_v14, %v11697_v51 }
0x1cf1   :  { %v10358_v52 = vpop.eup %10357 }
0x1cf2   :  { %v4312_v53 = vmul.f32 %v10358_v52, %v11156_v11 }
0x1cf4   :  { %v4313_v54 = vadd.f32 %v4312_v53, %v11160_v0 }
0x1cf6   :  { %4316 = vrot.lane.b32.xlu0 %v4313_v54, %s10816_s8  ;;  %v4314_v55 = vmul.f32 %v4313_v54, %v11702_v56 }
0x1d58   :  { %v3983_v41 = vpop.permute.xlu0 %3982 }
0x1d59   :  { %v3985_v37 = vmul.f32 %v3983_v41, %v3976_v48 }
0x1d5b   :  { %3987 = vrot.lane.b32.xlu1 %v3985_v37, %s10817_s4 }
0x1d60   :  { %v4150_v57 = vpop.permute.xlu1 %4149 }
0x1d61   :  { %v4152_v1 = vmul.f32 %v4150_v57, %v4146_v14 }
0x1d63   :  { %4154 = vrot.lane.b32.xlu0 %v4152_v1, %s10817_s4 }
0x1d68   :  { %v4317_v61 = vpop.permute.xlu0 %4316 }
0x1d69   :  { %v4319_v62 = vmul.f32 %v4317_v61, %v4313_v54 }
0x1d6b   :  { %4321 = vrot.lane.b32.xlu1 %v4319_v62, %s10817_s4 }
0x1dcd   :  { %v3988_v3 = vpop.permute.xlu1 %3987 }
0x1dce   :  { %v11771_v38 = vadd.f32 %v3988_v3, %v3980_v2 }
0x1dd0   :  { %10359 = vtanh.f32 %v11771_v38 }
0x1dd5   :  { %v4155_v45 = vpop.permute.xlu0 %4154 }
0x1dd6   :  { %v11775_v7 = vadd.f32 %v4155_v45, %v4147_v5  ;;  %v4416_v45 = vrot.slane %v11771_v38, 7 }
0x1dd8   :  { %10361 = vtanh.f32 %v11775_v7 }
0x1dda   :  { %v10360_v13 = vpop.eup %10359 }
0x1ddb   :  { %3993 = vrot.lane.b32.xlu0 %v10360_v13, %s10816_s8 }
0x1ddd   :  { %v4322_v27 = vpop.permute.xlu1 %4321 }
0x1dde   :  { %v11780_v58 = vadd.f32 %v4322_v27, %v4314_v55 }
0x1de0   :  { %10363 = vtanh.f32 %v11780_v58 }
0x1de2   :  { %v10362_v59 = vpop.eup %10361 }
0x1de3   :  { %4160 = vrot.lane.b32.xlu1 %v10362_v59, %s10816_s8 }
0x1dea   :  { %v10364_v19 = vpop.eup %10363 }
0x1deb   :  { %4327 = vrot.lane.b32.xlu0 %v10364_v19, %s10816_s8 }
0x1e4d   :  { %v3994_v51 = vpop.permute.xlu0 %3993 }
0x1e4e   :  { %v3996_v20 = vmul.f32 %v3994_v51, %v3976_v48 }
0x1e50   :  { %4333 = vrot.lane.b32.xlu1 %v3996_v20, %s10817_s4 }
0x1e55   :  { %v4161_v23 = vpop.permute.xlu1 %4160 }
0x1e56   :  { %v4163_v24 = vmul.f32 %v4161_v23, %v4146_v14 }
0x1e58   :  { %4506 = vrot.lane.b32.xlu0 %v4163_v24, %s10817_s4 }
0x1e5d   :  { %v4328_v56 = vpop.permute.xlu0 %4327 }
0x1e5e   :  { %v4330_v4 = vmul.f32 %v4328_v56, %v4313_v54 }
0x1e60   :  { %v11790_v31 = vmax.f32 %v3895_v15, %v4330_v4  ;;  %4673 = vrot.lane.b32.xlu1 %v4330_v4, %s10817_s4 }
0x1ec2   :  { %v4334_v32 = vpop.permute.xlu1 %4333 }
0x1ec3   :  { %9158 = vmatmul.mubr.msk.f32.vlgmr.msra.gmra.mrb[32].mxu1 %vm518_vm9, %v4334_v32  ;;  %9169 = vmatmul.mubr.msk.f32.vlgmr.msra.gmra.mrb[28].mxu0 %vm518_vm9, %v4334_v32 }
0x1ec4   :  { %9900 = vmatpush3.bf16.msra.mxu0 %v11191_v36  ;;  %9906 = vmatpush3.bf16.msra.mxu1 %v11239_v10 }
0x1ec5   :  { %9901 = vmatprep.subr.bf16.mxu0 %v10813_v18  ;;  %9907 = vmatprep.subr.bf16.mxu1 %v10813_v18 }
0x1ec6   :  { %9179 = vmatprep.mubr.msk.f32.mxu0 %vm10814_vm10, %v10812_v8  ;;  %9190 = vmatprep.mubr.msk.f32.mxu1 %vm10814_vm10, %v10812_v8 }
0x1ec8   :  { %9903 = vmatpush3.bf16.msra.mxu0 %v11196_v40  ;;  %9909 = vmatpush3.bf16.msra.mxu1 %v11251_v16 }
0x1ec9   :  { %9910 = vmatprep.subr.bf16.mxu1 %v10813_v18  ;;  %9916 = vmatprep.subr.bf16.mxu0 %v10813_v18 }
0x1eca   :  { %v4507_v12 = vpop.permute.xlu0 %4506 }
0x1ecb   :  { %9180 = vmatmul.mubr.msk.f32.vlgmr.msra.gmra.mrb[28].mxu0 %vm518_vm9, %v4507_v12  ;;  %9191 = vmatmul.mubr.msk.f32.vlgmr.msra.gmra.mrb[34].mxu1 %vm518_vm9, %v4507_v12 }
0x1ecc   :  { %9912 = vmatpush3.bf16.msra.mxu1 %v11259_v29  ;;  %9201 = vmatprep.mubr.msk.f32.mxu1 %vm10814_vm10, %v10812_v8 }
0x1ecd   :  { %9913 = vmatprep.subr.bf16.mxu1 %v10813_v18  ;;  %9918 = vmatpush3.bf16.msra.mxu0 %v11124_v17 }
0x1ece   :  { %9919 = vmatprep.subr.bf16.mxu0 %v10813_v18  ;;  %9212 = vmatprep.mubr.msk.f32.mxu0 %vm10814_vm10, %v10812_v8 }
0x1ed0   :  { %9915 = vmatpush3.bf16.msra.mxu1 %v11267_v34 }
0x1ed1   :  { %9922 = vmatprep.subr.bf16.mxu1 %v10813_v18  ;;  %9921 = vmatpush3.bf16.msra.mxu0 %v11129_v22 }
0x1ed2   :  { %v4674_v60 = vpop.permute.xlu1 %4673  ;;  %9934 = vmatprep.subr.bf16.mxu0 %v10813_v18 }
0x1ed3   :  { %9202 = vmatmul.mubr.msk.f32.vlgmr.msra.gmra.mrb[34].mxu1 %vm518_vm9, %v4674_v60 }
0x1ed4   :  { %9924 = vmatpush3.bf16.msra.mxu1 %v11178_v28  ;;  %9223 = vmatprep.mubr.msk.f32.mxu1 %vm10814_vm10, %v10812_v8 }
0x1ed5   :  { %9925 = vmatprep.subr.bf16.mxu1 %v10813_v18 }
0x1ed8   :  { %9927 = vmatpush3.bf16.msra.mxu1 %v11184_v30 }
0x1ed9   :  { %9928 = vmatprep.subr.bf16.mxu1 %v10813_v18 }
0x1f96   :  { %v4403_v15 = vpop.f32.mrb[32].mxu1 }
0x1f97   :  { %v4408_v33 = vrot.slane %v4403_v15, 7  ;;  %v9159_v35 = vpop.f32.mrb[33].mxu1 }
0x1f99   :  { %v4410_v46 = vadd.f32 %v4408_v33, %v11152_v6 }
0x1f9b   :  { %v4411_v21 = vmul.f32 %v4410_v46, %v11156_v11 }
0x1f9d   :  { %10365 = vtanh.f32 %v4411_v21 }
0x1f9e   :  { %v4576_v39 = vpop.f32.mrb[28].mxu0 }
0x1f9f   :  { %v10159_v9 = vadd.f32 %v11674_v26, %v4576_v39  ;;  %v9181_v43 = vpop.f32.mrb[29].mxu0 }
0x1fa1   :  { %v4581_v25 = vmul.f32 %v10159_v9, %v11156_v11 }
0x1fa3   :  { %10367 = vtanh.f32 %v4581_v25 }
0x1fa6   :  { %v4743_v47 = vpop.f32.mrb[34].mxu1 }
0x1fa7   :  { %v10366_v48 = vpop.eup %10365  ;;  %v10160_v42 = vadd.f32 %v11755_v44, %v4743_v47  ;;  %v9203_v49 = vpop.f32.mrb[35].mxu1 }
0x1fa8   :  { %v4413_v50 = vmul.f32 %v10366_v48, %v11156_v11 }
0x1fa9   :  { %v4748_v14 = vmul.f32 %v10160_v42, %v11156_v11 }
0x1faa   :  { %v4414_v52 = vadd.f32 %v4413_v50, %v11160_v0 }
0x1fab   :  { %10369 = vtanh.f32 %v4748_v14 }
0x1fac   :  { %4420 = vrot.lane.b32.xlu0 %v4414_v52, %s10816_s8  ;;  %v4418_v13 = vmul.f32 %v4416_v45, %v4414_v52 }
0x1fad   :  { %v10368_v53 = vpop.eup %10367 }
0x1fae   :  { %v4583_v54 = vmul.f32 %v10368_v53, %v11156_v11 }
0x1fb0   :  { %v4584_v41 = vadd.f32 %v4583_v54, %v11160_v0 }
0x1fb2   :  { %4587 = vrot.lane.b32.xlu1 %v4584_v41, %s10816_s8  ;;  %v4585_v59 = vmul.f32 %v4584_v41, %v11775_v7 }
0x1fb5   :  { %v10370_v37 = vpop.eup %10369 }
0x1fb6   :  { %v4750_v57 = vmul.f32 %v10370_v37, %v11156_v11 }
0x1fb8   :  { %v4751_v1 = vadd.f32 %v4750_v57, %v11160_v0 }
0x1fba   :  { %4754 = vrot.lane.b32.xlu0 %v4751_v1, %s10816_s8  ;;  %v4752_v23 = vmul.f32 %v4751_v1, %v11780_v58 }
0x201e   :  { %v4421_v61 = vpop.permute.xlu0 %4420 }
0x201f   :  { %v4423_v62 = vmul.f32 %v4421_v61, %v4414_v52 }
0x2021   :  { %4425 = vrot.lane.b32.xlu1 %v4423_v62, %s10817_s4 }
0x2024   :  { %v4588_v63 = vpop.permute.xlu1 %4587 }
0x2025   :  { %v4590_v2 = vmul.f32 %v4588_v63, %v4584_v41 }
0x2027   :  { %4592 = vrot.lane.b32.xlu0 %v4590_v2, %s10817_s4 }
0x202c   :  { %v4755_v3 = vpop.permute.xlu0 %4754 }
0x202d   :  { %v4757_v5 = vmul.f32 %v4755_v3, %v4751_v1 }
0x202f   :  { %4759 = vrot.lane.b32.xlu1 %v4757_v5, %s10817_s4 }
0x2093   :  { %v4426_v55 = vpop.permute.xlu1 %4425 }
0x2094   :  { %v11847_v27 = vadd.f32 %v4426_v55, %v4418_v13 }
0x2096   :  { %10371 = vtanh.f32 %v11847_v27 }
0x2099   :  { %v4593_v19 = vpop.permute.xlu0 %4592 }
0x209a   :  { %v11851_v51 = vadd.f32 %v4593_v19, %v4585_v59 }
0x209c   :  { %10373 = vtanh.f32 %v11851_v51 }
0x20a0   :  { %v10372_v20 = vpop.eup %10371 }
0x20a1   :  { %4431 = vrot.lane.b32.xlu0 %v10372_v20, %s10816_s8  ;;  %v4760_v24 = vpop.permute.xlu1 %4759 }
0x20a2   :  { %v11856_v38 = vadd.f32 %v4760_v24, %v4752_v23  ;;  %v4855_v23 = vrot.slane %v11847_v27, 7 }
0x20a4   :  { %10375 = vtanh.f32 %v11856_v38 }
0x20a6   :  { %v10374_v56 = vpop.eup %10373 }
0x20a7   :  { %4598 = vrot.lane.b32.xlu1 %v10374_v56, %s10816_s8 }
0x20ae   :  { %v10376_v4 = vpop.eup %10375 }
0x20af   :  { %4765 = vrot.lane.b32.xlu0 %v10376_v4, %s10816_s8 }
0x2113   :  { %v4432_v7 = vpop.permute.xlu0 %4431 }
0x2114   :  { %v4434_v32 = vmul.f32 %v4432_v7, %v4414_v52 }
0x2116   :  { %v4771_v12 = vrot.slane %v4434_v32, 1 }
0x2118   :  { %4772 = vrot.lane.b32.xlu1 %v4771_v12, %s10817_s4 }
0x2119   :  { %v4599_v60 = vpop.permute.xlu1 %4598 }
0x211a   :  { %v4601_v58 = vmul.f32 %v4599_v60, %v4584_v41 }
0x211c   :  { %4945 = vrot.lane.b32.xlu0 %v4601_v58, %s10817_s4 }
0x2121   :  { %v4766_v15 = vpop.permute.xlu0 %4765 }
0x2122   :  { %v11863_v33 = vmul.f32 %v4766_v15, %v4751_v1 }
0x2124   :  { %v4769_v35 = vmax.f32 %v11790_v31, %v11863_v33  ;;  %5112 = vrot.lane.b32.xlu1 %v11863_v33, %s10817_s4 }
0x218a   :  { %v4773_v46 = vpop.permute.xlu1 %4772 }
0x218b   :  { %9213 = vmatmul.mubr.msk.f32.vlgmr.msra.gmra.mrb[30].mxu0 %vm518_vm9, %v4773_v46  ;;  %9224 = vmatmul.mubr.msk.f32.vlgmr.msra.gmra.mrb[36].mxu1 %vm518_vm9, %v4773_v46 }
0x218c   :  { %9936 = vmatpush3.bf16.msra.mxu0 %v11239_v10  ;;  %9930 = vmatpush3.bf16.msra.mxu1 %v11191_v36 }
0x218d   :  { %9937 = vmatprep.subr.bf16.mxu0 %v10813_v18  ;;  %9931 = vmatprep.subr.bf16.mxu1 %v10813_v18 }
0x218e   :  { %9245 = vmatprep.mubr.msk.f32.mxu0 %vm10814_vm10, %v10812_v8  ;;  %9234 = vmatprep.mubr.msk.f32.mxu1 %vm10814_vm10, %v10812_v8  ;;  %v4946_v21 = vpop.permute.xlu0 %4945 }
0x2190   :  { %9939 = vmatpush3.bf16.msra.mxu0 %v11251_v16  ;;  %9933 = vmatpush3.bf16.msra.mxu1 %v11196_v40 }
0x2191   :  { %9940 = vmatprep.subr.bf16.mxu0 %v10813_v18  ;;  %9946 = vmatprep.subr.bf16.mxu1 %v10813_v18 }
0x2193   :  { %9246 = vmatmul.mubr.msk.f32.vlgmr.msra.gmra.mrb[32].mxu0 %vm518_vm9, %v4946_v21  ;;  %9235 = vmatmul.mubr.msk.f32.vlgmr.msra.gmra.mrb[36].mxu1 %vm518_vm9, %v4946_v21 }
0x2194   :  { %9942 = vmatpush3.bf16.msra.mxu0 %v11259_v29  ;;  %9256 = vmatprep.mubr.msk.f32.mxu0 %vm10814_vm10, %v10812_v8 }
0x2195   :  { %9943 = vmatprep.subr.bf16.mxu0 %v10813_v18  ;;  %9948 = vmatpush3.bf16.msra.mxu1 %v11124_v17 }
0x2196   :  { %9949 = vmatprep.subr.bf16.mxu1 %v10813_v18  ;;  %9267 = vmatprep.mubr.msk.f32.mxu1 %vm10814_vm10, %v10812_v8  ;;  %v5113_v39 = vpop.permute.xlu1 %5112 }
0x2198   :  { %9945 = vmatpush3.bf16.msra.mxu0 %v11267_v34 }
0x2199   :  { %9952 = vmatprep.subr.bf16.mxu0 %v10813_v18  ;;  %9951 = vmatpush3.bf16.msra.mxu1 %v11129_v22 }
0x219a   :  { %9964 = vmatprep.subr.bf16.mxu1 %v10813_v18 }
0x219b   :  { %9257 = vmatmul.mubr.msk.f32.vlgmr.msra.gmra.mrb[32].mxu0 %vm518_vm9, %v5113_v39 }
0x219c   :  { %9954 = vmatpush3.bf16.msra.mxu0 %v11178_v28  ;;  %9278 = vmatprep.mubr.msk.f32.mxu0 %vm10814_vm10, %v10812_v8 }
0x219d   :  { %9955 = vmatprep.subr.bf16.mxu0 %v10813_v18 }
0x21a0   :  { %9957 = vmatpush3.bf16.msra.mxu0 %v11184_v30 }
0x21a1   :  { %9958 = vmatprep.subr.bf16.mxu0 %v10813_v18 }
0x225e   :  { %v4842_v9 = vpop.f32.mrb[30].mxu0 }
0x225f   :  { %v4847_v43 = vrot.slane %v4842_v9, 6  ;;  %v9214_v25 = vpop.f32.mrb[31].mxu0 }
0x2261   :  { %v4849_v47 = vadd.f32 %v4847_v43, %v11152_v6 }
0x2263   :  { %v4850_v48 = vmul.f32 %v4849_v47, %v11156_v11 }
0x2265   :  { %10377 = vtanh.f32 %v4850_v48 }
0x2266   :  { %v5015_v42 = vpop.f32.mrb[36].mxu1 }
0x2267   :  { %v10161_v49 = vadd.f32 %v11674_v26, %v5015_v42  ;;  %v9236_v50 = vpop.f32.mrb[37].mxu1 }
0x2269   :  { %v5020_v14 = vmul.f32 %v10161_v49, %v11156_v11 }
0x226b   :  { %10379 = vtanh.f32 %v5020_v14 }
0x226e   :  { %v5182_v52 = vpop.f32.mrb[32].mxu0 }
0x226f   :  { %v10378_v53 = vpop.eup %10377  ;;  %v10162_v54 = vadd.f32 %v11755_v44, %v5182_v52  ;;  %v9258_v41 = vpop.f32.mrb[33].mxu0 }
0x2270   :  { %v4852_v37 = vmul.f32 %v10378_v53, %v11156_v11 }
0x2271   :  { %v5187_v57 = vmul.f32 %v10162_v54, %v11156_v11 }
0x2272   :  { %v4853_v1 = vadd.f32 %v4852_v37, %v11160_v0 }
0x2273   :  { %10381 = vtanh.f32 %v5187_v57 }
0x2274   :  { %4859 = vrot.lane.b32.xlu0 %v4853_v1, %s10816_s8  ;;  %v4857_v24 = vmul.f32 %v4855_v23, %v4853_v1 }
0x2275   :  { %v10380_v61 = vpop.eup %10379 }
0x2276   :  { %v5022_v62 = vmul.f32 %v10380_v61, %v11156_v11 }
0x2278   :  { %v5023_v63 = vadd.f32 %v5022_v62, %v11160_v0 }
0x227a   :  { %5026 = vrot.lane.b32.xlu1 %v5023_v63, %s10816_s8  ;;  %v5024_v7 = vmul.f32 %v5023_v63, %v11851_v51 }
0x227d   :  { %v10382_v2 = vpop.eup %10381 }
0x227e   :  { %v5189_v3 = vmul.f32 %v10382_v2, %v11156_v11 }
0x2280   :  { %v5190_v5 = vadd.f32 %v5189_v3, %v11160_v0 }
0x2282   :  { %5193 = vrot.lane.b32.xlu0 %v5190_v5, %s10816_s8  ;;  %v5191_v58 = vmul.f32 %v5190_v5, %v11856_v38 }
0x22e6   :  { %v4860_v45 = vpop.permute.xlu0 %4859 }
0x22e7   :  { %v4862_v13 = vmul.f32 %v4860_v45, %v4853_v1 }
0x22e9   :  { %4864 = vrot.lane.b32.xlu1 %v4862_v13, %s10817_s4 }
0x22ec   :  { %v5027_v55 = vpop.permute.xlu1 %5026 }
0x22ed   :  { %v5029_v59 = vmul.f32 %v5027_v55, %v5023_v63 }
0x22ef   :  { %5031 = vrot.lane.b32.xlu0 %v5029_v59, %s10817_s4 }
0x22f4   :  { %v5194_v19 = vpop.permute.xlu0 %5193 }
0x22f5   :  { %v5196_v20 = vmul.f32 %v5194_v19, %v5190_v5 }
0x22f7   :  { %5198 = vrot.lane.b32.xlu1 %v5196_v20, %s10817_s4 }
0x235b   :  { %v4865_v56 = vpop.permute.xlu1 %4864 }
0x235c   :  { %v11923_v4 = vadd.f32 %v4865_v56, %v4857_v24 }
0x235e   :  { %10383 = vtanh.f32 %v11923_v4 }
0x2361   :  { %v5032_v32 = vpop.permute.xlu0 %5031 }
0x2362   :  { %v11927_v12 = vadd.f32 %v5032_v32, %v5024_v7 }
0x2364   :  { %10385 = vtanh.f32 %v11927_v12 }
0x2368   :  { %v10384_v60 = vpop.eup %10383 }
0x2369   :  { %v5199_v15 = vpop.permute.xlu1 %5198  ;;  %4870 = vrot.lane.b32.xlu0 %v10384_v60, %s10816_s8  ;;  %v5294_v60 = vrot.slane %v11923_v4, 7 }
0x236a   :  { %v11932_v27 = vadd.f32 %v5199_v15, %v5191_v58 }
0x236c   :  { %10387 = vtanh.f32 %v11932_v27 }
0x236e   :  { %v10386_v46 = vpop.eup %10385 }
0x236f   :  { %5037 = vrot.lane.b32.xlu1 %v10386_v46, %s10816_s8 }
0x2376   :  { %v10388_v21 = vpop.eup %10387 }
0x2377   :  { %5204 = vrot.lane.b32.xlu0 %v10388_v21, %s10816_s8 }
0x23db   :  { %v4871_v51 = vpop.permute.xlu0 %4870 }
0x23dc   :  { %v4873_v39 = vmul.f32 %v4871_v51, %v4853_v1 }
0x23de   :  { %v5210_v9 = vrot.slane %v4873_v39, 2 }
0x23e0   :  { %5211 = vrot.lane.b32.xlu1 %v5210_v9, %s10817_s4 }
0x23e1   :  { %v5038_v43 = vpop.permute.xlu1 %5037 }
0x23e2   :  { %v5040_v38 = vmul.f32 %v5038_v43, %v5023_v63 }
0x23e4   :  { %5384 = vrot.lane.b32.xlu0 %v5040_v38, %s10817_s4 }
0x23e9   :  { %v5205_v25 = vpop.permute.xlu0 %5204 }
0x23ea   :  { %v5207_v47 = vmul.f32 %v5205_v25, %v5190_v5 }
0x23ec   :  { %v11942_v48 = vmax.f32 %v4769_v35, %v5207_v47  ;;  %5551 = vrot.lane.b32.xlu1 %v5207_v47, %s10817_s4 }
0x2452   :  { %v5212_v42 = vpop.permute.xlu1 %5211 }
0x2453   :  { %9268 = vmatmul.mubr.msk.f32.vlgmr.msra.gmra.mrb[38].mxu1 %vm518_vm9, %v5212_v42  ;;  %9279 = vmatmul.mubr.msk.f32.vlgmr.msra.gmra.mrb[34].mxu0 %vm518_vm9, %v5212_v42 }
0x2454   :  { %9966 = vmatpush3.bf16.msra.mxu1 %v11239_v10  ;;  %9960 = vmatpush3.bf16.msra.mxu0 %v11191_v36 }
0x2455   :  { %9967 = vmatprep.subr.bf16.mxu1 %v10813_v18  ;;  %9961 = vmatprep.subr.bf16.mxu0 %v10813_v18 }
0x2456   :  { %9300 = vmatprep.mubr.msk.f32.mxu1 %vm10814_vm10, %v10812_v8  ;;  %9289 = vmatprep.mubr.msk.f32.mxu0 %vm10814_vm10, %v10812_v8  ;;  %v5385_v31 = vpop.permute.xlu0 %5384 }
0x2458   :  { %9969 = vmatpush3.bf16.msra.mxu1 %v11251_v16  ;;  %9963 = vmatpush3.bf16.msra.mxu0 %v11196_v40 }
0x2459   :  { %9970 = vmatprep.subr.bf16.mxu1 %v10813_v18  ;;  %9976 = vmatprep.subr.bf16.mxu0 %v10813_v18 }
0x245b   :  { %9301 = vmatmul.mubr.msk.f32.vlgmr.msra.gmra.mrb[40].mxu1 %vm518_vm9, %v5385_v31  ;;  %9290 = vmatmul.mubr.msk.f32.vlgmr.msra.gmra.mrb[34].mxu0 %vm518_vm9, %v5385_v31 }
0x245c   :  { %9972 = vmatpush3.bf16.msra.mxu1 %v11259_v29  ;;  %9311 = vmatprep.mubr.msk.f32.mxu1 %vm10814_vm10, %v10812_v8 }
0x245d   :  { %9973 = vmatprep.subr.bf16.mxu1 %v10813_v18  ;;  %9978 = vmatpush3.bf16.msra.mxu0 %v11124_v17 }
0x245e   :  { %9979 = vmatprep.subr.bf16.mxu0 %v10813_v18  ;;  %9322 = vmatprep.mubr.msk.f32.mxu0 %vm10814_vm10, %v10812_v8  ;;  %v5552_v33 = vpop.permute.xlu1 %5551 }
0x2460   :  { %9975 = vmatpush3.bf16.msra.mxu1 %v11267_v34 }
0x2461   :  { %9982 = vmatprep.subr.bf16.mxu1 %v10813_v18  ;;  %9981 = vmatpush3.bf16.msra.mxu0 %v11129_v22 }
0x2462   :  { %9994 = vmatprep.subr.bf16.mxu0 %v10813_v18 }
0x2463   :  { %9312 = vmatmul.mubr.msk.f32.vlgmr.msra.gmra.mrb[40].mxu1 %vm518_vm9, %v5552_v33 }
0x2464   :  { %9984 = vmatpush3.bf16.msra.mxu1 %v11178_v28  ;;  %9333 = vmatprep.mubr.msk.f32.mxu1 %vm10814_vm10, %v10812_v8 }
0x2465   :  { %9985 = vmatprep.subr.bf16.mxu1 %v10813_v18 }
0x2468   :  { %9987 = vmatpush3.bf16.msra.mxu1 %v11184_v30 }
0x2469   :  { %9988 = vmatprep.subr.bf16.mxu1 %v10813_v18 }
0x2526   :  { %v5281_v35 = vpop.f32.mrb[38].mxu1 }
0x2527   :  { %v5286_v49 = vrot.slane %v5281_v35, 5  ;;  %v9269_v50 = vpop.f32.mrb[39].mxu1 }
0x2529   :  { %v5288_v14 = vadd.f32 %v5286_v49, %v11152_v6 }
0x252b   :  { %v5289_v52 = vmul.f32 %v5288_v14, %v11156_v11 }
0x252d   :  { %10389 = vtanh.f32 %v5289_v52 }
0x252e   :  { %v5454_v53 = vpop.f32.mrb[34].mxu0 }
0x252f   :  { %v10163_v54 = vadd.f32 %v11674_v26, %v5454_v53  ;;  %v9291_v41 = vpop.f32.mrb[35].mxu0 }
0x2531   :  { %v5459_v37 = vmul.f32 %v10163_v54, %v11156_v11 }
0x2533   :  { %10391 = vtanh.f32 %v5459_v37 }
0x2536   :  { %v5621_v57 = vpop.f32.mrb[40].mxu1 }
0x2537   :  { %v10390_v1 = vpop.eup %10389  ;;  %v10164_v61 = vadd.f32 %v11755_v44, %v5621_v57  ;;  %v9313_v62 = vpop.f32.mrb[41].mxu1 }
0x2538   :  { %v5291_v63 = vmul.f32 %v10390_v1, %v11156_v11 }
0x2539   :  { %v5626_v2 = vmul.f32 %v10164_v61, %v11156_v11 }
0x253a   :  { %v5292_v3 = vadd.f32 %v5291_v63, %v11160_v0 }
0x253b   :  { %10393 = vtanh.f32 %v5626_v2 }
0x253c   :  { %5298 = vrot.lane.b32.xlu0 %v5292_v3, %s10816_s8  ;;  %v5296_v58 = vmul.f32 %v5294_v60, %v5292_v3 }
0x253d   :  { %v10392_v5 = vpop.eup %10391 }
0x253e   :  { %v5461_v45 = vmul.f32 %v10392_v5, %v11156_v11 }
0x2540   :  { %v5462_v13 = vadd.f32 %v5461_v45, %v11160_v0 }
0x2542   :  { %5465 = vrot.lane.b32.xlu1 %v5462_v13, %s10816_s8  ;;  %v5463_v21 = vmul.f32 %v5462_v13, %v11927_v12 }
0x2545   :  { %v10394_v55 = vpop.eup %10393 }
0x2546   :  { %v5628_v59 = vmul.f32 %v10394_v55, %v11156_v11 }
0x2548   :  { %v5629_v19 = vadd.f32 %v5628_v59, %v11160_v0 }
0x254a   :  { %5632 = vrot.lane.b32.xlu0 %v5629_v19, %s10816_s8  ;;  %v5630_v43 = vmul.f32 %v5629_v19, %v11932_v27 }
0x25ae   :  { %v5299_v20 = vpop.permute.xlu0 %5298 }
0x25af   :  { %v5301_v23 = vmul.f32 %v5299_v20, %v5292_v3 }
0x25b1   :  { %5303 = vrot.lane.b32.xlu1 %v5301_v23, %s10817_s4 }
0x25b4   :  { %v5466_v24 = vpop.permute.xlu1 %5465 }
0x25b5   :  { %v5468_v56 = vmul.f32 %v5466_v24, %v5462_v13 }
0x25b7   :  { %5470 = vrot.lane.b32.xlu0 %v5468_v56, %s10817_s4 }
0x25bc   :  { %v5633_v7 = vpop.permute.xlu0 %5632 }
0x25bd   :  { %v5635_v32 = vmul.f32 %v5633_v7, %v5629_v19 }
0x25bf   :  { %5637 = vrot.lane.b32.xlu1 %v5635_v32, %s10817_s4 }
0x2623   :  { %v5304_v15 = vpop.permute.xlu1 %5303 }
0x2624   :  { %v11999_v46 = vadd.f32 %v5304_v15, %v5296_v58 }
0x2626   :  { %10395 = vtanh.f32 %v11999_v46 }
0x2629   :  { %v5471_v51 = vpop.permute.xlu0 %5470 }
0x262a   :  { %v12003_v39 = vadd.f32 %v5471_v51, %v5463_v21 }
0x262c   :  { %10397 = vtanh.f32 %v12003_v39 }
0x2630   :  { %v10396_v9 = vpop.eup %10395 }
0x2631   :  { %v5638_v38 = vpop.permute.xlu1 %5637  ;;  %5309 = vrot.lane.b32.xlu0 %v10396_v9, %s10816_s8  ;;  %v5733_v9 = vrot.slane %v11999_v46, 7 }
0x2632   :  { %v12008_v4 = vadd.f32 %v5638_v38, %v5630_v43 }
0x2634   :  { %10399 = vtanh.f32 %v12008_v4 }
0x2636   :  { %v10398_v25 = vpop.eup %10397 }
0x2637   :  { %5476 = vrot.lane.b32.xlu1 %v10398_v25, %s10816_s8 }
0x263e   :  { %v10400_v47 = vpop.eup %10399 }
0x263f   :  { %5643 = vrot.lane.b32.xlu0 %v10400_v47, %s10816_s8 }
0x26a3   :  { %v5310_v12 = vpop.permute.xlu0 %5309 }
0x26a4   :  { %v5312_v42 = vmul.f32 %v5310_v12, %v5292_v3 }
0x26a6   :  { %v5649_v31 = vrot.slane %v5312_v42, 3 }
0x26a8   :  { %5650 = vrot.lane.b32.xlu1 %v5649_v31, %s10817_s4 }
0x26a9   :  { %v5477_v33 = vpop.permute.xlu1 %5476 }
0x26aa   :  { %v5479_v27 = vmul.f32 %v5477_v33, %v5462_v13 }
0x26ac   :  { %5823 = vrot.lane.b32.xlu0 %v5479_v27, %s10817_s4 }
0x26b1   :  { %v5644_v35 = vpop.permute.xlu0 %5643 }
0x26b2   :  { %v12015_v49 = vmul.f32 %v5644_v35, %v5629_v19 }
0x26b4   :  { %v5647_v50 = vmax.f32 %v11942_v48, %v12015_v49  ;;  %5990 = vrot.lane.b32.xlu1 %v12015_v49, %s10817_s4 }
0x271a   :  { %v5651_v14 = vpop.permute.xlu1 %5650 }
0x271b   :  { %9323 = vmatmul.mubr.msk.f32.vlgmr.msra.gmra.mrb[36].mxu0 %vm518_vm9, %v5651_v14  ;;  %9334 = vmatmul.mubr.msk.f32.vlgmr.msra.gmra.mrb[42].mxu1 %vm518_vm9, %v5651_v14 }
0x271c   :  { %9996 = vmatpush3.bf16.msra.mxu0 %v11239_v10  ;;  %9990 = vmatpush3.bf16.msra.mxu1 %v11191_v36 }
0x271d   :  { %9997 = vmatprep.subr.bf16.mxu0 %v10813_v18  ;;  %9991 = vmatprep.subr.bf16.mxu1 %v10813_v18 }
0x271e   :  { %9355 = vmatprep.mubr.msk.f32.mxu0 %vm10814_vm10, %v10812_v8  ;;  %9344 = vmatprep.mubr.msk.f32.mxu1 %vm10814_vm10, %v10812_v8  ;;  %v5824_v52 = vpop.permute.xlu0 %5823 }
0x2720   :  { %9999 = vmatpush3.bf16.msra.mxu0 %v11251_v16  ;;  %9993 = vmatpush3.bf16.msra.mxu1 %v11196_v40 }
0x2721   :  { %10000 = vmatprep.subr.bf16.mxu0 %v10813_v18  ;;  %10006 = vmatprep.subr.bf16.mxu1 %v10813_v18 }
0x2723   :  { %9356 = vmatmul.mubr.msk.f32.vlgmr.msra.gmra.mrb[38].mxu0 %vm518_vm9, %v5824_v52  ;;  %9345 = vmatmul.mubr.msk.f32.vlgmr.msra.gmra.mrb[42].mxu1 %vm518_vm9, %v5824_v52 }
0x2724   :  { %10002 = vmatpush3.bf16.msra.mxu0 %v11259_v29  ;;  %9366 = vmatprep.mubr.msk.f32.mxu0 %vm10814_vm10, %v10812_v8 }
0x2725   :  { %10003 = vmatprep.subr.bf16.mxu0 %v10813_v18  ;;  %10008 = vmatpush3.bf16.msra.mxu1 %v11124_v17 }
0x2726   :  { %10009 = vmatprep.subr.bf16.mxu1 %v10813_v18  ;;  %9377 = vmatprep.mubr.msk.f32.mxu1 %vm10814_vm10, %v10812_v8  ;;  %v5991_v53 = vpop.permute.xlu1 %5990 }
0x2728   :  { %10005 = vmatpush3.bf16.msra.mxu0 %v11267_v34 }
0x2729   :  { %10012 = vmatprep.subr.bf16.mxu0 %v10813_v18  ;;  %10011 = vmatpush3.bf16.msra.mxu1 %v11129_v22 }
0x272a   :  { %10024 = vmatprep.subr.bf16.mxu1 %v10813_v18 }
0x272b   :  { %9367 = vmatmul.mubr.msk.f32.vlgmr.msra.gmra.mrb[38].mxu0 %vm518_vm9, %v5991_v53 }
0x272c   :  { %10014 = vmatpush3.bf16.msra.mxu0 %v11178_v28  ;;  %9388 = vmatprep.mubr.msk.f32.mxu0 %vm10814_vm10, %v10812_v8 }
0x272d   :  { %10015 = vmatprep.subr.bf16.mxu0 %v10813_v18 }
0x2730   :  { %10017 = vmatpush3.bf16.msra.mxu0 %v11184_v30 }
0x2731   :  { %10018 = vmatprep.subr.bf16.mxu0 %v10813_v18 }
0x27ee   :  { %v5720_v54 = vpop.f32.mrb[36].mxu0 }
0x27ef   :  { %v5725_v41 = vrot.slane %v5720_v54, 4  ;;  %v9324_v37 = vpop.f32.mrb[37].mxu0 }
0x27f1   :  { %v5727_v57 = vadd.f32 %v5725_v41, %v11152_v6 }
0x27f3   :  { %v5728_v1 = vmul.f32 %v5727_v57, %v11156_v11 }
0x27f5   :  { %10401 = vtanh.f32 %v5728_v1 }
0x27f6   :  { %v5893_v61 = vpop.f32.mrb[42].mxu1 }
0x27f7   :  { %v10165_v62 = vadd.f32 %v11674_v26, %v5893_v61  ;;  %v9346_v63 = vpop.f32.mrb[43].mxu1 }
0x27f9   :  { %v5898_v2 = vmul.f32 %v10165_v62, %v11156_v11 }
0x27fb   :  { %10403 = vtanh.f32 %v5898_v2 }
0x27fe   :  { %v6060_v3 = vpop.f32.mrb[38].mxu0 }
0x27ff   :  { %v10402_v5 = vpop.eup %10401  ;;  %v10166_v45 = vadd.f32 %v11755_v44, %v6060_v3  ;;  %v9368_v13 = vpop.f32.mrb[39].mxu0 }
0x2800   :  { %v5730_v55 = vmul.f32 %v10402_v5, %v11156_v11  ;;  %v12134_v5 = vld [vmem:[#allocation19 + $0x1] sm:$0x1] }
0x2801   :  { %v6065_v59 = vmul.f32 %v10166_v45, %v11156_v11 }
0x2802   :  { %v5731_v19 = vadd.f32 %v5730_v55, %v11160_v0 }
0x2803   :  { %10405 = vtanh.f32 %v6065_v59 }
0x2804   :  { %5737 = vrot.lane.b32.xlu0 %v5731_v19, %s10816_s8  ;;  %v5735_v43 = vmul.f32 %v5733_v9, %v5731_v19 }
0x2805   :  { %v10404_v20 = vpop.eup %10403 }
0x2806   :  { %v5900_v26 = vmul.f32 %v10404_v20, %v11156_v11 }
0x2808   :  { %v5901_v23 = vadd.f32 %v5900_v26, %v11160_v0 }
0x280a   :  { %5904 = vrot.lane.b32.xlu1 %v5901_v23, %s10816_s8  ;;  %v5902_v47 = vmul.f32 %v5901_v23, %v12003_v39 }
0x280d   :  { %v10406_v24 = vpop.eup %10405 }
0x280e   :  { %v6067_v56 = vmul.f32 %v10406_v24, %v11156_v11 }
0x2810   :  { %v6068_v7 = vadd.f32 %v6067_v56, %v11160_v0 }
0x2812   :  { %6071 = vrot.lane.b32.xlu0 %v6068_v7, %s10816_s8  ;;  %v6069_v33 = vmul.f32 %v6068_v7, %v12008_v4 }
0x2876   :  { %v5738_v32 = vpop.permute.xlu0 %5737 }
0x2877   :  { %v5740_v60 = vmul.f32 %v5738_v32, %v5731_v19 }
0x2879   :  { %5742 = vrot.lane.b32.xlu1 %v5740_v60, %s10817_s4 }
0x287c   :  { %v5905_v58 = vpop.permute.xlu1 %5904 }
0x287d   :  { %v5907_v15 = vmul.f32 %v5905_v58, %v5901_v23 }
0x287f   :  { %5909 = vrot.lane.b32.xlu0 %v5907_v15, %s10817_s4 }
0x2884   :  { %v6072_v21 = vpop.permute.xlu0 %6071 }
0x2885   :  { %v6074_v51 = vmul.f32 %v6072_v21, %v6068_v7 }
0x2887   :  { %6076 = vrot.lane.b32.xlu1 %v6074_v51, %s10817_s4 }
0x28eb   :  { %v5743_v38 = vpop.permute.xlu1 %5742 }
0x28ec   :  { %v12075_v25 = vadd.f32 %v5743_v38, %v5735_v43 }
0x28ee   :  { %10407 = vtanh.f32 %v12075_v25 }
0x28f1   :  { %v5910_v12 = vpop.permute.xlu0 %5909 }
0x28f2   :  { %v12079_v42 = vadd.f32 %v5910_v12, %v5902_v47  ;;  %v6172_v12 = vrot.slane %v12075_v25, 7 }
0x28f4   :  { %10409 = vtanh.f32 %v12079_v42 }
0x28f8   :  { %v10408_v31 = vpop.eup %10407 }
0x28f9   :  { %v6077_v27 = vpop.permute.xlu1 %6076  ;;  %5748 = vrot.lane.b32.xlu0 %v10408_v31, %s10816_s8 }
0x28fa   :  { %v12084_v46 = vadd.f32 %v6077_v27, %v6069_v33 }
0x28fc   :  { %10411 = vtanh.f32 %v12084_v46 }
0x28fe   :  { %v10410_v35 = vpop.eup %10409 }
0x28ff   :  { %5915 = vrot.lane.b32.xlu1 %v10410_v35, %s10816_s8 }
0x2906   :  { %v10412_v14 = vpop.eup %10411 }
0x2907   :  { %6082 = vrot.lane.b32.xlu0 %v10412_v14, %s10816_s8 }
0x296b   :  { %v5749_v39 = vpop.permute.xlu0 %5748 }
0x296c   :  { %v5751_v52 = vmul.f32 %v5749_v39, %v5731_v19 }
0x296e   :  { %v6088_v53 = vrot.slane %v5751_v52, 4 }
0x2970   :  { %6089 = vrot.lane.b32.xlu1 %v6088_v53, %s10817_s4 }
0x2971   :  { %v5916_v54 = vpop.permute.xlu1 %5915 }
0x2972   :  { %v5918_v4 = vmul.f32 %v5916_v54, %v5901_v23 }
0x2974   :  { %6262 = vrot.lane.b32.xlu0 %v5918_v4, %s10817_s4 }
0x2979   :  { %v6083_v41 = vpop.permute.xlu0 %6082 }
0x297a   :  { %v6085_v37 = vmul.f32 %v6083_v41, %v6068_v7 }
0x297c   :  { %v12094_v57 = vmax.f32 %v5647_v50, %v6085_v37  ;;  %6429 = vrot.lane.b32.xlu1 %v6085_v37, %s10817_s4 }
0x29e2   :  { %v6090_v1 = vpop.permute.xlu1 %6089 }
0x29e3   :  { %9378 = vmatmul.mubr.msk.f32.vlgmr.msra.gmra.mrb[44].mxu1 %vm518_vm9, %v6090_v1  ;;  %9389 = vmatmul.mubr.msk.f32.vlgmr.msra.gmra.mrb[40].mxu0 %vm518_vm9, %v6090_v1 }
0x29e4   :  { %10026 = vmatpush3.bf16.msra.mxu1 %v11239_v10  ;;  %10020 = vmatpush3.bf16.msra.mxu0 %v11191_v36 }
0x29e5   :  { %10027 = vmatprep.subr.bf16.mxu1 %v10813_v18  ;;  %10021 = vmatprep.subr.bf16.mxu0 %v10813_v18 }
0x29e6   :  { %9410 = vmatprep.mubr.msk.f32.mxu1 %vm10814_vm10, %v10812_v8  ;;  %9399 = vmatprep.mubr.msk.f32.mxu0 %vm10814_vm10, %v10812_v8  ;;  %v6263_v48 = vpop.permute.xlu0 %6262 }
0x29e8   :  { %10029 = vmatpush3.bf16.msra.mxu1 %v11251_v16  ;;  %10023 = vmatpush3.bf16.msra.mxu0 %v11196_v40 }
0x29e9   :  { %10030 = vmatprep.subr.bf16.mxu1 %v10813_v18  ;;  %10036 = vmatprep.subr.bf16.mxu0 %v10813_v18 }
0x29eb   :  { %9411 = vmatmul.mubr.msk.f32.vlgmr.msra.gmra.mrb[46].mxu1 %vm518_vm9, %v6263_v48  ;;  %9400 = vmatmul.mubr.msk.f32.vlgmr.msra.gmra.mrb[40].mxu0 %vm518_vm9, %v6263_v48 }
0x29ec   :  { %10032 = vmatpush3.bf16.msra.mxu1 %v11259_v29  ;;  %9421 = vmatprep.mubr.msk.f32.mxu1 %vm10814_vm10, %v10812_v8 }
0x29ed   :  { %10033 = vmatprep.subr.bf16.mxu1 %v10813_v18  ;;  %10038 = vmatpush3.bf16.msra.mxu0 %v11124_v17 }
0x29ee   :  { %10039 = vmatprep.subr.bf16.mxu0 %v10813_v18  ;;  %9432 = vmatprep.mubr.msk.f32.mxu0 %vm10814_vm10, %v10812_v8  ;;  %v6430_v49 = vpop.permute.xlu1 %6429 }
0x29f0   :  { %10035 = vmatpush3.bf16.msra.mxu1 %v11267_v34 }
0x29f1   :  { %10042 = vmatprep.subr.bf16.mxu1 %v10813_v18  ;;  %10041 = vmatpush3.bf16.msra.mxu0 %v11129_v22 }
0x29f2   :  { %10054 = vmatprep.subr.bf16.mxu0 %v10813_v18 }
0x29f3   :  { %9422 = vmatmul.mubr.msk.f32.vlgmr.msra.gmra.mrb[46].mxu1 %vm518_vm9, %v6430_v49 }
0x29f4   :  { %10044 = vmatpush3.bf16.msra.mxu1 %v11178_v28  ;;  %9443 = vmatprep.mubr.msk.f32.mxu1 %vm10814_vm10, %v10812_v8 }
0x29f5   :  { %10045 = vmatprep.subr.bf16.mxu1 %v10813_v18 }
0x29f8   :  { %10047 = vmatpush3.bf16.msra.mxu1 %v11184_v30 }
0x29f9   :  { %10048 = vmatprep.subr.bf16.mxu1 %v10813_v18 }
0x2ab6   :  { %v6159_v50 = vpop.f32.mrb[44].mxu1 }
0x2ab7   :  { %v6164_v61 = vrot.slane %v6159_v50, 3  ;;  %v9379_v62 = vpop.f32.mrb[45].mxu1 }
0x2ab9   :  { %v6166_v63 = vadd.f32 %v6164_v61, %v11152_v6 }
0x2abb   :  { %v6167_v2 = vmul.f32 %v6166_v63, %v11156_v11 }
0x2abd   :  { %10413 = vtanh.f32 %v6167_v2 }
0x2abe   :  { %v6332_v3 = vpop.f32.mrb[40].mxu0 }
0x2abf   :  { %v10167_v45 = vadd.f32 %v12134_v5, %v6332_v3  ;;  %v9401_v13 = vpop.f32.mrb[41].mxu0 }
0x2ac1   :  { %v6337_v55 = vmul.f32 %v10167_v45, %v11156_v11 }
0x2ac3   :  { %10415 = vtanh.f32 %v6337_v55 }
0x2ac6   :  { %v6499_v59 = vpop.f32.mrb[46].mxu1 }
0x2ac7   :  { %v10414_v19 = vpop.eup %10413  ;;  %v10168_v20 = vadd.f32 %v11755_v44, %v6499_v59  ;;  %v9423_v26 = vpop.f32.mrb[47].mxu1 }
0x2ac8   :  { %v6169_v23 = vmul.f32 %v10414_v19, %v11156_v11 }
0x2ac9   :  { %v6504_v24 = vmul.f32 %v10168_v20, %v11156_v11 }
0x2aca   :  { %v6170_v56 = vadd.f32 %v6169_v23, %v11160_v0 }
0x2acb   :  { %10417 = vtanh.f32 %v6504_v24  ;;  %v12214_v24 = vld [vmem:[#allocation19 + $0x2] sm:$0x1] }
0x2acc   :  { %6176 = vrot.lane.b32.xlu0 %v6170_v56, %s10816_s8  ;;  %v6174_v31 = vmul.f32 %v6172_v12, %v6170_v56 }
0x2acd   :  { %v10416_v7 = vpop.eup %10415 }
0x2ace   :  { %v6339_v32 = vmul.f32 %v10416_v7, %v11156_v11 }
0x2ad0   :  { %v6340_v60 = vadd.f32 %v6339_v32, %v11160_v0 }
0x2ad2   :  { %6343 = vrot.lane.b32.xlu1 %v6340_v60, %s10816_s8  ;;  %v6341_v35 = vmul.f32 %v6340_v60, %v12079_v42 }
0x2ad5   :  { %v10418_v58 = vpop.eup %10417 }
0x2ad6   :  { %v6506_v44 = vmul.f32 %v10418_v58, %v11156_v11 }
0x2ad8   :  { %v6507_v15 = vadd.f32 %v6506_v44, %v11160_v0 }
0x2ada   :  { %6510 = vrot.lane.b32.xlu0 %v6507_v15, %s10816_s8  ;;  %v6508_v53 = vmul.f32 %v6507_v15, %v12084_v46 }
0x2b3e   :  { %v6177_v21 = vpop.permute.xlu0 %6176 }
0x2b3f   :  { %v6179_v51 = vmul.f32 %v6177_v21, %v6170_v56 }
0x2b41   :  { %6181 = vrot.lane.b32.xlu1 %v6179_v51, %s10817_s4 }
0x2b44   :  { %v6344_v9 = vpop.permute.xlu1 %6343 }
0x2b45   :  { %v6346_v43 = vmul.f32 %v6344_v9, %v6340_v60 }
0x2b47   :  { %6348 = vrot.lane.b32.xlu0 %v6346_v43, %s10817_s4 }
0x2b4c   :  { %v6511_v38 = vpop.permute.xlu0 %6510 }
0x2b4d   :  { %v6513_v47 = vmul.f32 %v6511_v38, %v6507_v15 }
0x2b4f   :  { %6515 = vrot.lane.b32.xlu1 %v6513_v47, %s10817_s4 }
0x2bb3   :  { %v6182_v33 = vpop.permute.xlu1 %6181 }
0x2bb4   :  { %v12153_v27 = vadd.f32 %v6182_v33, %v6174_v31 }
0x2bb6   :  { %10419 = vtanh.f32 %v12153_v27 }
0x2bb9   :  { %v6349_v14 = vpop.permute.xlu0 %6348 }
0x2bba   :  { %v12157_v39 = vadd.f32 %v6349_v14, %v6341_v35  ;;  %v6611_v14 = vrot.slane %v12153_v27, 7 }
0x2bbc   :  { %10421 = vtanh.f32 %v12157_v39 }
0x2bc0   :  { %v10420_v52 = vpop.eup %10419 }
0x2bc1   :  { %v6516_v54 = vpop.permute.xlu1 %6515  ;;  %6187 = vrot.lane.b32.xlu0 %v10420_v52, %s10816_s8 }
0x2bc2   :  { %v12162_v25 = vadd.f32 %v6516_v54, %v6508_v53 }
0x2bc4   :  { %10423 = vtanh.f32 %v12162_v25 }
0x2bc6   :  { %v10422_v4 = vpop.eup %10421 }
0x2bc7   :  { %6354 = vrot.lane.b32.xlu1 %v10422_v4, %s10816_s8 }
0x2bce   :  { %v10424_v41 = vpop.eup %10423 }
0x2bcf   :  { %6521 = vrot.lane.b32.xlu0 %v10424_v41, %s10816_s8 }
0x2c33   :  { %v6188_v42 = vpop.permute.xlu0 %6187 }
0x2c34   :  { %v6190_v37 = vmul.f32 %v6188_v42, %v6170_v56 }
0x2c36   :  { %v6527_v1 = vrot.slane %v6190_v37, 5 }
0x2c38   :  { %6528 = vrot.lane.b32.xlu1 %v6527_v1, %s10817_s4 }
0x2c39   :  { %v6355_v48 = vpop.permute.xlu1 %6354 }
0x2c3a   :  { %v6357_v46 = vmul.f32 %v6355_v48, %v6340_v60 }
0x2c3c   :  { %6701 = vrot.lane.b32.xlu0 %v6357_v46, %s10817_s4 }
0x2c41   :  { %v6522_v49 = vpop.permute.xlu0 %6521 }
0x2c42   :  { %v12169_v50 = vmul.f32 %v6522_v49, %v6507_v15 }
0x2c44   :  { %v6525_v61 = vmax.f32 %v12094_v57, %v12169_v50  ;;  %6868 = vrot.lane.b32.xlu1 %v12169_v50, %s10817_s4 }
0x2caa   :  { %v6529_v62 = vpop.permute.xlu1 %6528 }
0x2cab   :  { %9433 = vmatmul.mubr.msk.f32.vlgmr.msra.gmra.mrb[42].mxu0 %vm518_vm9, %v6529_v62  ;;  %9444 = vmatmul.mubr.msk.f32.vlgmr.msra.gmra.mrb[48].mxu1 %vm518_vm9, %v6529_v62 }
0x2cac   :  { %10056 = vmatpush3.bf16.msra.mxu0 %v11239_v10  ;;  %10050 = vmatpush3.bf16.msra.mxu1 %v11191_v36 }
0x2cad   :  { %10057 = vmatprep.subr.bf16.mxu0 %v10813_v18  ;;  %10051 = vmatprep.subr.bf16.mxu1 %v10813_v18 }
0x2cae   :  { %9465 = vmatprep.mubr.msk.f32.mxu0 %vm10814_vm10, %v10812_v8  ;;  %9454 = vmatprep.mubr.msk.f32.mxu1 %vm10814_vm10, %v10812_v8  ;;  %v6702_v63 = vpop.permute.xlu0 %6701 }
0x2cb0   :  { %10059 = vmatpush3.bf16.msra.mxu0 %v11251_v16  ;;  %10053 = vmatpush3.bf16.msra.mxu1 %v11196_v40 }
0x2cb1   :  { %10060 = vmatprep.subr.bf16.mxu0 %v10813_v18  ;;  %10066 = vmatprep.subr.bf16.mxu1 %v10813_v18 }
0x2cb3   :  { %9466 = vmatmul.mubr.msk.f32.vlgmr.msra.gmra.mrb[44].mxu0 %vm518_vm9, %v6702_v63  ;;  %9455 = vmatmul.mubr.msk.f32.vlgmr.msra.gmra.mrb[48].mxu1 %vm518_vm9, %v6702_v63 }
0x2cb4   :  { %10062 = vmatpush3.bf16.msra.mxu0 %v11259_v29  ;;  %9476 = vmatprep.mubr.msk.f32.mxu0 %vm10814_vm10, %v10812_v8 }
0x2cb5   :  { %10063 = vmatprep.subr.bf16.mxu0 %v10813_v18  ;;  %10068 = vmatpush3.bf16.msra.mxu1 %v11124_v17 }
0x2cb6   :  { %10069 = vmatprep.subr.bf16.mxu1 %v10813_v18  ;;  %9487 = vmatprep.mubr.msk.f32.mxu1 %vm10814_vm10, %v10812_v8  ;;  %v6869_v2 = vpop.permute.xlu1 %6868 }
0x2cb8   :  { %10065 = vmatpush3.bf16.msra.mxu0 %v11267_v34 }
0x2cb9   :  { %10072 = vmatprep.subr.bf16.mxu0 %v10813_v18  ;;  %10071 = vmatpush3.bf16.msra.mxu1 %v11129_v22 }
0x2cba   :  { %10084 = vmatprep.subr.bf16.mxu1 %v10813_v18 }
0x2cbb   :  { %9477 = vmatmul.mubr.msk.f32.vlgmr.msra.gmra.mrb[44].mxu0 %vm518_vm9, %v6869_v2 }
0x2cbc   :  { %10074 = vmatpush3.bf16.msra.mxu0 %v11178_v28  ;;  %9498 = vmatprep.mubr.msk.f32.mxu0 %vm10814_vm10, %v10812_v8 }
0x2cbd   :  { %10075 = vmatprep.subr.bf16.mxu0 %v10813_v18 }
0x2cc0   :  { %10077 = vmatpush3.bf16.msra.mxu0 %v11184_v30 }
0x2cc1   :  { %10078 = vmatprep.subr.bf16.mxu0 %v10813_v18 }
0x2d7e   :  { %v6598_v17 = vpop.f32.mrb[42].mxu0 }
0x2d7f   :  { %v6603_v3 = vrot.slane %v6598_v17, 2  ;;  %v9434_v45 = vpop.f32.mrb[43].mxu0 }
0x2d81   :  { %v6605_v22 = vadd.f32 %v6603_v3, %v11152_v6 }
0x2d83   :  { %v6606_v13 = vmul.f32 %v6605_v22, %v11156_v11 }
0x2d85   :  { %10425 = vtanh.f32 %v6606_v13 }
0x2d86   :  { %v6771_v55 = vpop.f32.mrb[48].mxu1 }
0x2d87   :  { %v10169_v59 = vadd.f32 %v12134_v5, %v6771_v55  ;;  %v9456_v19 = vpop.f32.mrb[49].mxu1 }
0x2d89   :  { %v6776_v20 = vmul.f32 %v10169_v59, %v11156_v11 }
0x2d8b   :  { %10427 = vtanh.f32 %v6776_v20 }
0x2d8e   :  { %v6938_v26 = vpop.f32.mrb[44].mxu0 }
0x2d8f   :  { %v10426_v23 = vpop.eup %10425  ;;  %v10170_v56 = vadd.f32 %v12214_v24, %v6938_v26  ;;  %v9478_v7 = vpop.f32.mrb[45].mxu0 }
0x2d90   :  { %v6608_v32 = vmul.f32 %v10426_v23, %v11156_v11 }
0x2d91   :  { %v6943_v60 = vmul.f32 %v10170_v56, %v11156_v11 }
0x2d92   :  { %v6609_v58 = vadd.f32 %v6608_v32, %v11160_v0 }
0x2d93   :  { %10429 = vtanh.f32 %v6943_v60 }
0x2d94   :  { %6615 = vrot.lane.b32.xlu0 %v6609_v58, %s10816_s8  ;;  %v6613_v52 = vmul.f32 %v6611_v14, %v6609_v58 }
0x2d95   :  { %v10428_v44 = vpop.eup %10427 }
0x2d96   :  { %v6778_v15 = vmul.f32 %v10428_v44, %v11156_v11 }
0x2d98   :  { %v6779_v21 = vadd.f32 %v6778_v15, %v11160_v0 }
0x2d9a   :  { %6782 = vrot.lane.b32.xlu1 %v6779_v21, %s10816_s8  ;;  %v6780_v4 = vmul.f32 %v6779_v21, %v12157_v39 }
0x2d9d   :  { %v10430_v51 = vpop.eup %10429 }
0x2d9e   :  { %v6945_v9 = vmul.f32 %v10430_v51, %v11156_v11 }
0x2da0   :  { %v6946_v43 = vadd.f32 %v6945_v9, %v11160_v0 }
0x2da2   :  { %6949 = vrot.lane.b32.xlu0 %v6946_v43, %s10816_s8  ;;  %v6947_v1 = vmul.f32 %v6946_v43, %v12162_v25 }
0x2e06   :  { %v6616_v38 = vpop.permute.xlu0 %6615 }
0x2e07   :  { %v6618_v47 = vmul.f32 %v6616_v38, %v6609_v58 }
0x2e09   :  { %6620 = vrot.lane.b32.xlu1 %v6618_v47, %s10817_s4 }
0x2e0c   :  { %v6783_v12 = vpop.permute.xlu1 %6782 }
0x2e0d   :  { %v6785_v31 = vmul.f32 %v6783_v12, %v6779_v21 }
0x2e0f   :  { %6787 = vrot.lane.b32.xlu0 %v6785_v31, %s10817_s4 }
0x2e14   :  { %v6950_v33 = vpop.permute.xlu0 %6949 }
0x2e15   :  { %v6952_v35 = vmul.f32 %v6950_v33, %v6946_v43 }
0x2e17   :  { %6954 = vrot.lane.b32.xlu1 %v6952_v35, %s10817_s4 }
0x2e7b   :  { %v6621_v53 = vpop.permute.xlu1 %6620 }
0x2e7c   :  { %v12231_v54 = vadd.f32 %v6621_v53, %v6613_v52 }
0x2e7e   :  { %10431 = vtanh.f32 %v12231_v54  ;;  %v7050_v14 = vrot.slane %v12231_v54, 7 }
0x2e81   :  { %v6788_v41 = vpop.permute.xlu0 %6787 }
0x2e82   :  { %v12235_v42 = vadd.f32 %v6788_v41, %v6780_v4 }
0x2e84   :  { %10433 = vtanh.f32 %v12235_v42 }
0x2e88   :  { %v10432_v37 = vpop.eup %10431 }
0x2e89   :  { %v6955_v48 = vpop.permute.xlu1 %6954  ;;  %6626 = vrot.lane.b32.xlu0 %v10432_v37, %s10816_s8 }
0x2e8a   :  { %v12240_v27 = vadd.f32 %v6955_v48, %v6947_v1 }
0x2e8c   :  { %10435 = vtanh.f32 %v12240_v27 }
0x2e8e   :  { %v10434_v46 = vpop.eup %10433 }
0x2e8f   :  { %6793 = vrot.lane.b32.xlu1 %v10434_v46, %s10816_s8 }
0x2e96   :  { %v10436_v49 = vpop.eup %10435 }
0x2e97   :  { %6960 = vrot.lane.b32.xlu0 %v10436_v49, %s10816_s8 }
0x2efb   :  { %v6627_v39 = vpop.permute.xlu0 %6626 }
0x2efc   :  { %v6629_v62 = vmul.f32 %v6627_v39, %v6609_v58 }
0x2efe   :  { %v6966_v63 = vrot.slane %v6629_v62, 6 }
0x2f00   :  { %6967 = vrot.lane.b32.xlu1 %v6966_v63, %s10817_s4 }
0x2f01   :  { %v6794_v2 = vpop.permute.xlu1 %6793 }
0x2f02   :  { %v6796_v25 = vmul.f32 %v6794_v2, %v6779_v21 }
0x2f04   :  { %7140 = vrot.lane.b32.xlu0 %v6796_v25, %s10817_s4 }
0x2f09   :  { %v6961_v17 = vpop.permute.xlu0 %6960 }
0x2f0a   :  { %v6963_v3 = vmul.f32 %v6961_v17, %v6946_v43 }
0x2f0c   :  { %v12250_v45 = vmax.f32 %v6525_v61, %v6963_v3  ;;  %7307 = vrot.lane.b32.xlu1 %v6963_v3, %s10817_s4 }
0x2f72   :  { %v6968_v22 = vpop.permute.xlu1 %6967 }
0x2f73   :  { %9488 = vmatmul.mubr.msk.f32.vlgmr.msra.gmra.mrb[50].mxu1 %vm518_vm9, %v6968_v22  ;;  %9499 = vmatmul.mubr.msk.f32.vlgmr.msra.gmra.mrb[46].mxu0 %vm518_vm9, %v6968_v22 }
0x2f74   :  { %10086 = vmatpush3.bf16.msra.mxu1 %v11239_v10  ;;  %10080 = vmatpush3.bf16.msra.mxu0 %v11191_v36 }
0x2f75   :  { %10087 = vmatprep.subr.bf16.mxu1 %v10813_v18  ;;  %10081 = vmatprep.subr.bf16.mxu0 %v10813_v18 }
0x2f76   :  { %9520 = vmatprep.mubr.msk.f32.mxu1 %vm10814_vm10, %v10812_v8  ;;  %9509 = vmatprep.mubr.msk.f32.mxu0 %vm10814_vm10, %v10812_v8  ;;  %v7141_v57 = vpop.permute.xlu0 %7140 }
0x2f78   :  { %10089 = vmatpush3.bf16.msra.mxu1 %v11251_v16  ;;  %10083 = vmatpush3.bf16.msra.mxu0 %v11196_v40 }
0x2f79   :  { %10090 = vmatprep.subr.bf16.mxu1 %v10813_v18  ;;  %10096 = vmatprep.subr.bf16.mxu0 %v10813_v18 }
0x2f7b   :  { %9521 = vmatmul.mubr.msk.f32.vlgmr.msra.gmra.mrb[52].mxu1 %vm518_vm9, %v7141_v57  ;;  %9510 = vmatmul.mubr.msk.f32.vlgmr.msra.gmra.mrb[46].mxu0 %vm518_vm9, %v7141_v57 }
0x2f7c   :  { %10092 = vmatpush3.bf16.msra.mxu1 %v11259_v29  ;;  %9531 = vmatprep.mubr.msk.f32.mxu1 %vm10814_vm10, %v10812_v8 }
0x2f7d   :  { %10093 = vmatprep.subr.bf16.mxu1 %v10813_v18  ;;  %10098 = vmatpush3.bf16.msra.mxu0 %v11178_v28 }
0x2f7e   :  { %10099 = vmatprep.subr.bf16.mxu0 %v10813_v18  ;;  %9542 = vmatprep.mubr.msk.f32.mxu0 %vm10814_vm10, %v10812_v8  ;;  %v7308_v50 = vpop.permute.xlu1 %7307 }
0x2f80   :  { %10095 = vmatpush3.bf16.msra.mxu1 %v11267_v34 }
0x2f81   :  { %10108 = vmatprep.subr.bf16.mxu1 %v10813_v18  ;;  %10101 = vmatpush3.bf16.msra.mxu0 %v11184_v30 }
0x2f82   :  { %10102 = vmatprep.subr.bf16.mxu0 %v10813_v18 }
0x2f83   :  { %9532 = vmatmul.mubr.msk.f32.vlgmr.msra.gmra.mrb[52].mxu1 %vm518_vm9, %v7308_v50 }
0x2f84   :  { %10110 = vmatpush3.bf16.msra.mxu1 %v11239_v10  ;;  %9564 = vmatprep.mubr.msk.f32.mxu1 %vm10814_vm10, %v10812_v8 }
0x2f85   :  { %10111 = vmatprep.subr.bf16.mxu1 %v10813_v18 }
0x2f88   :  { %10113 = vmatpush3.bf16.msra.mxu1 %v11251_v16 }
0x2f89   :  { %10114 = vmatprep.subr.bf16.mxu1 %v10813_v18 }
0x3046   :  { %v7037_v28 = vpop.f32.mrb[50].mxu1 }
0x3047   :  { %v7042_v61 = vrot.slane %v7037_v28, 1  ;;  %v9489_v13 = vpop.f32.mrb[51].mxu1 }
0x3049   :  { %v7044_v30 = vadd.f32 %v7042_v61, %v11152_v6 }
0x304b   :  { %v7045_v55 = vmul.f32 %v7044_v30, %v11156_v11 }
0x304d   :  { %10437 = vtanh.f32 %v7045_v55 }
0x304e   :  { %v7210_v59 = vpop.f32.mrb[46].mxu0 }
0x304f   :  { %v10171_v19 = vadd.f32 %v12134_v5, %v7210_v59  ;;  %v9511_v20 = vpop.f32.mrb[47].mxu0 }
0x3051   :  { %v7215_v26 = vmul.f32 %v10171_v19, %v11156_v11 }
0x3053   :  { %10439 = vtanh.f32 %v7215_v26 }
0x3056   :  { %v7377_v23 = vpop.f32.mrb[52].mxu1 }
0x3057   :  { %v10438_v56 = vpop.eup %10437  ;;  %v10172_v7 = vadd.f32 %v12214_v24, %v7377_v23  ;;  %v9533_v32 = vpop.f32.mrb[53].mxu1 }
0x3058   :  { %v7047_v60 = vmul.f32 %v10438_v56, %v11156_v11 }
0x3059   :  { %v7382_v58 = vmul.f32 %v10172_v7, %v11156_v11 }
0x305a   :  { %v7048_v6 = vadd.f32 %v7047_v60, %v11160_v0 }
0x305b   :  { %10441 = vtanh.f32 %v7382_v58 }
0x305c   :  { %7054 = vrot.lane.b32.xlu0 %v7048_v6, %s10816_s8  ;;  %v7052_v52 = vmul.f32 %v7050_v14, %v7048_v6 }
0x305d   :  { %v10440_v44 = vpop.eup %10439 }
0x305e   :  { %v7217_v15 = vmul.f32 %v10440_v44, %v11156_v11 }
0x3060   :  { %v7218_v21 = vadd.f32 %v7217_v15, %v11160_v0 }
0x3062   :  { %7221 = vrot.lane.b32.xlu1 %v7218_v21, %s10816_s8  ;;  %v7219_v41 = vmul.f32 %v7218_v21, %v12235_v42 }
0x3065   :  { %v10442_v51 = vpop.eup %10441 }
0x3066   :  { %v7384_v9 = vmul.f32 %v10442_v51, %v11156_v11 }
0x3068   :  { %v7385_v43 = vadd.f32 %v7384_v9, %v11160_v0 }
0x306a   :  { %7388 = vrot.lane.b32.xlu0 %v7385_v43, %s10816_s8  ;;  %v7386_v46 = vmul.f32 %v7385_v43, %v12240_v27 }
0x30ce   :  { %v7055_v38 = vpop.permute.xlu0 %7054 }
0x30cf   :  { %v7057_v47 = vmul.f32 %v7055_v38, %v7048_v6 }
0x30d1   :  { %7059 = vrot.lane.b32.xlu1 %v7057_v47, %s10817_s4 }
0x30d4   :  { %v7222_v12 = vpop.permute.xlu1 %7221 }
0x30d5   :  { %v7224_v31 = vmul.f32 %v7222_v12, %v7218_v21 }
0x30d7   :  { %7226 = vrot.lane.b32.xlu0 %v7224_v31, %s10817_s4 }
0x30dc   :  { %v7389_v33 = vpop.permute.xlu0 %7388 }
0x30dd   :  { %v7391_v35 = vmul.f32 %v7389_v33, %v7385_v43 }
0x30df   :  { %7393 = vrot.lane.b32.xlu1 %v7391_v35, %s10817_s4 }
0x3143   :  { %v7060_v53 = vpop.permute.xlu1 %7059 }
0x3144   :  { %v7062_v4 = vadd.f32 %v7060_v53, %v7052_v52 }
0x3146   :  { %10443 = vtanh.f32 %v7062_v4 }
0x3149   :  { %v7227_v37 = vpop.permute.xlu0 %7226 }
0x314a   :  { %v12308_v1 = vadd.f32 %v7227_v37, %v7219_v41 }
0x314c   :  { %10445 = vtanh.f32 %v12308_v1 }
0x3150   :  { %v10444_v48 = vpop.eup %10443 }
0x3151   :  { %v7394_v49 = vpop.permute.xlu1 %7393  ;;  %7065 = vrot.lane.b32.xlu0 %v10444_v48, %s10816_s8 }
0x3152   :  { %v12313_v39 = vadd.f32 %v7394_v49, %v7386_v46 }
0x3154   :  { %10447 = vtanh.f32 %v12313_v39 }
0x3156   :  { %v10446_v54 = vpop.eup %10445 }
0x3157   :  { %7232 = vrot.lane.b32.xlu1 %v10446_v54, %s10816_s8  ;;  %v7920_v54 = vld [vmem:[#allocation20 + $0x10] sm:$0xff] }
0x315e   :  { %v10448_v62 = vpop.eup %10447 }
0x315f   :  { %7399 = vrot.lane.b32.xlu0 %v10448_v62, %s10816_s8 }
0x31c3   :  { %v7066_v42 = vpop.permute.xlu0 %7065 }
0x31c4   :  { %v7068_v63 = vmul.f32 %v7066_v42, %v7048_v6  ;;  %v7921_v42 = vld [vmem:[#allocation20 + $0x18] sm:$0xff] }
0x31c6   :  { %v7405_v2 = vrot.slane %v7068_v63, 7  ;;  %v10136_v63 = vpack.c.bf16 %v7921_v42, %v7920_v54 }
0x31c8   :  { %7406 = vrot.lane.b32.xlu1 %v7405_v2, %s10817_s4 }
0x31c9   :  { %v7233_v25 = vpop.permute.xlu1 %7232 }
0x31ca   :  { %v7235_v27 = vmul.f32 %v7233_v25, %v7218_v21 }
0x31cc   :  { %7481 = vrot.lane.b32.xlu0 %v7235_v27, %s10817_s4 }
0x31d1   :  { %v7400_v17 = vpop.permute.xlu0 %7399 }
0x31d2   :  { %v12320_v3 = vmul.f32 %v7400_v17, %v7385_v43  ;;  %v7922_v17 = vld [vmem:[#allocation22] sm:$0x1] }
0x31d4   :  { %v7403_v22 = vmax.f32 %v12250_v45, %v12320_v3  ;;  %7648 = vrot.lane.b32.xlu1 %v12320_v3, %s10817_s4 }
0x323a   :  { %v7407_v57 = vpop.permute.xlu1 %7406 }
0x323b   :  { %9543 = vmatmul.mubr.msk.f32.vlgmr.msra.gmra.mrb[48].mxu0 %vm518_vm9, %v7407_v57 }
0x323c   :  { %10104 = vmatpush3.bf16.msra.mxu0 %v11191_v36  ;;  %9553 = vmatprep.mubr.msk.f32.mxu0 %vm10814_vm10, %v10812_v8 }
0x323d   :  { %10105 = vmatprep.subr.bf16.mxu0 %v10813_v18 }
0x323e   :  { %v7482_v50 = vpop.permute.xlu0 %7481 }
0x323f   :  { %9565 = vmatmul.mubr.msk.f32.vlgmr.msra.gmra.mrb[54].mxu1 %vm518_vm9, %v7482_v50 }
0x3240   :  { %10107 = vmatpush3.bf16.msra.mxu0 %v11196_v40  ;;  %10116 = vmatpush3.bf16.msra.mxu1 %v11259_v29 }
0x3241   :  { %10117 = vmatprep.subr.bf16.mxu1 %v10813_v18  ;;  %9575 = vmatprep.mubr.msk.f32.mxu1 %vm10814_vm10, %v10812_v8 }
0x3242   :  { %10120 = vmatprep.subr.bf16.mxu0 %v10813_v18 }
0x3243   :  { %9554 = vmatmul.mubr.msk.f32.vlgmr.msra.gmra.mrb[48].mxu0 %vm518_vm9, %v7482_v50 }
0x3244   :  { %10119 = vmatpush3.bf16.msra.mxu1 %v11267_v34  ;;  %10122 = vmatpush3.bf16.msra.mxu0 %v11239_v10 }
0x3245   :  { %10123 = vmatprep.subr.bf16.mxu0 %v10813_v18  ;;  %9586 = vmatprep.mubr.msk.f32.mxu0 %vm10814_vm10, %v10812_v8 }
0x3246   :  { %v7649_v36 = vpop.permute.xlu1 %7648  ;;  %10132 = vmatprep.subr.bf16.mxu1 %v10813_v18 }
0x3247   :  { %9576 = vmatmul.mubr.msk.f32.vlgmr.msra.gmra.mrb[54].mxu1 %vm518_vm9, %v7649_v36 }
0x3248   :  { %10125 = vmatpush3.bf16.msra.mxu0 %v11251_v16  ;;  %9608 = vmatprep.mubr.msk.f32.mxu1 %vm10814_vm10, %v10812_v8 }
0x3249   :  { %10126 = vmatprep.subr.bf16.mxu0 %v10813_v18 }
0x3316   :  { %v7551_v40 = vpop.f32.mrb[48].mxu0 }
0x3317   :  { %v10173_v10 = vadd.f32 %v12134_v5, %v7551_v40  ;;  %v9555_v28 = vpop.f32.mrb[49].mxu0 }
0x3319   :  { %v7556_v61 = vmul.f32 %v10173_v10, %v11156_v11 }
0x331a   :  { %v7718_v13 = vpop.f32.mrb[54].mxu1 }
0x331b   :  { %10449 = vtanh.f32 %v7556_v61  ;;  %v10174_v30 = vadd.f32 %v12214_v24, %v7718_v13  ;;  %v9577_v55 = vpop.f32.mrb[55].mxu1 }
0x331c   :  { %v8017_v55 = vld [vmem:[%s12437_s16 + $0x8] sm:$0xff] }
0x331d   :  { %v7723_v59 = vmul.f32 %v10174_v30, %v11156_v11 }
0x331f   :  { %10451 = vtanh.f32 %v7723_v59  ;;  %v8018_v59 = vld [vmem:[%s12437_s16 + $0x10] sm:$0xff] }
0x3325   :  { %v10450_v16 = vpop.eup %10449 }
0x3326   :  { %v7558_v19 = vmul.f32 %v10450_v16, %v11156_v11 }
0x3328   :  { %v7559_v20 = vadd.f32 %v7558_v19, %v11160_v0  ;;  %v8019_v19 = vld [vmem:[%s12437_s16 + $0x18] sm:$0xff] }
0x3329   :  { %v10452_v26 = vpop.eup %10451 }
0x332a   :  { %7562 = vrot.lane.b32.xlu0 %v7559_v20, %s10816_s8  ;;  %v7725_v5 = vmul.f32 %v10452_v26, %v11156_v11  ;;  %v7560_v58 = vmul.f32 %v7559_v20, %v12308_v1 }
0x332c   :  { %v7726_v23 = vadd.f32 %v7725_v5, %v11160_v0 }
0x332e   :  { %7729 = vrot.lane.b32.xlu1 %v7726_v23, %s10816_s8  ;;  %v7727_v15 = vmul.f32 %v7726_v23, %v12313_v39  ;;  %v7919_v39 = vld [vmem:[#allocation20 + $0x8] sm:$0xff] }
0x339c   :  { %v7563_v56 = vpop.permute.xlu0 %7562 }
0x339d   :  { %v7565_v7 = vmul.f32 %v7563_v56, %v7559_v20 }
0x339f   :  { %7567 = vrot.lane.b32.xlu0 %v7565_v7, %s10817_s4 }
0x33a0   :  { %v7730_v32 = vpop.permute.xlu1 %7729 }
0x33a1   :  { %v7732_v60 = vmul.f32 %v7730_v32, %v7726_v23  ;;  %v8020_v32 = vld [vmem:[%s12438_s17] sm:$0x1] }
0x33a3   :  { %7734 = vrot.lane.b32.xlu1 %v7732_v60, %s10817_s4 }
0x3411   :  { %v7568_v6 = vpop.permute.xlu0 %7567 }
0x3412   :  { %v7570_v44 = vadd.f32 %v7568_v6, %v7560_v58 }
0x3414   :  { %10453 = vtanh.f32 %v7570_v44 }
0x3415   :  { %v7735_v21 = vpop.permute.xlu1 %7734 }
0x3416   :  { %v7737_v51 = vadd.f32 %v7735_v21, %v7727_v15 }
0x3418   :  { %10455 = vtanh.f32 %v7737_v51 }
0x341e   :  { %v10454_v9 = vpop.eup %10453 }
0x341f   :  { %7573 = vrot.lane.b32.xlu0 %v10454_v9, %s10816_s8 }
0x3422   :  { %v10456_v43 = vpop.eup %10455 }
0x3423   :  { %7740 = vrot.lane.b32.xlu1 %v10456_v43, %s10816_s8 }
0x3491   :  { %v7574_v38 = vpop.permute.xlu0 %7573 }
0x3492   :  { %v7576_v47 = vmul.f32 %v7574_v38, %v7559_v20  ;;  %v10142_v20 = vpack.c.bf16 %v8019_v19, %v8018_v59 }
0x3494   :  { %7746 = vrot.lane.b32.xlu0 %v7576_v47, %s10817_s4 }
0x3495   :  { %v7741_v12 = vpop.permute.xlu1 %7740 }
0x3496   :  { %v7743_v31 = vmul.f32 %v7741_v12, %v7726_v23 }
0x3498   :  { %v7744_v33 = vmax.f32 %v7403_v22, %v7743_v31  ;;  %7821 = vrot.lane.b32.xlu1 %v7743_v31, %s10817_s4 }
0x3506   :  { %v7747_v35 = vpop.permute.xlu0 %7746 }
0x3507   :  { %9587 = vmatmul.mubr.msk.f32.vlgmr.msra.gmra.mrb[50].mxu0 %vm518_vm9, %v7747_v35 }
0x3508   :  { %10128 = vmatpush3.bf16.msra.mxu0 %v11259_v29  ;;  %9597 = vmatprep.mubr.msk.f32.mxu0 %vm10814_vm10, %v10812_v8 }
0x3509   :  { %10129 = vmatprep.subr.bf16.mxu0 %v10813_v18 }
0x350a   :  { %v7822_v14 = vpop.permute.xlu1 %7821 }
0x350c   :  { %10131 = vmatpush3.bf16.msra.mxu0 %v11267_v34 }
0x350f   :  { %9598 = vmatmul.mubr.msk.f32.vlgmr.msra.gmra.mrb[50].mxu0 %vm518_vm9, %v7822_v14 }
0x35e2   :  { %v7891_v52 = vpop.f32.mrb[50].mxu0 }
0x35e3   :  { %v10175_v45 = vadd.f32 %v12214_v24, %v7891_v52  ;;  %v9599_v53 = vpop.f32.mrb[51].mxu0  ;;  %v7918_v24 = vld [vmem:[#allocation20] sm:$0xff] }
0x35e4   :  { %v10133_v62 = vpack.c.bf16 %v7919_v39, %v7918_v24 }
0x35e5   :  { %v7896_v4 = vmul.f32 %v10175_v45, %v11156_v11 }
0x35e6   :  { %10134 = vmatpush3.bf16.msra.mxu1 %v10133_v62 }
0x35e7   :  { %10457 = vtanh.f32 %v7896_v4  ;;  %10135 = vmatprep.subr.bf16.mxu1 %v10813_v18 }
0x35ea   :  { %10137 = vmatpush3.bf16.msra.mxu1 %v10136_v63 }
0x35eb   :  { %10138 = vmatprep.subr.bf16.mxu1 %v10813_v18 }
0x35f1   :  { %v10458_v41 = vpop.eup %10457 }
0x35f2   :  { %v7898_v29 = vmul.f32 %v10458_v41, %v11156_v11 }
0x35f4   :  { %v7899_v37 = vadd.f32 %v7898_v29, %v11160_v0 }
0x35f6   :  { %7902 = vrot.lane.b32.xlu0 %v7899_v37, %s10816_s8  ;;  %v7900_v34 = vmul.f32 %v7899_v37, %v7737_v51 }
0x3668   :  { %v7903_v1 = vpop.permute.xlu0 %7902 }
0x3669   :  { %v7905_v48 = vmul.f32 %v7903_v1, %v7899_v37 }
0x366b   :  { %7907 = vrot.lane.b32.xlu1 %v7905_v48, %s10817_s4 }
0x36dd   :  { %v7908_v46 = vpop.permute.xlu1 %7907 }
0x36de   :  { %v7910_v49 = vadd.f32 %v7908_v46, %v7900_v34 }
0x36e0   :  { %10459 = vtanh.f32 %v7910_v49 }
0x36ea   :  { %v10460_v11 = vpop.eup %10459 }
0x36eb   :  { %7913 = vrot.lane.b32.xlu0 %v10460_v11, %s10816_s8 }
0x375d   :  { %v7914_v0 = vpop.permute.xlu0 %7913 }
0x375e   :  { %v7916_v2 = vmul.f32 %v7914_v0, %v7899_v37 }
0x3760   :  { %v7917_v25 = vmax.f32 %v7744_v33, %v7916_v2 }
0x3762   :  { %7924 = vrot.lane.b32.xlu1 %v7917_v25, %s10817_s4 }
0x37d4   :  { %v7925_v27 = vpop.permute.xlu1 %7924 }
0x37d5   :  { %9609 = vmatmul.mubr.msk.f32.vlgmr.msra.gmra.mrb[56].mxu1 %vm518_vm9, %v7925_v27 }
0x37d6   :  { %9619 = vmatprep.mubr.msk.f32.mxu1 %vm10814_vm10, %v10812_v8  ;;  %v8016_v8 = vld [vmem:[%s12437_s16] sm:$0xff]  ;;  %s10819_s16 = smov [#allocation23]  }
0x37d7   :  { %v10139_v16 = vpack.c.bf16 %v8017_v55, %v8016_v8  ;;  %s8104_s21 = sshll.u32 %s10819_s16, 4  ;;  %s8105_s21 = int_to_ptr.vmem [resolvable:$true] %s8104_s21 }
0x37d8   :  { %s10757_s13 = scalar_lea.vmem %s8105_s21, 16  ;;  %s10761_s22 = scalar_lea.vmem %s8105_s21, 32 }
0x37d9   :  { %10140 = vmatpush3.bf16.msra.mxu1 %v10139_v16  ;;  %p10758_p6 = scmp.ne.s32.totalorder %s8105_s21, %s10757_s13  ;;  %p10762_p7 = scmp.lt.s32.totalorder %s8105_s21, %s8105_s21 }
0x37da   :  { %10141 = vmatprep.subr.bf16.mxu1 %v10813_v18  ;;  %p10763_p8 = scmp.lt.s32.totalorder %s10761_s22, %s10757_s13 }
0x37dc   :  { %p10764_p9 = por %p10763_p8, %p10762_p7 }
0x37dd   :  { %10143 = vmatpush3.bf16.msra.mxu1 %v10142_v20 }
0x37de   :  { %p10765_p10 = pnand %p10764_p9, %p10758_p6 }
0x38a8   :  { %v7994_v3 = vpop.f32.mrb[56].mxu1 }
0x38a9   :  { %v7995_v22 = vadd.f32 %v7994_v3, %v7922_v17  ;;  %v9610_v57 = vpop.f32.mrb[57].mxu1 }
0x38ab   :  { %10461 = vtanh.f32 %v7995_v22 }
0x38b5   :  { %v10462_v50 = vpop.eup %10461 }
0x38b6   :  { %v8000_v36 = vsel %vm7999_vm14, %v10462_v50, -inf }
0x38b7   :  { %8001 = vmax.xlane.f32.xlu0 %v8000_v36 }
0x3944   :  { %v8002_v40 = vpop.xlane.xlu0 %8001 }
0x3945   :  { %v8003_v10 = vsub.f32 %v10462_v50, %v8002_v40 }
0x3947   :  { %v8004_v28 = vmul.f32 1.442695, %v8003_v10 }
0x3949   :  { %10463 = vpow2.f32 %v8004_v28 }
0x3953   :  { %v10464_v61 = vpop.eup %10463 }
0x3954   :  { %v8006_v13 = vsel %vm7999_vm14, %v10464_v61, 0.0 }
0x3955   :  { %8007 = vadd.xlane.f32.xlu1 %v8006_v13 }
0x39e2   :  { %v8008_v30 = vpop.xlane.xlu1 %8007 }
0x39e3   :  { %10465 = vrcp.f32 %v8008_v30 }
0x39ed   :  { %v10466_v26 = vpop.eup %10465 }
0x39ee   :  { %v8010_v5 = vmul.f32 %v10466_v26, %v10464_v61 }
0x39f0   :  { %8012 = vrot.lane.b32.xlu0 %v8010_v5, %s10818_s12 }
0x3a62   :  { %v8013_v23 = vpop.permute.xlu0 %8012 }
0x3a63   :  { %v8015_v56 = vmul.f32 %v8013_v23, %v7917_v25 }
0x3a65   :  { %8022 = vrot.lane.b32.xlu1 %v8015_v56, %s10817_s4 }
0x3ad7   :  { %v8023_v7 = vpop.permute.xlu1 %8022 }
0x3ad8   :  { %9620 = vmatmul.mubr.msk.f32.vlgmr.msra.gmra.mrb[58].mxu1 %vm518_vm9, %v8023_v7 }
0x3bab   :  { %v8092_v60 = vpop.f32.mrb[58].mxu1 }
0x3bac   :  { %v8093_v18 = vadd.f32 %v8092_v60, %v8020_v32  ;;  %v9621_v58 = vpop.f32.mrb[59].mxu1 }
0x3bae   :  { %8097 = vst.msk [vmem:[#allocation23] sm:$0x1] %vm8096_vm15, %v8093_v18 }
0x3baf   :  { %10768 = shalt.err (!%p10765_p10)
}
0x3bb0   :  { %s10769_s17 = scalar_lea.hbm %s12439_s18, 16 }
0x3bb1   :  { %p10770_p11 = scmp.ne.s32.totalorder %s12439_s18, %s10769_s17  ;;  %p10773_p12 = scmp.lt.u32.totalorder %s10769_s17, %s12439_s18 }
0x3bb3   :  { %p10775_p13 = pnand %p10773_p12, %p10770_p11 }
0x3bb5   :  { %10778 = shalt.err (!%p10775_p13)
}
0x3bb6   :  { %8107 = dma.vmem_to_hbm [thread:$0]  %s8105_s21, 16, %s12439_s18, [#allocation4]  }
0x3bb7   :  { %10793 = dma.done.wait [#allocation4], 16  }
0x3bb8   :  { %10794 = vsyncadd [#allocation4], 4294967280 }
0x3bb9   :  { %8111 = vsyncpa [#allocation3], 1 }
0x3bba   :  { %8112 = vsyncpa [#allocation6], 1 }
0x3bbb   :  { %8113 = vsyncpa [#allocation9], 1 }
0x3bbc   :  { %8114 = vsyncpa [#allocation12], 1 }
0x3bbd   :  { %8115 = vsyncpa [#allocation15], 1 }
0x3bbe   :  { %8116 = vsyncpa [#allocation18], 1 }
0x3bbf   :  { %8117 = vsyncpa [#allocation21], 1 }
0x3bc0   :  { %8118 = vsyncpa [#allocation4], 1 }

</bundles_post_ra>
